<compile_context>
chip_gen: v5e
topology: v5e:2x2
jax: 0.10.0
libtpu: 0.0.40
codegen_flags: <defaults>
</compile_context>

<pallas_src>
import functools

import numpy as np
import jax
import jax.numpy as jnp
from jax import lax
from jax.experimental import pallas as pl
from jax.experimental.pallas import tpu as pltpu

F32 = jnp.float32
L_VALID = 88          # sequence length implied by fc1 = 128 * 11 (88->44->22->11)
L_PAD = 96            # padded to a multiple of 8 sublanes


def cnn_kernel(x_ref, w1_ref, b1_ref, w2_ref, b2_ref, w3_ref, b3_ref,
               wfc1_ref, bfc1_ref, wfc2_ref, bfc2_ref, o_ref, *, block_batch):
    B = block_batch
    M = L_PAD * B                      # rows, ordered l * B + b

    def shift_l(a, delta):
        """result[l*B+b] = a[(l+delta)*B+b] (row rotation by whole l-blocks;
        wrapped rows only ever land in the zero-masked pad region)."""
        k = (delta * B) % M
        if k == 0:
            return a
        return jnp.concatenate([a[k:], a[:k]], axis=0)

    row = lax.broadcasted_iota(jnp.int32, (M, 1), 0)
    valid = row < (L_VALID * B)        # rows with l < 88

    def pool(a, step):
        """MaxPool2d((2,1)) at the current l-stride.  Rows are not compacted;
        the valid stride simply doubles.  Pad rows (l >= 88) are zeroed so the
        next conv sees correct 'same' zero padding (also guards the wrap of
        shift_l across the tile boundary)."""
        return jnp.where(valid, jnp.maximum(a, shift_l(a, step)), 0.0)

    def conv(a, w_ref, b_ref, step):
        """(3,1) conv at l-stride `step`: fuse the 3 taps along lanes and do a
        single MXU matmul, then bias + ReLU."""
        taps = jnp.concatenate([shift_l(a, -step), a, shift_l(a, step)], axis=1)
        out = jnp.dot(taps, w_ref[...], preferred_element_type=F32) + b_ref[...]
        return jnp.maximum(out, 0.0)

    # conv1 (Cin = 1): the wrapper pre-builds the tap matrix, lanes
    # [x[l-1], x[l], x[l+1], 0, ...], so this is one (96B, 8) @ (8, 32) matmul.
    h = jnp.dot(x_ref[...], w1_ref[...], preferred_element_type=F32) + b1_ref[...]
    h = jnp.maximum(h, 0.0)                      # (96B, 32)
    h = pool(h, 1)                               # valid at l % 2 == 0
    h = conv(h, w2_ref, b2_ref, 2)               # (96B, 64)
    h = pool(h, 2)                               # valid at l % 4 == 0
    h = conv(h, w3_ref, b3_ref, 4)               # (96B, 128)
    h = jnp.maximum(h, shift_l(h, 4))            # pool3; valid at l % 8 == 0

    # fc1: gather the 11 valid row blocks (l = 0, 8, ..., 80) into (B, 1408)
    # by lane concatenation and contract in one matmul.
    f = jnp.concatenate([h[8 * j * B:(8 * j + 1) * B, :] for j in range(11)],
                        axis=1)                  # (B, 1408)
    z = jnp.dot(f, wfc1_ref[...], preferred_element_type=F32) + bfc1_ref[...]
    z = jnp.maximum(z, 0.0)
    # TODO(synk): nn.Dropout(p=0.5) is the identity at inference (eval mode).
    o_ref[...] = (jnp.dot(z, wfc2_ref[...], preferred_element_type=F32)
                  + bfc2_ref[...])               # (B, 128); lanes 0..1 are real


def _prepare_params(params):
    """PyTorch-layout parameters -> kernel-layout arrays."""
    (w1, b1, w2, b2, w3, b3, fw1, fb1, fw2, fb2) = params
    W1 = jnp.pad(jnp.transpose(w1[:, 0, :, 0]), ((0, 5), (0, 0)))       # (8, 32)
    W2 = jnp.transpose(w2[:, :, :, 0], (2, 1, 0)).reshape(3 * 32, 64)   # (96, 64)
    W3 = jnp.transpose(w3[:, :, :, 0], (2, 1, 0)).reshape(3 * 64, 128)  # (192, 128)
    # PyTorch flattens (N, 128, 11, 1) in (c, h) order; kernel lanes are h*128+c.
    Wf1 = jnp.transpose(fw1.reshape(256, 128, 11), (2, 1, 0)).reshape(1408, 256)
    Wf2 = jnp.pad(fw2.T, ((0, 0), (0, 126)))                            # (256, 128)
    return (W1, b1[None, :], W2, b2[None, :], W3, b3[None, :],
            Wf1, fb1[None, :], Wf2, jnp.pad(fb2, (0, 126))[None, :])


def cnn_forward(x_nchw, params, block_batch=64):
    """x_nchw: (N, 1, 88, 1) float32 -> logits (N, 2).  params: PyTorch layout."""
    assert block_batch % 8 == 0
    B = block_batch
    N = x_nchw.shape[0]
    ntiles = (N + B - 1) // B
    npad = ntiles * B

    # Input taps built in XLA: rows ordered (tile, l, b), lanes =
    # [x[l-1], x[l], x[l+1], 0, ...] with 'same' zero padding.
    x = x_nchw[:, 0, :, 0].astype(F32)                        # (N, 88)
    x = jnp.pad(x, ((0, npad - N), (0, L_PAD - L_VALID)))     # (npad, 96)
    xm1 = jnp.pad(x, ((0, 0), (1, 0)))[:, :L_PAD]
    xp1 = jnp.pad(x, ((0, 0), (0, 1)))[:, 1:]
    taps = jnp.stack([xm1, x, xp1], axis=-1)                  # (npad, 96, 3)
    taps = jnp.pad(taps, ((0, 0), (0, 0), (0, 5)))            # (npad, 96, 8)
    taps = (taps.reshape(ntiles, B, L_PAD, 8)
                .transpose(0, 2, 1, 3)
                .reshape(ntiles * L_PAD * B, 8))

    kparams = _prepare_params(params)

    def full(a):
        nd = a.ndim
        return pl.BlockSpec(a.shape, lambda i, _nd=nd: (0,) * _nd)

    cp = dict(dimension_semantics=("parallel",))
    if B > 32:  # headroom for the larger live activation set at big tiles
        cp["vmem_limit_bytes"] = 48 * 1024 * 1024

    out = pl.pallas_call(
        functools.partial(cnn_kernel, block_batch=B),
        out_shape=jax.ShapeDtypeStruct((npad, 128), F32),
        grid=(ntiles,),
        in_specs=[pl.BlockSpec((L_PAD * B, 8), lambda i: (i, 0))]
                 + [full(p) for p in kparams],
        out_specs=pl.BlockSpec((B, 128), lambda i: (i, 0)),
        compiler_params=pltpu.CompilerParams(**cp),
    )(taps, *kparams)
    return out[:N, :2]


def make_params(key):
    """Deterministic synthetic parameters in PyTorch layout."""
    ks = jax.random.split(key, 10)
    s = 0.1
    return (s * jax.random.normal(ks[0], (32, 1, 3, 1), F32),
            s * jax.random.normal(ks[1], (32,), F32),
            s * jax.random.normal(ks[2], (64, 32, 3, 1), F32),
            s * jax.random.normal(ks[3], (64,), F32),
            s * jax.random.normal(ks[4], (128, 64, 3, 1), F32),
            s * jax.random.normal(ks[5], (128,), F32),
            s * jax.random.normal(ks[6], (256, 128 * 11), F32),
            s * jax.random.normal(ks[7], (256,), F32),
            s * jax.random.normal(ks[8], (2, 256), F32),
            s * jax.random.normal(ks[9], (2,), F32))


def ref_forward(x_nchw, params):
    """Pure-JAX reference of the PyTorch module (eval mode)."""
    (w1, b1, w2, b2, w3, b3, fw1, fb1, fw2, fb2) = params
    hi = lax.Precision.HIGHEST
    relu = jax.nn.relu
    h = x_nchw[:, :, :, 0]                        # (N, Cin, L)

    def conv(h, w, b):                            # w: (Cout, Cin, 3, 1)
        L = h.shape[2]
        hp = jnp.pad(h, ((0, 0), (0, 0), (1, 1)))
        out = sum(jnp.einsum('ncl,dc->ndl', hp[:, :, k:k + L], w[:, :, k, 0],
                             precision=hi) for k in range(3))
        return out + b[None, :, None]

    def pool(h):
        n, c, L = h.shape
        return jnp.max(h.reshape(n, c, L // 2, 2), axis=-1)

    h = pool(relu(conv(h, w1, b1)))
    h = pool(relu(conv(h, w2, b2)))
    h = pool(relu(conv(h, w3, b3)))
    f = h.reshape(h.shape[0], -1)                 # (N, 128*11), (c, h) order
    z = relu(jnp.dot(f, fw1.T, precision=hi) + fb1)
    return jnp.dot(z, fw2.T, precision=hi) + fb2


if __name__ == "__main__":
    key = jax.random.PRNGKey(0)
    kx, kp = jax.random.split(key)
    # Small batch; H = 88 is forced by the module (fc1 expects 128 * 11 features).
    x = jax.random.normal(kx, (10, 1, L_VALID, 1), F32)
    params = make_params(kp)

    out = jax.block_until_ready(cnn_forward(x, params, block_batch=8))
    ref = jax.block_until_ready(ref_forward(x, params))

    assert out.shape == (10, 2), out.shape
    assert np.allclose(np.asarray(out), np.asarray(ref), atol=2e-4, rtol=2e-4), (
        out, ref)
    print("KERNEL_OK")
</pallas_src>

<mosaic_0001>
module attributes {stable_mosaic.version = 11 : i64} {
  func.func @cnn_kernel(%arg0: i32, %arg1: memref<768x8xf32, #tpu.memory_space<vmem>>, %arg2: memref<8x32xf32, #tpu.memory_space<vmem>>, %arg3: memref<1x32xf32, #tpu.memory_space<vmem>>, %arg4: memref<96x64xf32, #tpu.memory_space<vmem>>, %arg5: memref<1x64xf32, #tpu.memory_space<vmem>>, %arg6: memref<192x128xf32, #tpu.memory_space<vmem>>, %arg7: memref<1x128xf32, #tpu.memory_space<vmem>>, %arg8: memref<1408x256xf32, #tpu.memory_space<vmem>>, %arg9: memref<1x256xf32, #tpu.memory_space<vmem>>, %arg10: memref<256x128xf32, #tpu.memory_space<vmem>>, %arg11: memref<1x128xf32, #tpu.memory_space<vmem>>, %arg12: memref<8x128xf32, #tpu.memory_space<vmem>>) attributes {dimension_semantics = [#tpu.dimension_semantics<parallel>], iteration_bounds = array<i64: 2>, scalar_prefetch = 0 : i64, scratch_operands = 0 : i64, tpu.core_type = #tpu.core_type<tc>, window_params = [{transform_indices = @transform_0, window_bounds = array<i64: 768, 8>}, {pipeline_mode = #tpu.pipeline_mode<synchronous>, transform_indices = @transform_1, window_bounds = array<i64: 8, 32>}, {pipeline_mode = #tpu.pipeline_mode<synchronous>, transform_indices = @transform_2, window_bounds = array<i64: 1, 32>}, {pipeline_mode = #tpu.pipeline_mode<synchronous>, transform_indices = @transform_3, window_bounds = array<i64: 96, 64>}, {pipeline_mode = #tpu.pipeline_mode<synchronous>, transform_indices = @transform_4, window_bounds = array<i64: 1, 64>}, {pipeline_mode = #tpu.pipeline_mode<synchronous>, transform_indices = @transform_5, window_bounds = array<i64: 192, 128>}, {pipeline_mode = #tpu.pipeline_mode<synchronous>, transform_indices = @transform_6, window_bounds = array<i64: 1, 128>}, {pipeline_mode = #tpu.pipeline_mode<synchronous>, transform_indices = @transform_7, window_bounds = array<i64: 1408, 256>}, {pipeline_mode = #tpu.pipeline_mode<synchronous>, transform_indices = @transform_8, window_bounds = array<i64: 1, 256>}, {pipeline_mode = #tpu.pipeline_mode<synchronous>, transform_indices = @transform_9, window_bounds = array<i64: 256, 128>}, {pipeline_mode = #tpu.pipeline_mode<synchronous>, transform_indices = @transform_10, window_bounds = array<i64: 1, 128>}, {transform_indices = @transform_11, window_bounds = array<i64: 8, 128>}]} {
    %0 = tpu.iota {dimensions = array<i32: 0>} : vector<768x1xi32>
    %c704_i32 = arith.constant 704 : i32
    %1 = vector.broadcast %c704_i32 : i32 to vector<768x1xi32>
    %2 = arith.cmpi slt, %0, %1 : vector<768x1xi32>
    %c0 = arith.constant 0 : index
    %c0_0 = arith.constant 0 : index
    %3 = vector.load %arg1[%c0, %c0_0] : memref<768x8xf32, #tpu.memory_space<vmem>>, vector<768x8xf32>
    %c0_1 = arith.constant 0 : index
    %c0_2 = arith.constant 0 : index
    %4 = vector.load %arg2[%c0_1, %c0_2] : memref<8x32xf32, #tpu.memory_space<vmem>>, vector<8x32xf32>
    %cst = arith.constant dense<0.000000e+00> : vector<768x32xf32>
    %5 = tpu.matmul %3, %4, %cst {dimension_numbers = #tpu.dot_dimension_numbers<[1], [0], [0], [1], [0, 0, 1, 1], [], []>} : vector<768x8xf32>, vector<8x32xf32>, vector<768x32xf32> -> vector<768x32xf32>
    %c0_3 = arith.constant 0 : index
    %c0_4 = arith.constant 0 : index
    %6 = vector.load %arg3[%c0_3, %c0_4] : memref<1x32xf32, #tpu.memory_space<vmem>>, vector<1x32xf32>
    %7 = vector.broadcast %6 : vector<1x32xf32> to vector<768x32xf32>
    %8 = arith.addf %5, %7 : vector<768x32xf32>
    %cst_5 = arith.constant 0.000000e+00 : f32
    %9 = vector.broadcast %cst_5 : f32 to vector<768x32xf32>
    %10 = arith.maximumf %8, %9 : vector<768x32xf32>
    %11 = vector.extract_strided_slice %10 {offsets = [8, 0], sizes = [760, 32], strides = [1, 1]} : vector<768x32xf32> to vector<760x32xf32>
    %12 = vector.extract_strided_slice %10 {offsets = [0, 0], sizes = [8, 32], strides = [1, 1]} : vector<768x32xf32> to vector<8x32xf32>
    %13 = tpu.concatenate %11, %12 in 0 : vector<760x32xf32>, vector<8x32xf32> -> vector<768x32xf32>
    %14 = arith.maximumf %10, %13 : vector<768x32xf32>
    %cst_6 = arith.constant 0.000000e+00 : f32
    %15 = vector.shape_cast %2 : vector<768x1xi1> to vector<768x1xi1>
    %16 = vector.broadcast %15 : vector<768x1xi1> to vector<768x32xi1>
    %17 = vector.broadcast %cst_6 : f32 to vector<768x32xf32>
    %18 = arith.select %16, %14, %17 : vector<768x32xi1>, vector<768x32xf32>
    %19 = vector.extract_strided_slice %18 {offsets = [752, 0], sizes = [16, 32], strides = [1, 1]} : vector<768x32xf32> to vector<16x32xf32>
    %20 = vector.extract_strided_slice %18 {offsets = [0, 0], sizes = [752, 32], strides = [1, 1]} : vector<768x32xf32> to vector<752x32xf32>
    %21 = tpu.concatenate %19, %20 in 0 : vector<16x32xf32>, vector<752x32xf32> -> vector<768x32xf32>
    %22 = vector.extract_strided_slice %18 {offsets = [16, 0], sizes = [752, 32], strides = [1, 1]} : vector<768x32xf32> to vector<752x32xf32>
    %23 = vector.extract_strided_slice %18 {offsets = [0, 0], sizes = [16, 32], strides = [1, 1]} : vector<768x32xf32> to vector<16x32xf32>
    %24 = tpu.concatenate %22, %23 in 0 : vector<752x32xf32>, vector<16x32xf32> -> vector<768x32xf32>
    %25 = tpu.concatenate %21, %18, %24 in 1 : vector<768x32xf32>, vector<768x32xf32>, vector<768x32xf32> -> vector<768x96xf32>
    %c0_7 = arith.constant 0 : index
    %c0_8 = arith.constant 0 : index
    %26 = vector.load %arg4[%c0_7, %c0_8] : memref<96x64xf32, #tpu.memory_space<vmem>>, vector<96x64xf32>
    %cst_9 = arith.constant dense<0.000000e+00> : vector<768x64xf32>
    %27 = tpu.matmul %25, %26, %cst_9 {dimension_numbers = #tpu.dot_dimension_numbers<[1], [0], [0], [1], [0, 0, 1, 1], [], []>} : vector<768x96xf32>, vector<96x64xf32>, vector<768x64xf32> -> vector<768x64xf32>
    %c0_10 = arith.constant 0 : index
    %c0_11 = arith.constant 0 : index
    %28 = vector.load %arg5[%c0_10, %c0_11] : memref<1x64xf32, #tpu.memory_space<vmem>>, vector<1x64xf32>
    %29 = vector.broadcast %28 : vector<1x64xf32> to vector<768x64xf32>
    %30 = arith.addf %27, %29 : vector<768x64xf32>
    %cst_12 = arith.constant 0.000000e+00 : f32
    %31 = vector.broadcast %cst_12 : f32 to vector<768x64xf32>
    %32 = arith.maximumf %30, %31 : vector<768x64xf32>
    %33 = vector.extract_strided_slice %32 {offsets = [16, 0], sizes = [752, 64], strides = [1, 1]} : vector<768x64xf32> to vector<752x64xf32>
    %34 = vector.extract_strided_slice %32 {offsets = [0, 0], sizes = [16, 64], strides = [1, 1]} : vector<768x64xf32> to vector<16x64xf32>
    %35 = tpu.concatenate %33, %34 in 0 : vector<752x64xf32>, vector<16x64xf32> -> vector<768x64xf32>
    %36 = arith.maximumf %32, %35 : vector<768x64xf32>
    %cst_13 = arith.constant 0.000000e+00 : f32
    %37 = vector.shape_cast %2 : vector<768x1xi1> to vector<768x1xi1>
    %38 = vector.broadcast %37 : vector<768x1xi1> to vector<768x64xi1>
    %39 = vector.broadcast %cst_13 : f32 to vector<768x64xf32>
    %40 = arith.select %38, %36, %39 : vector<768x64xi1>, vector<768x64xf32>
    %41 = vector.extract_strided_slice %40 {offsets = [736, 0], sizes = [32, 64], strides = [1, 1]} : vector<768x64xf32> to vector<32x64xf32>
    %42 = vector.extract_strided_slice %40 {offsets = [0, 0], sizes = [736, 64], strides = [1, 1]} : vector<768x64xf32> to vector<736x64xf32>
    %43 = tpu.concatenate %41, %42 in 0 : vector<32x64xf32>, vector<736x64xf32> -> vector<768x64xf32>
    %44 = vector.extract_strided_slice %40 {offsets = [32, 0], sizes = [736, 64], strides = [1, 1]} : vector<768x64xf32> to vector<736x64xf32>
    %45 = vector.extract_strided_slice %40 {offsets = [0, 0], sizes = [32, 64], strides = [1, 1]} : vector<768x64xf32> to vector<32x64xf32>
    %46 = tpu.concatenate %44, %45 in 0 : vector<736x64xf32>, vector<32x64xf32> -> vector<768x64xf32>
    %47 = tpu.concatenate %43, %40, %46 in 1 : vector<768x64xf32>, vector<768x64xf32>, vector<768x64xf32> -> vector<768x192xf32>
    %c0_14 = arith.constant 0 : index
    %c0_15 = arith.constant 0 : index
    %48 = vector.load %arg6[%c0_14, %c0_15] : memref<192x128xf32, #tpu.memory_space<vmem>>, vector<192x128xf32>
    %cst_16 = arith.constant dense<0.000000e+00> : vector<768x128xf32>
    %49 = tpu.matmul %47, %48, %cst_16 {dimension_numbers = #tpu.dot_dimension_numbers<[1], [0], [0], [1], [0, 0, 1, 1], [], []>} : vector<768x192xf32>, vector<192x128xf32>, vector<768x128xf32> -> vector<768x128xf32>
    %c0_17 = arith.constant 0 : index
    %c0_18 = arith.constant 0 : index
    %50 = vector.load %arg7[%c0_17, %c0_18] : memref<1x128xf32, #tpu.memory_space<vmem>>, vector<1x128xf32>
    %51 = vector.broadcast %50 : vector<1x128xf32> to vector<768x128xf32>
    %52 = arith.addf %49, %51 : vector<768x128xf32>
    %cst_19 = arith.constant 0.000000e+00 : f32
    %53 = vector.broadcast %cst_19 : f32 to vector<768x128xf32>
    %54 = arith.maximumf %52, %53 : vector<768x128xf32>
    %55 = vector.extract_strided_slice %54 {offsets = [32, 0], sizes = [736, 128], strides = [1, 1]} : vector<768x128xf32> to vector<736x128xf32>
    %56 = vector.extract_strided_slice %54 {offsets = [0, 0], sizes = [32, 128], strides = [1, 1]} : vector<768x128xf32> to vector<32x128xf32>
    %57 = tpu.concatenate %55, %56 in 0 : vector<736x128xf32>, vector<32x128xf32> -> vector<768x128xf32>
    %58 = arith.maximumf %54, %57 : vector<768x128xf32>
    %59 = vector.extract_strided_slice %58 {offsets = [0, 0], sizes = [8, 128], strides = [1, 1]} : vector<768x128xf32> to vector<8x128xf32>
    %60 = vector.extract_strided_slice %58 {offsets = [64, 0], sizes = [8, 128], strides = [1, 1]} : vector<768x128xf32> to vector<8x128xf32>
    %61 = vector.extract_strided_slice %58 {offsets = [128, 0], sizes = [8, 128], strides = [1, 1]} : vector<768x128xf32> to vector<8x128xf32>
    %62 = vector.extract_strided_slice %58 {offsets = [192, 0], sizes = [8, 128], strides = [1, 1]} : vector<768x128xf32> to vector<8x128xf32>
    %63 = vector.extract_strided_slice %58 {offsets = [256, 0], sizes = [8, 128], strides = [1, 1]} : vector<768x128xf32> to vector<8x128xf32>
    %64 = vector.extract_strided_slice %58 {offsets = [320, 0], sizes = [8, 128], strides = [1, 1]} : vector<768x128xf32> to vector<8x128xf32>
    %65 = vector.extract_strided_slice %58 {offsets = [384, 0], sizes = [8, 128], strides = [1, 1]} : vector<768x128xf32> to vector<8x128xf32>
    %66 = vector.extract_strided_slice %58 {offsets = [448, 0], sizes = [8, 128], strides = [1, 1]} : vector<768x128xf32> to vector<8x128xf32>
    %67 = vector.extract_strided_slice %58 {offsets = [512, 0], sizes = [8, 128], strides = [1, 1]} : vector<768x128xf32> to vector<8x128xf32>
    %68 = vector.extract_strided_slice %58 {offsets = [576, 0], sizes = [8, 128], strides = [1, 1]} : vector<768x128xf32> to vector<8x128xf32>
    %69 = vector.extract_strided_slice %58 {offsets = [640, 0], sizes = [8, 128], strides = [1, 1]} : vector<768x128xf32> to vector<8x128xf32>
    %70 = tpu.concatenate %59, %60, %61, %62, %63, %64, %65, %66, %67, %68, %69 in 1 : vector<8x128xf32>, vector<8x128xf32>, vector<8x128xf32>, vector<8x128xf32>, vector<8x128xf32>, vector<8x128xf32>, vector<8x128xf32>, vector<8x128xf32>, vector<8x128xf32>, vector<8x128xf32>, vector<8x128xf32> -> vector<8x1408xf32>
    %c0_20 = arith.constant 0 : index
    %c0_21 = arith.constant 0 : index
    %71 = vector.load %arg8[%c0_20, %c0_21] : memref<1408x256xf32, #tpu.memory_space<vmem>>, vector<1408x256xf32>
    %cst_22 = arith.constant dense<0.000000e+00> : vector<8x256xf32>
    %72 = tpu.matmul %70, %71, %cst_22 {dimension_numbers = #tpu.dot_dimension_numbers<[1], [0], [0], [1], [0, 0, 1, 1], [], []>} : vector<8x1408xf32>, vector<1408x256xf32>, vector<8x256xf32> -> vector<8x256xf32>
    %c0_23 = arith.constant 0 : index
    %c0_24 = arith.constant 0 : index
    %73 = vector.load %arg9[%c0_23, %c0_24] : memref<1x256xf32, #tpu.memory_space<vmem>>, vector<1x256xf32>
    %74 = vector.broadcast %73 : vector<1x256xf32> to vector<8x256xf32>
    %75 = arith.addf %72, %74 : vector<8x256xf32>
    %cst_25 = arith.constant 0.000000e+00 : f32
    %76 = vector.broadcast %cst_25 : f32 to vector<8x256xf32>
    %77 = arith.maximumf %75, %76 : vector<8x256xf32>
    %c0_26 = arith.constant 0 : index
    %c0_27 = arith.constant 0 : index
    %78 = vector.load %arg10[%c0_26, %c0_27] : memref<256x128xf32, #tpu.memory_space<vmem>>, vector<256x128xf32>
    %cst_28 = arith.constant dense<0.000000e+00> : vector<8x128xf32>
    %79 = tpu.matmul %77, %78, %cst_28 {dimension_numbers = #tpu.dot_dimension_numbers<[1], [0], [0], [1], [0, 0, 1, 1], [], []>} : vector<8x256xf32>, vector<256x128xf32>, vector<8x128xf32> -> vector<8x128xf32>
    %c0_29 = arith.constant 0 : index
    %c0_30 = arith.constant 0 : index
    %80 = vector.load %arg11[%c0_29, %c0_30] : memref<1x128xf32, #tpu.memory_space<vmem>>, vector<1x128xf32>
    %81 = vector.broadcast %80 : vector<1x128xf32> to vector<8x128xf32>
    %82 = arith.addf %79, %81 : vector<8x128xf32>
    %c0_31 = arith.constant 0 : index
    %c0_32 = arith.constant 0 : index
    %83 = vector.load %arg12[%c0_31, %c0_32] : memref<8x128xf32, #tpu.memory_space<vmem>>, vector<8x128xf32>
    tpu.vector_store %arg12[%c0_31, %c0_32], %82 {strides = array<i32>} : memref<8x128xf32, #tpu.memory_space<vmem>>, vector<8x128xf32>,
    return
  }
  func.func @transform_0(%arg0: i32) -> (i32, i32) {
    %c0_i32 = arith.constant 0 : i32
    %c0_i32_0 = arith.constant 0 : i32
    return %arg0, %c0_i32 : i32, i32
  }
  func.func @transform_1(%arg0: i32) -> (i32, i32) {
    %c0_i32 = arith.constant 0 : i32
    %c0_i32_0 = arith.constant 0 : i32
    %c0_i32_1 = arith.constant 0 : i32
    return %c0_i32, %c0_i32_0 : i32, i32
  }
  func.func @transform_2(%arg0: i32) -> (i32, i32) {
    %c0_i32 = arith.constant 0 : i32
    %c0_i32_0 = arith.constant 0 : i32
    %c0_i32_1 = arith.constant 0 : i32
    return %c0_i32, %c0_i32_0 : i32, i32
  }
  func.func @transform_3(%arg0: i32) -> (i32, i32) {
    %c0_i32 = arith.constant 0 : i32
    %c0_i32_0 = arith.constant 0 : i32
    %c0_i32_1 = arith.constant 0 : i32
    return %c0_i32, %c0_i32_0 : i32, i32
  }
  func.func @transform_4(%arg0: i32) -> (i32, i32) {
    %c0_i32 = arith.constant 0 : i32
    %c0_i32_0 = arith.constant 0 : i32
    %c0_i32_1 = arith.constant 0 : i32
    return %c0_i32, %c0_i32_0 : i32, i32
  }
  func.func @transform_5(%arg0: i32) -> (i32, i32) {
    %c0_i32 = arith.constant 0 : i32
    %c0_i32_0 = arith.constant 0 : i32
    %c0_i32_1 = arith.constant 0 : i32
    return %c0_i32, %c0_i32_0 : i32, i32
  }
  func.func @transform_6(%arg0: i32) -> (i32, i32) {
    %c0_i32 = arith.constant 0 : i32
    %c0_i32_0 = arith.constant 0 : i32
    %c0_i32_1 = arith.constant 0 : i32
    return %c0_i32, %c0_i32_0 : i32, i32
  }
  func.func @transform_7(%arg0: i32) -> (i32, i32) {
    %c0_i32 = arith.constant 0 : i32
    %c0_i32_0 = arith.constant 0 : i32
    %c0_i32_1 = arith.constant 0 : i32
    return %c0_i32, %c0_i32_0 : i32, i32
  }
  func.func @transform_8(%arg0: i32) -> (i32, i32) {
    %c0_i32 = arith.constant 0 : i32
    %c0_i32_0 = arith.constant 0 : i32
    %c0_i32_1 = arith.constant 0 : i32
    return %c0_i32, %c0_i32_0 : i32, i32
  }
  func.func @transform_9(%arg0: i32) -> (i32, i32) {
    %c0_i32 = arith.constant 0 : i32
    %c0_i32_0 = arith.constant 0 : i32
    %c0_i32_1 = arith.constant 0 : i32
    return %c0_i32, %c0_i32_0 : i32, i32
  }
  func.func @transform_10(%arg0: i32) -> (i32, i32) {
    %c0_i32 = arith.constant 0 : i32
    %c0_i32_0 = arith.constant 0 : i32
    %c0_i32_1 = arith.constant 0 : i32
    return %c0_i32, %c0_i32_0 : i32, i32
  }
  func.func @transform_11(%arg0: i32) -> (i32, i32) {
    %c0_i32 = arith.constant 0 : i32
    %c0_i32_0 = arith.constant 0 : i32
    return %arg0, %c0_i32 : i32, i32
  }
}

</mosaic_0001>

<bundles_post_ra>
// kernel: tpu_custom_call.1
= control target key start
LH: loop header
LB: loop body
LE: loop exit
PB: predicated region body
PF: predicated region fallthrough
CT: control target
= control target key end

     0   :  { %s9639_s0 = inlined_call_operand.vmem [shape: f32[1536,8], index: 0, kind: input, shape index: {}]   ;;  %s9640_s1 = inlined_call_operand.hbm [shape: f32[8,32], index: 1, kind: input, shape index: {}]   ;;  %s9641_s2 = inlined_call_operand.hbm [shape: f32[1,32], index: 2, kind: input, shape index: {}]   ;;  %s9642_s3 = inlined_call_operand.vmem [shape: f32[96,64], index: 3, kind: input, shape index: {}]   ;;  %s9643_s4 = inlined_call_operand.hbm [shape: f32[1,64], index: 4, kind: input, shape index: {}]   ;;  %s9644_s5 = inlined_call_operand.hbm [shape: f32[192,128], index: 5, kind: input, shape index: {}]   ;;  %s9645_s6 = inlined_call_operand.hbm [shape: f32[1,128], index: 6, kind: input, shape index: {}]   ;;  %s9646_s7 = inlined_call_operand.hbm [shape: f32[1408,256], index: 7, kind: input, shape index: {}]   ;;  %s9647_s8 = inlined_call_operand.hbm [shape: f32[1,256], index: 8, kind: input, shape index: {}]   ;;  %s9648_s9 = inlined_call_operand.hbm [shape: f32[256,128], index: 9, kind: input, shape index: {}]   ;;  %s9649_s10 = inlined_call_operand.hbm [shape: f32[1,128], index: 10, kind: input, shape index: {}]   ;;  %s9650_s11 = inlined_call_operand.hbm [shape: f32[16,128], index: 11, kind: output, shape index: {}]  }
   0x1   :  { %9683 = sst [smem:[#allocation58_spill]] %s9641_s2 }
   0x2   :  { %9684 = sst [smem:[#allocation59_spill]] %s9644_s5 }
   0x3   :  { %9685 = sst [smem:[#allocation60_spill]] %s9646_s7 }
   0x4   :  { %9686 = sst [smem:[#allocation61_spill]] %s9648_s9 }
   0x5   :  { %16 = vsyncpa [#allocation3], 0 }
   0x6   :  { %17 = vsyncpa [#allocation6], 0 }
   0x7   :  { %18 = vsyncpa [#allocation9], 0 }
   0x8   :  { %19 = vsyncpa [#allocation12], 0 }
   0x9   :  { %20 = vsyncpa [#allocation15], 0 }
   0xa   :  { %21 = vsyncpa [#allocation4], 0 }
   0xb   :  { %23 = vsyncpa [#allocation4 + $0x1], 0  ;;  %s6969_s17 = smov 0   ;;  %s6971_s18 = smov 0  }
   0xc   :  { %s6973_s19 = smov 0   ;;  %s6975_s20 = smov 0  }
   0xd LB: > { %9687 = sst [smem:[#allocation24_spill]] %s6879_s17  ;;  %s6990_s21 = sadd.s32 4294967295, %s6891_s20   ;;  %s6891_s20 = sphi %s6975_s20, %s9777_s20   ;;  %s6887_s19 = sphi %s6973_s19, %s9779_s19   ;;  %s6883_s18 = sphi %s6971_s18, %s9781_s18   ;;  %s6879_s17 = sphi %s6969_s17, %s9780_s17  }
   0xe   : > { %9688 = sst [smem:[#allocation25_spill]] %s6887_s19  ;;  %s5891_s22 = sadd.s32 4294967294, %s6891_s20  }
   0xf   : > { %s6994_s23 = sadd.s32 1, %s6891_s20   ;;  %s272_s24 = sadd.s32 1, %s6887_s19 }
  0x10   : > { %9689 = sst [smem:[#allocation26_spill]] %s6994_s23  ;;  %s269_s25 = ssub.s32 %s6891_s20, %s6994_s23 }
  0x11   : > { %p282_p0 = scmp.ne.s32.totalorder %s6887_s19, %s6883_s18  ;;  %p270_p1 = scmp.eq.s32.totalorder %s269_s25, 0 }
  0x12   : > { %p283_p2 = scmp.eq.s32.totalorder %s6990_s21, 1  ;;  %p288_p3 = scmp.ne.s32.totalorder %s6883_s18, %s6879_s17 }
  0x13   : > { %p289_p4 = scmp.eq.s32.totalorder %s5891_s22, 1  ;;  %p5892_p7 = scmp.ge.s32.totalorder %s6891_s20, 1 }
  0x14   : > { %s7005_s26 = scalar_select %p270_p1, %s6887_s19, %s272_s24  }
  0x15   : > { %p7007_p5 = por %p283_p2, %p282_p0  ;;  %p7011_p6 = por %p289_p4, %p288_p3 }
  0x16   : > { %9690 = sst [smem:[#allocation27_spill]] %s7005_s26  ;;  %p296_p8 = scmp.lt.s32.totalorder %s6891_s20, 3 }
  0x17   : > { %s9692_s28 = scalar_select %p7011_p6, 1, 0 }
  0x18   : > { %p6285_p9 = scmp.eq.s32.totalorder %s6990_s21, 0  ;;  %p7018_p10 = pnand %p5892_p7, %p296_p8 }
  0x19   : > { %9693 = sst [smem:[#allocation28_spill]] %s9692_s28  ;;  %s6893_s14 = smov [#allocation5]  }
  0x1a   : > { %s9695_s2 = sld [smem:[#allocation58_spill]]  ;;  %p6253_p11 = pneg %p7018_p10 }
  0x1b   : > { %s322_s15 = sshll.u32 %s6893_s14, 4  ;;  %s9696_s5 = sld [smem:[#allocation59_spill]]  ;;  %s323_s15 = int_to_ptr.vmem [resolvable:$true] %s322_s15 }
  0x1c   : > { %p7032_p12 = pnand %p6285_p9, %p6253_p11  ;;  %s6894_s30 = smov [#allocation8]  }
  0x1d   : > { %s348_s12 = sshll.u32 %s6894_s30, 4  ;;  %s6895_s14 = smov 128   ;;  %s349_s12 = int_to_ptr.vmem [resolvable:$true] %s348_s12 }
  0x1e   : > { %s9698_s7 = sld [smem:[#allocation60_spill]]  ;;  %s6897_s26 = smov [#allocation11]  }
  0x1f   : > { %s374_s19 = sshll.u32 %s6897_s26, 4  ;;  %s9699_s9 = sld [smem:[#allocation61_spill]]  ;;  %s375_s19 = int_to_ptr.vmem [resolvable:$true] %s374_s19 }
  0x20   : > { %s320_s13 = sshll.u32 %s9695_s2, 4  ;;  %s6896_s2 = smov 8   ;;  %s321_s13 = int_to_ptr.hbm [resolvable:$true] %s320_s13 }
  0x21   : > { %s346_s24 = sshll.u32 %s9696_s5, 4  ;;  %s308_s22 = sshll.u32 %s9640_s1, 4  ;;  %s347_s24 = int_to_ptr.hbm [resolvable:$true] %s346_s24  ;;  %s309_s22 = int_to_ptr.hbm [resolvable:$true] %s308_s22 }
  0x22   : > { %6259 = dma.hbm_to_vmem [thread:$0]  (!%p7032_p12), %s321_s13, 16, %s323_s15, [#allocation6]  }
  0x23   : > { %6265 = dma.hbm_to_vmem [thread:$0]  (!%p7032_p12), %s347_s24, 3072, %s349_s12, [#allocation9], %s6895_s14, %s6895_s14, %s6896_s2  }
  0x24   : > { %s372_s5 = sshll.u32 %s9698_s7, 4  ;;  %s6898_s13 = smov 256   ;;  %s373_s5 = int_to_ptr.hbm [resolvable:$true] %s372_s5 }
  0x25   : > { %s398_s30 = sshll.u32 %s9699_s9, 4  ;;  %s6899_s15 = smov 16   ;;  %s399_s30 = int_to_ptr.hbm [resolvable:$true] %s398_s30 }
  0x26   : > { %6271 = dma.hbm_to_vmem [thread:$0]  (!%p7032_p12), %s373_s5, 45056, %s375_s19, [#allocation12], %s6898_s13, %s6898_s13, %s6899_s15  }
  0x27   : > { %s6900_s24 = smov [#allocation14]   ;;  %s335_s28 = sshll.u32 %s9643_s4, 4  ;;  %s336_s28 = int_to_ptr.hbm [resolvable:$true] %s335_s28 }
  0x28   : > { %s400_s12 = sshll.u32 %s6900_s24, 4  ;;  %s6901_s7 = smov [#allocation2]   ;;  %s401_s12 = int_to_ptr.vmem [resolvable:$true] %s400_s12 }
  0x29   : > { %6277 = dma.hbm_to_vmem [thread:$0]  (!%p7032_p12), %s399_s30, 4096, %s401_s12, [#allocation15], %s6895_s14, %s6895_s14, %s6896_s2  }
  0x2a   : > { %s310_s9 = sshll.u32 %s6901_s7, 4  ;;  %s6902_s5 = smov [#allocation7]   ;;  %s311_s9 = int_to_ptr.vmem [resolvable:$true] %s310_s9 }
  0x2b   : > { %6256 = dma.hbm_to_vmem [thread:$0]  (!%p7032_p12), %s309_s22, 128, %s311_s9, [#allocation3]  }
  0x2c   : > { %s337_s17 = sshll.u32 %s6902_s5, 4  ;;  %s361_s15 = sshll.u32 %s9645_s6, 4  ;;  %s338_s17 = int_to_ptr.vmem [resolvable:$true] %s337_s17  ;;  %s362_s15 = int_to_ptr.hbm [resolvable:$true] %s361_s15 }
  0x2d   : > { %6262 = dma.hbm_to_vmem [thread:$0]  (!%p7032_p12), %s336_s28, 16, %s338_s17, [#allocation6]  }
  0x2e   : > { %s387_s7 = sshll.u32 %s9647_s8, 4  ;;  %s6903_s30 = smov [#allocation10]   ;;  %s388_s7 = int_to_ptr.hbm [resolvable:$true] %s387_s7 }
  0x2f   : > { %s363_s24 = sshll.u32 %s6903_s30, 4  ;;  %s6904_s9 = smov [#allocation13]   ;;  %s364_s24 = int_to_ptr.vmem [resolvable:$true] %s363_s24 }
  0x30   : > { %6268 = dma.hbm_to_vmem [thread:$0]  (!%p7032_p12), %s362_s15, 16, %s364_s24, [#allocation9]  }
  0x31   : > { %s389_s12 = sshll.u32 %s6904_s9, 4  ;;  %s413_s26 = sshll.u32 %s9649_s10, 4  ;;  %s390_s12 = int_to_ptr.vmem [resolvable:$true] %s389_s12  ;;  %s414_s26 = int_to_ptr.hbm [resolvable:$true] %s413_s26 }
  0x32   : > { %6274 = dma.hbm_to_vmem [thread:$0]  (!%p7032_p12), %s388_s7, 32, %s390_s12, [#allocation12]  }
  0x33   : > { %s6905_s23 = smov [#allocation16]   ;;  %437 = sbr.rel (%p7018_p10) target bundleno = 2004 (0x7d4), region = 64 }
  0x34   : > { %s415_s28 = sshll.u32 %s6905_s23, 4  ;;  %s416_s28 = int_to_ptr.vmem [resolvable:$true] %s415_s28 }
  0x35   : > { %6280 = dma.hbm_to_vmem [thread:$0]  (!%p7032_p12), %s414_s26, 16, %s416_s28, [#allocation15]  }
  0x38   : > { %6854 = dma.done.wait (%p6285_p9), [#allocation3], 128  }
  0x39   : > { %6856 = vsyncadd (%p6285_p9), [#allocation3], 4294967168 }
  0x3a   : > { %6858 = dma.done.wait (%p6285_p9), [#allocation6], 32  }
  0x3b   : > { %6860 = vsyncadd (%p6285_p9), [#allocation6], 4294967264 }
  0x3c   : > { %6862 = dma.done.wait (%p6285_p9), [#allocation9], 3088  }
  0x3d   : > { %6864 = vsyncadd (%p6285_p9), [#allocation9], 4294964208 }
  0x3e   : > { %6866 = dma.done.wait (%p6285_p9), [#allocation12], 45088  }
  0x3f   : > { %6868 = vsyncadd (%p6285_p9), [#allocation12], 4294922208 }
  0x40   : > { %6870 = dma.done.wait (%p6285_p9), [#allocation15], 4112  }
  0x41   : > { %6872 = vsyncadd (%p6285_p9), [#allocation15], 4294963184  ;;  %s518_s29 = smul.u32 96, %s6990_s21  ;;  %vm818_vm0 = vcmask 64512   ;;  %v813_v0 = vld [vmem:[#allocation2] sm:$0xff]  ;;  %s6906_s13 = smov 32  }
  0x42   : > { %1122 = vmatpush.msra.mxu0 %v813_v0  ;;  %v7136_v19 = vld [vmem:[#allocation5] ss:$0 sm:$0xff]  ;;  %s6907_s15 = smov 64   ;;  %vm2564_vm1 = vcmask 261120   ;;  %vm2774_vm2 = vcmask 785408   ;;  %vm2661_vm3 = vcmask 523264  }
  0x43   : > { %p519_p13 = scmp.lt.s32.totalorder %s518_s29, 191  ;;  %vm7820_vm4 = vmneg %vm2661_vm3  ;;  %s6829_s7 = scalar_lea.hbm %s9650_s11, 16 }
  0x45   : > { %s9783_s29 = smov (!%p519_p13, %s518_s29), 191 }
  0x46   : > { %s5914_s25 = sshll.u32 %s9783_s29, 3 }
  0x47   : > { %s7101_s19 = scalar_lea.vmem %s9639_s0, %s5914_s25 }
  0x48   : > { %v717_v1 = vld [vmem:[%s7101_s19] sm:$0xff]  ;;  %v718_v2 = vld [vmem:[%s7101_s19 + $0x8] sm:$0xff]  ;;  %v719_v3 = vld [vmem:[%s7101_s19 + $0x10] sm:$0xff] }
  0x49   : > { %5915 = vmatmul.msk.f32.vlgmr.msra.gmra.mxu0 %vm818_vm0, %v717_v1  ;;  %v720_v4 = vld [vmem:[%s7101_s19 + $0x18] sm:$0xff]  ;;  %v721_v5 = vld [vmem:[%s7101_s19 + $0x20] sm:$0xff]  ;;  %v722_v6 = vld [vmem:[%s7101_s19 + $0x28] sm:$0xff] }
  0x4a   : > { %v723_v7 = vld [vmem:[%s7101_s19 + $0x30] sm:$0xff]  ;;  %v724_v8 = vld [vmem:[%s7101_s19 + $0x38] sm:$0xff]  ;;  %v725_v9 = vld [vmem:[%s7101_s19 + $0x40] sm:$0xff] }
  0x4b   : > { %v726_v10 = vld [vmem:[%s7101_s19 + $0x48] sm:$0xff]  ;;  %v727_v11 = vld [vmem:[%s7101_s19 + $0x50] sm:$0xff]  ;;  %v728_v12 = vld [vmem:[%s7101_s19 + $0x58] sm:$0xff] }
  0x4c   : > { %v729_v13 = vld [vmem:[%s7101_s19 + $0x60] sm:$0xff]  ;;  %v730_v14 = vld [vmem:[%s7101_s19 + $0x68] sm:$0xff]  ;;  %v731_v15 = vld [vmem:[%s7101_s19 + $0x70] sm:$0xff] }
  0x4d   : > { %v732_v16 = vld [vmem:[%s7101_s19 + $0x78] sm:$0xff]  ;;  %v733_v18 = vld [vmem:[%s7101_s19 + $0x80] sm:$0xff]  ;;  %v734_v22 = vld [vmem:[%s7101_s19 + $0x88] sm:$0xff] }
  0x4e   : > { %v735_v28 = vld [vmem:[%s7101_s19 + $0x90] sm:$0xff]  ;;  %v736_v33 = vld [vmem:[%s7101_s19 + $0x98] sm:$0xff]  ;;  %v737_v38 = vld [vmem:[%s7101_s19 + $0xa0] sm:$0xff] }
  0x4f   : > { %v738_v43 = vld [vmem:[%s7101_s19 + $0xa8] sm:$0xff]  ;;  %v739_v48 = vld [vmem:[%s7101_s19 + $0xb0] sm:$0xff]  ;;  %v740_v53 = vld [vmem:[%s7101_s19 + $0xb8] sm:$0xff] }
  0x50   : > { %v741_v58 = vld [vmem:[%s7101_s19 + $0xc0] sm:$0xff]  ;;  %v742_v63 = vld [vmem:[%s7101_s19 + $0xc8] sm:$0xff] }
  0x51   : > { %5916 = vmatmul.msk.f32.gmra.mxu0 %vm818_vm0, %v718_v2 }
  0x59   : > { %5917 = vmatmul.msk.f32.gmra.mxu0 %vm818_vm0, %v719_v3 }
  0x61   : > { %5918 = vmatmul.msk.f32.gmra.mxu0 %vm818_vm0, %v720_v4  ;;  %v743_v4 = vld [vmem:[%s7101_s19 + $0xd0] sm:$0xff] }
  0x69   : > { %5919 = vmatmul.msk.f32.gmra.mxu0 %vm818_vm0, %v721_v5 }
  0x71   : > { %5920 = vmatmul.msk.f32.gmra.mxu0 %vm818_vm0, %v722_v6 }
  0x79   : > { %5921 = vmatmul.msk.f32.gmra.mxu0 %vm818_vm0, %v723_v7 }
  0x81   : > { %5922 = vmatmul.msk.f32.gmra.mxu0 %vm818_vm0, %v724_v8 }
  0x89   : > { %5923 = vmatmul.msk.f32.gmra.mxu0 %vm818_vm0, %v725_v9  ;;  %v744_v9 = vld [vmem:[%s7101_s19 + $0xd8] sm:$0xff] }
  0x91   : > { %5924 = vmatmul.msk.f32.gmra.mxu0 %vm818_vm0, %v726_v10 }
  0x99   : > { %5925 = vmatmul.msk.f32.gmra.mxu0 %vm818_vm0, %v727_v11 }
  0xa1   : > { %5926 = vmatmul.msk.f32.gmra.mxu0 %vm818_vm0, %v728_v12  ;;  %v2769_v12 = vld [vmem:[%s9642_s3 + $0x58] sm:$0xff] }
  0xa2   : > { %3067 = vmatpush.msra.mxu1 %v2769_v12 }
  0xa9   : > { %5927 = vmatmul.msk.f32.gmra.mxu0 %vm818_vm0, %v729_v13  ;;  %v2768_v13 = vld [vmem:[%s9642_s3 + $0x50] sm:$0xff] }
  0xaa   : > { %3068 = vmatpush.msra.mxu1 %v2768_v13 }
  0xb1   : > { %5928 = vmatmul.msk.f32.gmra.mxu0 %vm818_vm0, %v730_v14 }
  0xb9   : > { %5929 = vmatmul.msk.f32.gmra.mxu0 %vm818_vm0, %v731_v15  ;;  %v2767_v15 = vld [vmem:[%s9642_s3 + $0x48] sm:$0xff] }
  0xba   : > { %3069 = vmatpush.msra.mxu1 %v2767_v15  ;;  %v752_v15 = vld [vmem:[%s7101_s19 + $0x118] sm:$0xff] }
  0xc1   : > { %5930 = vmatmul.msk.f32.gmra.mxu0 %vm818_vm0, %v732_v16 }
  0xc6   : > { %v1124_v17 = vpop.f32.mrf.mxu0 }
  0xc7   : > { %v1125_v20 = vadd.f32 %v7136_v19, %v1124_v17  ;;  %v745_v17 = vld [vmem:[%s7101_s19 + $0xe0] sm:$0xff] }
  0xc9   : > { %5931 = vmatmul.msk.f32.gmra.mxu0 %vm818_vm0, %v733_v18  ;;  %v1412_v24 = vmax.f32 %v1125_v20, 0.0  ;;  %v2766_v20 = vld [vmem:[%s9642_s3 + $0x40] sm:$0xff] }
  0xca   : > { %3070 = vmatpush.msra.mxu1 %v2766_v20 }
  0xce   : > { %v1127_v21 = vpop.f32.mrf.mxu0 }
  0xcf   : > { %v1128_v23 = vadd.f32 %v7136_v19, %v1127_v21 }
  0xd1   : > { %v1413_v25 = vmax.f32 %v1128_v23, 0.0  ;;  %5932 = vmatmul.msk.f32.gmra.mxu0 %vm818_vm0, %v734_v22  ;;  %v2765_v22 = vld [vmem:[%s9642_s3 + $0x38] sm:$0xff]  ;;  %v2764_v23 = vld [vmem:[%s9642_s3 + $0x30] sm:$0xff] }
  0xd2   : > { %3071 = vmatpush.msra.mxu1 %v2765_v22 }
  0xd3   : > { %v7143_v26 = vmax.f32 %v1412_v24, %v1413_v25 }
  0xd4   : > { %3072 = vmatpush.msra.mxu1 %v2764_v23 }
  0xd5   : > { %9700 = vst [vmem:[#allocation29_spill] sm:$0xff] %v7143_v26  ;;  %1988 = vrot.lane.b32.xlu0 %v7143_v26, %s6906_s13 }
  0xd6   : > { %v1130_v27 = vpop.f32.mrf.mxu0 }
  0xd7   : > { %v1131_v29 = vadd.f32 %v7136_v19, %v1130_v27 }
  0xd9   : > { %v1414_v30 = vmax.f32 %v1131_v29, 0.0  ;;  %5933 = vmatmul.msk.f32.gmra.mxu0 %vm818_vm0, %v735_v28  ;;  %v746_v28 = vld [vmem:[%s7101_s19 + $0xe8] sm:$0xff] }
  0xdb   : > { %v7150_v31 = vmax.f32 %v1413_v25, %v1414_v30  ;;  %v2763_v25 = vld [vmem:[%s9642_s3 + $0x28] sm:$0xff] }
  0xdc   : > { %3073 = vmatpush.msra.mxu1 %v2763_v25 }
  0xdd   : > { %9701 = vst [vmem:[#allocation30_spill] sm:$0xff] %v7150_v31  ;;  %1990 = vrot.lane.b32.xlu1 %v7150_v31, %s6906_s13 }
  0xde   : > { %v1133_v32 = vpop.f32.mrf.mxu0 }
  0xdf   : > { %v1134_v34 = vadd.f32 %v7136_v19, %v1133_v32 }
  0xe1   : > { %v1415_v35 = vmax.f32 %v1134_v34, 0.0  ;;  %5934 = vmatmul.msk.f32.gmra.mxu0 %vm818_vm0, %v736_v33  ;;  %v2761_v33 = vld [vmem:[%s9642_s3 + $0x18] sm:$0xff]  ;;  %v2760_v34 = vld [vmem:[%s9642_s3 + $0x10] sm:$0xff] }
  0xe3   : > { %v7157_v36 = vmax.f32 %v1414_v30, %v1415_v35  ;;  %v2762_v30 = vld [vmem:[%s9642_s3 + $0x20] sm:$0xff] }
  0xe4   : > { %3074 = vmatpush.msra.mxu1 %v2762_v30 }
  0xe5   : > { %1992 = vrot.lane.b32.xlu2 %v7157_v36, %s6906_s13  ;;  %2276 = vrot.lane.b32.xlu0 %v7157_v36, %s6907_s15 }
  0xe6   : > { %v1136_v37 = vpop.f32.mrf.mxu0  ;;  %3075 = vmatpush.msra.mxu1 %v2761_v33 }
  0xe7   : > { %v1137_v39 = vadd.f32 %v7136_v19, %v1136_v37  ;;  %v2759_v37 = vld [vmem:[%s9642_s3 + $0x8] sm:$0xff] }
  0xe8   : > { %3076 = vmatpush.msra.mxu1 %v2760_v34 }
  0xe9   : > { %v1416_v40 = vmax.f32 %v1137_v39, 0.0  ;;  %5935 = vmatmul.msk.f32.gmra.mxu0 %vm818_vm0, %v737_v38  ;;  %v747_v39 = vld [vmem:[%s7101_s19 + $0xf0] sm:$0xff] }
  0xea   : > { %3077 = vmatpush.msra.mxu1 %v2759_v37 }
  0xeb   : > { %v7166_v41 = vmax.f32 %v1415_v35, %v1416_v40 }
  0xed   : > { %2278 = vrot.lane.b32.xlu1 %v7166_v41, %s6907_s15  ;;  %1994 = vrot.lane.b32.xlu0 %v7166_v41, %s6906_s13 }
  0xee   : > { %v1139_v42 = vpop.f32.mrf.mxu0 }
  0xef   : > { %v1140_v44 = vadd.f32 %v7136_v19, %v1139_v42  ;;  %v2758_v42 = vld [vmem:[%s9642_s3] sm:$0xff] }
  0xf0   : > { %3078 = vmatpush.msra.mxu1 %v2758_v42 }
  0xf1   : > { %v1417_v45 = vmax.f32 %v1140_v44, 0.0  ;;  %5936 = vmatmul.msk.f32.gmra.mxu0 %vm818_vm0, %v738_v43 }
  0xf3   : > { %v7175_v46 = vmax.f32 %v1416_v40, %v1417_v45 }
  0xf5   : > { %2280 = vrot.lane.b32.xlu2 %v7175_v46, %s6907_s15 }
  0xf6   : > { %v1142_v47 = vpop.f32.mrf.mxu0 }
  0xf7   : > { %v1143_v49 = vadd.f32 %v7136_v19, %v1142_v47  ;;  %v748_v47 = vld [vmem:[%s7101_s19 + $0xf8] sm:$0xff] }
  0xf9   : > { %v1418_v50 = vmax.f32 %v1143_v49, 0.0  ;;  %5937 = vmatmul.msk.f32.gmra.mxu0 %vm818_vm0, %v739_v48 }
  0xfb   : > { %v7182_v51 = vmax.f32 %v1417_v45, %v1418_v50 }
  0xfd   : > { %1996 = vrot.lane.b32.xlu2 %v7175_v46, %s6906_s13  ;;  %2282 = vrot.lane.b32.xlu1 %v7182_v51, %s6907_s15 }
  0xfe   : > { %v1145_v52 = vpop.f32.mrf.mxu0 }
  0xff   : > { %v1146_v54 = vadd.f32 %v7136_v19, %v1145_v52 }
 0x101   : > { %v1419_v55 = vmax.f32 %v1146_v54, 0.0  ;;  %5938 = vmatmul.msk.f32.gmra.mxu0 %vm818_vm0, %v740_v53  ;;  %v749_v53 = vld [vmem:[%s7101_s19 + $0x100] sm:$0xff] }
 0x103   : > { %v7191_v56 = vmax.f32 %v1418_v50, %v1419_v55 }
 0x105   : > { %1998 = vrot.lane.b32.xlu1 %v7182_v51, %s6906_s13  ;;  %2284 = vrot.lane.b32.xlu0 %v7191_v56, %s6907_s15 }
 0x106   : > { %v1148_v57 = vpop.f32.mrf.mxu0 }
 0x107   : > { %v1149_v59 = vadd.f32 %v7136_v19, %v1148_v57 }
 0x109   : > { %v1420_v60 = vmax.f32 %v1149_v59, 0.0  ;;  %5939 = vmatmul.msk.f32.gmra.mxu0 %vm818_vm0, %v741_v58  ;;  %v750_v59 = vld [vmem:[%s7101_s19 + $0x108] sm:$0xff] }
 0x10b   : > { %v7200_v61 = vmax.f32 %v1419_v55, %v1420_v60 }
 0x10d   : > { %2286 = vrot.lane.b32.xlu2 %v7200_v61, %s6907_s15  ;;  %2000 = vrot.lane.b32.xlu0 %v7191_v56, %s6906_s13 }
 0x10e   : > { %v1151_v62 = vpop.f32.mrf.mxu0 }
 0x10f   : > { %v1152_v0 = vadd.f32 %v7136_v19, %v1151_v62 }
 0x111   : > { %v1421_v1 = vmax.f32 %v1152_v0, 0.0  ;;  %5940 = vmatmul.msk.f32.gmra.mxu0 %vm818_vm0, %v742_v63 }
 0x113   : > { %v7209_v2 = vmax.f32 %v1420_v60, %v1421_v1 }
 0x115   : > { %2002 = vrot.lane.b32.xlu2 %v7200_v61, %s6906_s13  ;;  %2288 = vrot.lane.b32.xlu1 %v7209_v2, %s6907_s15 }
 0x116   : > { %v1154_v3 = vpop.f32.mrf.mxu0 }
 0x117   : > { %v1155_v5 = vadd.f32 %v7136_v19, %v1154_v3  ;;  %v751_v3 = vld [vmem:[%s7101_s19 + $0x110] sm:$0xff] }
 0x119   : > { %v1422_v6 = vmax.f32 %v1155_v5, 0.0  ;;  %5941 = vmatmul.msk.f32.gmra.mxu0 %vm818_vm0, %v743_v4 }
 0x11b   : > { %v7218_v7 = vmax.f32 %v1421_v1, %v1422_v6 }
 0x11d   : > { %2004 = vrot.lane.b32.xlu1 %v7209_v2, %s6906_s13  ;;  %2290 = vrot.lane.b32.xlu0 %v7218_v7, %s6907_s15 }
 0x11e   : > { %v1157_v8 = vpop.f32.mrf.mxu0 }
 0x11f   : > { %v1158_v10 = vadd.f32 %v7136_v19, %v1157_v8 }
 0x121   : > { %v1423_v11 = vmax.f32 %v1158_v10, 0.0  ;;  %5942 = vmatmul.msk.f32.gmra.mxu0 %vm818_vm0, %v744_v9 }
 0x123   : > { %v7233_v14 = vmax.f32 %v1422_v6, %v1423_v11 }
 0x125   : > { %2292 = vrot.lane.b32.xlu2 %v7233_v14, %s6907_s15  ;;  %2006 = vrot.lane.b32.xlu0 %v7218_v7, %s6906_s13 }
 0x126   : > { %v1160_v16 = vpop.f32.mrf.mxu0 }
 0x127   : > { %v1161_v18 = vadd.f32 %v7136_v19, %v1160_v16 }
 0x129   : > { %v1424_v21 = vmax.f32 %v1161_v18, 0.0  ;;  %5943 = vmatmul.msk.f32.gmra.mxu0 %vm818_vm0, %v745_v17 }
 0x12b   : > { %v7254_v24 = vmax.f32 %v1423_v11, %v1424_v21 }
 0x12d   : > { %2008 = vrot.lane.b32.xlu2 %v7233_v14, %s6906_s13  ;;  %2294 = vrot.lane.b32.xlu1 %v7254_v24, %s6907_s15 }
 0x12e   : > { %v1163_v27 = vpop.f32.mrf.mxu0 }
 0x12f   : > { %v1164_v29 = vadd.f32 %v7136_v19, %v1163_v27  ;;  %v753_v27 = vld [vmem:[%s7101_s19 + $0x120] sm:$0xff] }
 0x131   : > { %v1425_v32 = vmax.f32 %v1164_v29, 0.0  ;;  %5944 = vmatmul.msk.f32.gmra.mxu0 %vm818_vm0, %v746_v28 }
 0x133   : > { %v7275_v35 = vmax.f32 %v1424_v21, %v1425_v32 }
 0x135   : > { %2010 = vrot.lane.b32.xlu1 %v7254_v24, %s6906_s13  ;;  %2296 = vrot.lane.b32.xlu0 %v7275_v35, %s6907_s15 }
 0x136   : > { %v1166_v38 = vpop.f32.mrf.mxu0 }
 0x137   : > { %v1167_v40 = vadd.f32 %v7136_v19, %v1166_v38  ;;  %v754_v38 = vld [vmem:[%s7101_s19 + $0x128] sm:$0xff] }
 0x139   : > { %v1426_v43 = vmax.f32 %v1167_v40, 0.0  ;;  %5945 = vmatmul.msk.f32.gmra.mxu0 %vm818_vm0, %v747_v39 }
 0x13b   : > { %v7290_v44 = vmax.f32 %v1425_v32, %v1426_v43 }
 0x13d   : > { %2298 = vrot.lane.b32.xlu2 %v7290_v44, %s6907_s15  ;;  %2012 = vrot.lane.b32.xlu0 %v7275_v35, %s6906_s13 }
 0x13e   : > { %v1169_v45 = vpop.f32.mrf.mxu0 }
 0x13f   : > { %v1170_v48 = vadd.f32 %v7136_v19, %v1169_v45  ;;  %v1993_v12 = vpop.permute.xlu2 %1992 }
 0x140   : > { %v2567_v28 = vsel %vm2564_vm1, %v7143_v26, %v1993_v12 }
 0x141   : > { %v1427_v49 = vmax.f32 %v1170_v48, 0.0  ;;  %5946 = vmatmul.msk.f32.gmra.mxu0 %vm818_vm0, %v748_v47 }
 0x143   : > { %v7299_v50 = vmax.f32 %v1426_v43, %v1427_v49 }
 0x145   : > { %2014 = vrot.lane.b32.xlu2 %v7290_v44, %s6906_s13  ;;  %2300 = vrot.lane.b32.xlu1 %v7299_v50, %s6907_s15 }
 0x146   : > { %v1172_v52 = vpop.f32.mrf.mxu0 }
 0x147   : > { %v1173_v54 = vadd.f32 %v7136_v19, %v1172_v52  ;;  %v1989_v60 = vpop.permute.xlu0 %1988  ;;  %v755_v52 = vld [vmem:[%s7101_s19 + $0x130] sm:$0xff] }
 0x148   : > { %v2565_v4 = vsel %vm2564_vm1, 0.0, %v1989_v60 }
 0x149   : > { %v1428_v55 = vmax.f32 %v1173_v54, 0.0  ;;  %5947 = vmatmul.msk.f32.gmra.mxu0 %vm818_vm0, %v749_v53 }
 0x14b   : > { %v7308_v57 = vmax.f32 %v1427_v49, %v1428_v55 }
 0x14d   : > { %2016 = vrot.lane.b32.xlu1 %v7299_v50, %s6906_s13  ;;  %2302 = vrot.lane.b32.xlu0 %v7308_v57, %s6907_s15 }
 0x14e   : > { %v1175_v58 = vpop.f32.mrf.mxu0 }
 0x14f   : > { %v1176_v62 = vadd.f32 %v7136_v19, %v1175_v58  ;;  %v1991_v5 = vpop.permute.xlu1 %1990  ;;  %v2281_v23 = vpop.permute.xlu2 %2280 }
 0x150   : > { %v2566_v16 = vsel %vm2564_vm1, 0.0, %v1991_v5  ;;  %v2664_v30 = vsel %vm2661_vm3, %v2567_v28, %v2281_v23 }
 0x151   : > { %v1429_v63 = vmax.f32 %v1176_v62, 0.0  ;;  %5948 = vmatmul.msk.f32.gmra.mxu0 %vm818_vm0, %v750_v59 }
 0x153   : > { %v7317_v0 = vmax.f32 %v1428_v55, %v1429_v63 }
 0x155   : > { %2304 = vrot.lane.b32.xlu2 %v7317_v0, %s6907_s15  ;;  %2018 = vrot.lane.b32.xlu0 %v7308_v57, %s6906_s13 }
 0x156   : > { %v1178_v1 = vpop.f32.mrf.mxu0 }
 0x157   : > { %v1179_v6 = vadd.f32 %v7136_v19, %v1178_v1  ;;  %v2277_v8 = vpop.permute.xlu0 %2276  ;;  %v1997_v48 = vpop.permute.xlu2 %1996  ;;  %v756_v1 = vld [vmem:[%s7101_s19 + $0x138] sm:$0xff] }
 0x158   : > { %v2662_v9 = vsel %vm2661_vm3, %v2565_v4, %v2277_v8  ;;  %v2569_v53 = vsel %vm2564_vm1, %v7157_v36, %v1997_v48  ;;  %v760_v48 = vld [vmem:[%s7101_s19 + $0x158] sm:$0xff] }
 0x159   : > { %v1430_v10 = vmax.f32 %v1179_v6, 0.0  ;;  %5949 = vmatmul.msk.f32.gmra.mxu0 %vm818_vm0, %v751_v3  ;;  %6011 = vmatmul.msk.f32.vlgmr.msra.gmra.mxu1 %vm2774_vm2, %v2662_v9 }
 0x15b   : > { %v7329_v11 = vmax.f32 %v1429_v63, %v1430_v10 }
 0x15d   : > { %2020 = vrot.lane.b32.xlu2 %v7317_v0, %s6906_s13  ;;  %2306 = vrot.lane.b32.xlu1 %v7329_v11, %s6907_s15 }
 0x15e   : > { %v1181_v13 = vpop.f32.mrf.mxu0 }
 0x15f   : > { %v1182_v17 = vadd.f32 %v7136_v19, %v1181_v13  ;;  %v2279_v18 = vpop.permute.xlu1 %2278  ;;  %v1995_v34 = vpop.permute.xlu0 %1994 }
 0x160   : > { %v2663_v20 = vsel %vm2661_vm3, %v2566_v16, %v2279_v18  ;;  %v2568_v39 = vsel %vm2564_vm1, %v7150_v31, %v1995_v34 }
 0x161   : > { %v1431_v21 = vmax.f32 %v1182_v17, 0.0  ;;  %5950 = vmatmul.msk.f32.gmra.mxu0 %vm818_vm0, %v752_v15  ;;  %6012 = vmatmul.msk.f32.gmra.mxu1 %vm2774_vm2, %v2663_v20 }
 0x163   : > { %v7341_v22 = vmax.f32 %v1430_v10, %v1431_v21  ;;  %v757_v10 = vld [vmem:[%s7101_s19 + $0x140] sm:$0xff] }
 0x165   : > { %2022 = vrot.lane.b32.xlu1 %v7329_v11, %s6906_s13  ;;  %2308 = vrot.lane.b32.xlu0 %v7341_v22, %s6907_s15 }
 0x166   : > { %v1184_v25 = vpop.f32.mrf.mxu0 }
 0x167   : > { %v1185_v29 = vadd.f32 %v7136_v19, %v1184_v25  ;;  %v2287_v3 = vpop.permute.xlu2 %2286 }
 0x169   : > { %v1432_v32 = vmax.f32 %v1185_v29, 0.0  ;;  %5951 = vmatmul.msk.f32.gmra.mxu0 %vm818_vm0, %v753_v27  ;;  %6013 = vmatmul.msk.f32.gmra.mxu1 %vm2774_vm2, %v2664_v30 }
 0x16b   : > { %v7354_v33 = vmax.f32 %v1431_v21, %v1432_v32  ;;  %v758_v21 = vld [vmem:[%s7101_s19 + $0x148] sm:$0xff] }
 0x16d   : > { %2310 = vrot.lane.b32.xlu2 %v7354_v33, %s6907_s15  ;;  %2024 = vrot.lane.b32.xlu0 %v7341_v22, %s6906_s13 }
 0x16e   : > { %v1187_v37 = vpop.f32.mrf.mxu0 }
 0x16f   : > { %v1188_v40 = vadd.f32 %v7136_v19, %v1187_v37  ;;  %v2283_v42 = vpop.permute.xlu1 %2282  ;;  %v2003_v20 = vpop.permute.xlu2 %2002  ;;  %v759_v37 = vld [vmem:[%s7101_s19 + $0x150] sm:$0xff] }
 0x170   : > { %v2665_v43 = vsel %vm2661_vm3, %v2568_v39, %v2283_v42  ;;  %v2572_v23 = vsel %vm2564_vm1, %v7182_v51, %v2003_v20  ;;  %v763_v20 = vld [vmem:[%s7101_s19 + $0x170] sm:$0xff] }
 0x171   : > { %v1433_v45 = vmax.f32 %v1188_v40, 0.0  ;;  %5952 = vmatmul.msk.f32.gmra.mxu0 %vm818_vm0, %v754_v38  ;;  %6014 = vmatmul.msk.f32.gmra.mxu1 %vm2774_vm2, %v2665_v43 }
 0x173   : > { %v7367_v47 = vmax.f32 %v1432_v32, %v1433_v45 }
 0x175   : > { %2026 = vrot.lane.b32.xlu2 %v7354_v33, %s6906_s13  ;;  %2312 = vrot.lane.b32.xlu1 %v7367_v47, %s6907_s15 }
 0x176   : > { %v1190_v49 = vpop.f32.mrf.mxu0 }
 0x177   : > { %v1191_v54 = vadd.f32 %v7136_v19, %v1190_v49  ;;  %v2285_v55 = vpop.permute.xlu0 %2284  ;;  %v1999_v60 = vpop.permute.xlu1 %1998 }
 0x178   : > { %v2666_v58 = vsel %vm2661_vm3, %v2569_v53, %v2285_v55  ;;  %v2570_v63 = vsel %vm2564_vm1, %v7166_v41, %v1999_v60  ;;  %v761_v60 = vld [vmem:[%s7101_s19 + $0x160] sm:$0xff] }
 0x179   : > { %v1434_v59 = vmax.f32 %v1191_v54, 0.0  ;;  %5953 = vmatmul.msk.f32.gmra.mxu0 %vm818_vm0, %v755_v52  ;;  %6015 = vmatmul.msk.f32.gmra.mxu1 %vm2774_vm2, %v2666_v58  ;;  %v2667_v5 = vsel %vm2661_vm3, %v2570_v63, %v2287_v3 }
 0x17b   : > { %v7380_v62 = vmax.f32 %v1433_v45, %v1434_v59 }
 0x17d   : > { %2028 = vrot.lane.b32.xlu1 %v7367_v47, %s6906_s13  ;;  %2314 = vrot.lane.b32.xlu0 %v7380_v62, %s6907_s15 }
 0x17e   : > { %v1193_v36 = vpop.f32.mrf.mxu0 }
 0x17f   : > { %v1194_v4 = vadd.f32 %v7136_v19, %v1193_v36  ;;  %v2001_v8 = vpop.permute.xlu0 %2000  ;;  %v2293_v38 = vpop.permute.xlu2 %2292 }
 0x180   : > { %v2571_v12 = vsel %vm2564_vm1, %v7175_v46, %v2001_v8 }
 0x181   : > { %v1435_v6 = vmax.f32 %v1194_v4, 0.0  ;;  %5954 = vmatmul.msk.f32.gmra.mxu0 %vm818_vm0, %v756_v1  ;;  %6016 = vmatmul.msk.f32.gmra.mxu1 %vm2774_vm2, %v2667_v5 }
 0x183   : > { %v7393_v41 = vmax.f32 %v1434_v59, %v1435_v6 }
 0x185   : > { %2316 = vrot.lane.b32.xlu2 %v7393_v41, %s6907_s15  ;;  %2030 = vrot.lane.b32.xlu0 %v7380_v62, %s6906_s13 }
 0x186   : > { %v1196_v9 = vpop.f32.mrf.mxu0 }
 0x187   : > { %v1197_v13 = vadd.f32 %v7136_v19, %v1196_v9  ;;  %v2289_v15 = vpop.permute.xlu1 %2288  ;;  %v2009_v59 = vpop.permute.xlu2 %2008  ;;  %v762_v9 = vld [vmem:[%s7101_s19 + $0x168] sm:$0xff] }
 0x188   : > { %v2668_v16 = vsel %vm2661_vm3, %v2571_v12, %v2289_v15  ;;  %v2575_v63 = vsel %vm2564_vm1, %v7209_v2, %v2009_v59 }
 0x189   : > { %v1436_v17 = vmax.f32 %v1197_v13, 0.0  ;;  %5955 = vmatmul.msk.f32.gmra.mxu0 %vm818_vm0, %v757_v10  ;;  %6017 = vmatmul.msk.f32.gmra.mxu1 %vm2774_vm2, %v2668_v16 }
 0x18b   : > { %v7406_v18 = vmax.f32 %v1435_v6, %v1436_v17 }
 0x18d   : > { %2032 = vrot.lane.b32.xlu2 %v7393_v41, %s6906_s13  ;;  %2318 = vrot.lane.b32.xlu1 %v7406_v18, %s6907_s15 }
 0x18e   : > { %v1199_v46 = vpop.f32.mrf.mxu0 }
 0x18f   : > { %v1200_v25 = vadd.f32 %v7136_v19, %v1199_v46  ;;  %v2291_v27 = vpop.permute.xlu0 %2290  ;;  %v2005_v30 = vpop.permute.xlu1 %2004 }
 0x190   : > { %v2669_v28 = vsel %vm2661_vm3, %v2572_v23, %v2291_v27  ;;  %v2573_v34 = vsel %vm2564_vm1, %v7191_v56, %v2005_v30  ;;  %v764_v30 = vld [vmem:[%s7101_s19 + $0x178] sm:$0xff] }
 0x191   : > { %v1437_v29 = vmax.f32 %v1200_v25, 0.0  ;;  %5956 = vmatmul.msk.f32.gmra.mxu0 %vm818_vm0, %v758_v21  ;;  %6018 = vmatmul.msk.f32.gmra.mxu1 %vm2774_vm2, %v2669_v28  ;;  %v2670_v40 = vsel %vm2661_vm3, %v2573_v34, %v2293_v38 }
 0x193   : > { %v7419_v32 = vmax.f32 %v1436_v17, %v1437_v29 }
 0x195   : > { %2034 = vrot.lane.b32.xlu1 %v7406_v18, %s6906_s13  ;;  %2320 = vrot.lane.b32.xlu0 %v7419_v32, %s6907_s15 }
 0x196   : > { %v1202_v51 = vpop.f32.mrf.mxu0 }
 0x197   : > { %v1203_v39 = vadd.f32 %v7136_v19, %v1202_v51  ;;  %v2007_v43 = vpop.permute.xlu0 %2006  ;;  %v2299_v10 = vpop.permute.xlu2 %2298 }
 0x198   : > { %v2574_v49 = vsel %vm2564_vm1, %v7200_v61, %v2007_v43 }
 0x199   : > { %v1438_v42 = vmax.f32 %v1203_v39, 0.0  ;;  %5957 = vmatmul.msk.f32.gmra.mxu0 %vm818_vm0, %v759_v37  ;;  %6019 = vmatmul.msk.f32.gmra.mxu1 %vm2774_vm2, %v2670_v40 }
 0x19b   : > { %v7432_v56 = vmax.f32 %v1437_v29, %v1438_v42 }
 0x19d   : > { %2036 = vrot.lane.b32.xlu1 %v7419_v32, %s6906_s13  ;;  %2322 = vrot.lane.b32.xlu2 %v7432_v56, %s6907_s15 }
 0x19e   : > { %v1205_v45 = vpop.f32.mrf.mxu0 }
 0x19f   : > { %v1206_v52 = vadd.f32 %v7136_v19, %v1205_v45  ;;  %v2295_v53 = vpop.permute.xlu1 %2294  ;;  %v2015_v29 = vpop.permute.xlu2 %2014  ;;  %v765_v45 = vld [vmem:[%s7101_s19 + $0x180] sm:$0xff] }
 0x1a0   : > { %v2671_v54 = vsel %vm2661_vm3, %v2574_v49, %v2295_v53  ;;  %v2578_v34 = vsel %vm2564_vm1, %v7254_v24, %v2015_v29 }
 0x1a1   : > { %v1439_v55 = vmax.f32 %v1206_v52, 0.0  ;;  %5958 = vmatmul.msk.f32.gmra.mxu0 %vm818_vm0, %v760_v48  ;;  %6020 = vmatmul.msk.f32.gmra.mxu1 %vm2774_vm2, %v2671_v54  ;;  %v766_v54 = vld [vmem:[%s7101_s19 + $0x188] sm:$0xff] }
 0x1a3   : > { %v7445_v58 = vmax.f32 %v1438_v42, %v1439_v55 }
 0x1a5   : > { %2038 = vrot.lane.b32.xlu1 %v7432_v56, %s6906_s13  ;;  %2324 = vrot.lane.b32.xlu2 %v7445_v58, %s6907_s15 }
 0x1a6   : > { %v1208_v61 = vpop.f32.mrf.mxu0 }
 0x1a7   : > { %v1209_v36 = vadd.f32 %v7136_v19, %v1208_v61  ;;  %v2297_v1 = vpop.permute.xlu0 %2296  ;;  %v2011_v5 = vpop.permute.xlu1 %2010 }
 0x1a8   : > { %v2672_v3 = vsel %vm2661_vm3, %v2575_v63, %v2297_v1  ;;  %v2576_v8 = vsel %vm2564_vm1, %v7218_v7, %v2011_v5 }
 0x1a9   : > { %v1440_v4 = vmax.f32 %v1209_v36, 0.0  ;;  %5959 = vmatmul.msk.f32.gmra.mxu0 %vm818_vm0, %v761_v60  ;;  %6021 = vmatmul.msk.f32.gmra.mxu1 %vm2774_vm2, %v2672_v3  ;;  %v2673_v13 = vsel %vm2661_vm3, %v2576_v8, %v2299_v10  ;;  %v767_v36 = vld [vmem:[%s7101_s19 + $0x190] sm:$0xff]  ;;  %v4159_v8 = vld [vmem:[#allocation8 + $0xb8] sm:$0xff]  ;;  %v768_v10 = vld [vmem:[%s7101_s19 + $0x198] sm:$0xff] }
 0x1aa   : > { %4595 = vmatpush.msra.mxu3 %v4159_v8 }
 0x1ab   : > { %v7458_v6 = vmax.f32 %v1439_v55, %v1440_v4 }
 0x1ad   : > { %2040 = vrot.lane.b32.xlu1 %v7445_v58, %s6906_s13  ;;  %2326 = vrot.lane.b32.xlu2 %v7458_v6, %s6907_s15 }
 0x1ae   : > { %v1211_v2 = vpop.f32.mrf.mxu0 }
 0x1af   : > { %v1212_v12 = vadd.f32 %v7136_v19, %v1211_v2  ;;  %v2013_v16 = vpop.permute.xlu0 %2012  ;;  %v2305_v48 = vpop.permute.xlu2 %2304 }
 0x1b0   : > { %v2577_v46 = vsel %vm2564_vm1, %v7233_v14, %v2013_v16  ;;  %v4157_v16 = vld [vmem:[#allocation8 + $0xa8] sm:$0xff] }
 0x1b1   : > { %v1441_v15 = vmax.f32 %v1212_v12, 0.0  ;;  %5960 = vmatmul.msk.f32.gmra.mxu0 %vm818_vm0, %v762_v9  ;;  %6022 = vmatmul.msk.f32.gmra.mxu1 %vm2774_vm2, %v2673_v13 }
 0x1b3   : > { %v7471_v7 = vmax.f32 %v1440_v4, %v1441_v15 }
 0x1b5   : > { %2042 = vrot.lane.b32.xlu1 %v7458_v6, %s6906_s13  ;;  %2328 = vrot.lane.b32.xlu2 %v7471_v7, %s6907_s15 }
 0x1b6   : > { %v1214_v17 = vpop.f32.mrf.mxu0 }
 0x1b7   : > { %v1215_v21 = vadd.f32 %v7136_v19, %v1214_v17  ;;  %v2301_v23 = vpop.permute.xlu1 %2300  ;;  %v2021_v61 = vpop.permute.xlu2 %2020 }
 0x1b8   : > { %v2674_v25 = vsel %vm2661_vm3, %v2577_v46, %v2301_v23  ;;  %v2581_v1 = vsel %vm2564_vm1, %v7299_v50, %v2021_v61  ;;  %v4158_v50 = vld [vmem:[#allocation8 + $0xb0] sm:$0xff]  ;;  %v4155_v46 = vld [vmem:[#allocation8 + $0x98] sm:$0xff] }
 0x1b9   : > { %v1442_v27 = vmax.f32 %v1215_v21, 0.0  ;;  %5961 = vmatmul.msk.f32.gmra.mxu0 %vm818_vm0, %v763_v20  ;;  %6023 = vmatmul.msk.f32.gmra.mxu1 %vm2774_vm2, %v2674_v25  ;;  %v769_v25 = vld [vmem:[%s7101_s19 + $0x1a0] sm:$0xff] }
 0x1ba   : > { %4596 = vmatpush.msra.mxu3 %v4158_v50 }
 0x1bb   : > { %v7484_v28 = vmax.f32 %v1441_v15, %v1442_v27  ;;  %v7536_v15 = vld [vmem:[#allocation7] ss:$0 sm:$0xff] }
 0x1bc   : > { %4597 = vmatpush.msra.mxu3 %v4157_v16 }
 0x1bd   : > { %2044 = vrot.lane.b32.xlu1 %v7471_v7, %s6906_s13  ;;  %2330 = vrot.lane.b32.xlu2 %v7484_v28, %s6907_s15 }
 0x1be   : > { %v1217_v14 = vpop.f32.mrf.mxu0 }
 0x1bf   : > { %v7494_v51 = vadd.f32 %v7136_v19, %v1217_v14  ;;  %v2303_v37 = vpop.permute.xlu0 %2302  ;;  %v2017_v40 = vpop.permute.xlu1 %2016 }
 0x1c0   : > { %v2675_v38 = vsel %vm2661_vm3, %v2578_v34, %v2303_v37  ;;  %v2579_v24 = vsel %vm2564_vm1, %v7275_v35, %v2017_v40 }
 0x1c1   : > { %v1443_v39 = vmax.f32 %v7494_v51, 0.0  ;;  %5962 = vmatmul.msk.f32.gmra.mxu0 %vm818_vm0, %v764_v30  ;;  %6024 = vmatmul.msk.f32.gmra.mxu1 %vm2774_vm2, %v2675_v38  ;;  %v2676_v49 = vsel %vm2661_vm3, %v2579_v24, %v2305_v48  ;;  %v4154_v30 = vld [vmem:[#allocation8 + $0x90] sm:$0xff]  ;;  %v4153_v24 = vld [vmem:[#allocation8 + $0x88] sm:$0xff] }
 0x1c3   : > { %v7502_v42 = vmax.f32 %v1442_v27, %v1443_v39 }
 0x1c5   : > { %2332 = vrot.lane.b32.xlu2 %v7502_v42, %s6907_s15 }
 0x1c6   : > { %v7508_v43 = vpop.f32.mrf.mxu0 }
 0x1c7   : > { %v2019_v52 = vpop.permute.xlu0 %2018  ;;  %v2311_v12 = vpop.permute.xlu2 %2310 }
 0x1c8   : > { %v2580_v35 = vsel %vm2564_vm1, %v7290_v44, %v2019_v52 }
 0x1c9   : > { %5963 = vmatmul.msk.f32.gmra.mxu0 %vm818_vm0, %v765_v45  ;;  %6025 = vmatmul.msk.f32.gmra.mxu1 %vm2774_vm2, %v2676_v49  ;;  %v4152_v45 = vld [vmem:[#allocation8 + $0x80] sm:$0xff]  ;;  %v1221_v49 = vadd.f32 %v7136_v19, %v7508_v43 }
 0x1cb   : > { %v1444_v43 = vmax.f32 %v1221_v49, 0.0 }
 0x1ce   : > { %v7514_v53 = vpop.f32.mrf.mxu0 }
 0x1cf   : > { %v2307_v55 = vpop.permute.xlu1 %2306  ;;  %v2027_v37 = vpop.permute.xlu2 %2026 }
 0x1d0   : > { %v2677_v59 = vsel %vm2661_vm3, %v2580_v35, %v2307_v55  ;;  %v770_v35 = vld [vmem:[%s7101_s19 + $0x1a8] sm:$0xff]  ;;  %v2584_v55 = vsel %vm2564_vm1, %v7329_v11, %v2027_v37  ;;  %v773_v37 = vld [vmem:[%s7101_s19 + $0x1c0] sm:$0xff] }
 0x1d1   : > { %5964 = vmatmul.msk.f32.gmra.mxu0 %vm818_vm0, %v766_v54  ;;  %6026 = vmatmul.msk.f32.gmra.mxu1 %vm2774_vm2, %v2677_v59 }
 0x1d6   : > { %v7522_v60 = vpop.f32.mrf.mxu0  ;;  %v3080_v63 = vpop.f32.mrf.mxu1 }
 0x1d7   : > { %v2309_v3 = vpop.permute.xlu0 %2308  ;;  %v2023_v44 = vpop.permute.xlu1 %2022  ;;  %v3081_v20 = vadd.f32 %v7536_v15, %v3080_v63 }
 0x1d8   : > { %v2678_v4 = vsel %vm2661_vm3, %v2581_v1, %v2309_v3  ;;  %v2582_v5 = vsel %vm2564_vm1, %v7308_v57, %v2023_v44  ;;  %v4156_v57 = vld [vmem:[#allocation8 + $0xa0] sm:$0xff] }
 0x1d9   : > { %5965 = vmatmul.msk.f32.gmra.mxu0 %vm818_vm0, %v767_v36  ;;  %6027 = vmatmul.msk.f32.gmra.mxu1 %vm2774_vm2, %v2678_v4  ;;  %v2679_v13 = vsel %vm2661_vm3, %v2582_v5, %v2311_v12  ;;  %v3368_v38 = vmax.f32 %v3081_v20, 0.0  ;;  %v7574_v5 = vadd.f32 %v7136_v19, %v7514_v53  ;;  %v7581_v12 = vmax.f32 %v1443_v39, %v1444_v43 }
 0x1da   : > { %4598 = vmatpush.msra.mxu3 %v4156_v57 }
 0x1db   : > { %2334 = vrot.lane.b32.xlu1 %v7581_v12, %s6907_s15  ;;  %v1445_v19 = vmax.f32 %v7574_v5, 0.0 }
 0x1dc   : > { %4599 = vmatpush.msra.mxu3 %v4155_v46 }
 0x1dd   : > { %v7599_v20 = vmax.f32 %v1444_v43, %v1445_v19 }
 0x1de   : > { %v7532_v2 = vpop.f32.mrf.mxu0  ;;  %v3083_v9 = vpop.f32.mrf.mxu1  ;;  %4600 = vmatpush.msra.mxu3 %v4154_v30 }
 0x1df   : > { %v2025_v17 = vpop.permute.xlu0 %2024  ;;  %v2317_v1 = vpop.permute.xlu2 %2316 }
 0x1e0   : > { %v2583_v27 = vsel %vm2564_vm1, %v7317_v0, %v2025_v17  ;;  %4601 = vmatpush.msra.mxu3 %v4153_v24  ;;  %v3084_v0 = vadd.f32 %v7536_v15, %v3083_v9  ;;  %v772_v17 = vld [vmem:[%s7101_s19 + $0x1b8] sm:$0xff] }
 0x1e1   : > { %5966 = vmatmul.msk.f32.gmra.mxu0 %vm818_vm0, %v768_v10  ;;  %6028 = vmatmul.msk.f32.gmra.mxu1 %vm2774_vm2, %v2679_v13  ;;  %v771_v10 = vld [vmem:[%s7101_s19 + $0x1b0] sm:$0xff] }
 0x1e2   : > { %4602 = vmatpush.msra.mxu3 %v4152_v45  ;;  %v3369_v36 = vmax.f32 %v3084_v0, 0.0 }
 0x1e3   : > { %2336 = vrot.lane.b32.xlu1 %v7599_v20, %s6907_s15 }
 0x1e6   : > { %v7541_v21 = vpop.f32.mrf.mxu0  ;;  %v3086_v23 = vpop.f32.mrf.mxu1 }
 0x1e7   : > { %v3087_v29 = vadd.f32 %v7536_v15, %v3086_v23  ;;  %v2313_v14 = vpop.permute.xlu1 %2312  ;;  %v2033_v53 = vpop.permute.xlu2 %2032 }
 0x1e8   : > { %v2680_v34 = vsel %vm2661_vm3, %v2583_v27, %v2313_v14 }
 0x1e9   : > { %v3370_v40 = vmax.f32 %v3087_v29, 0.0  ;;  %5967 = vmatmul.msk.f32.gmra.mxu0 %vm818_vm0, %v769_v25  ;;  %6029 = vmatmul.msk.f32.gmra.mxu1 %vm2774_vm2, %v2680_v34 }
 0x1eb   : > { %v7550_v48 = vmax.f32 %v3368_v38, %v3370_v40  ;;  %v2587_v38 = vsel %vm2564_vm1, %v7367_v47, %v2033_v53 }
 0x1ed   : > { %9702 = vst [vmem:[#allocation31_spill] sm:$0xff] %v7550_v48  ;;  %3752 = vrot.lane.b32.xlu0 %v7550_v48, %s6907_s15 }
 0x1ee   : > { %v7557_v52 = vpop.f32.mrf.mxu0  ;;  %v3089_v54 = vpop.f32.mrf.mxu1 }
 0x1ef   : > { %v3090_v59 = vadd.f32 %v7536_v15, %v3089_v54  ;;  %v2315_v61 = vpop.permute.xlu0 %2314  ;;  %v2029_v4 = vpop.permute.xlu1 %2028 }
 0x1f0   : > { %v2681_v63 = vsel %vm2661_vm3, %v2584_v55, %v2315_v61  ;;  %v2585_v11 = vsel %vm2564_vm1, %v7341_v22, %v2029_v4  ;;  %v774_v61 = vld [vmem:[%s7101_s19 + $0x1c8] sm:$0xff] }
 0x1f1   : > { %v3371_v3 = vmax.f32 %v3090_v59, 0.0  ;;  %5968 = vmatmul.msk.f32.gmra.mxu0 %vm818_vm0, %v770_v35  ;;  %6030 = vmatmul.msk.f32.gmra.mxu1 %vm2774_vm2, %v2681_v63  ;;  %v2682_v22 = vsel %vm2661_vm3, %v2585_v11, %v2317_v1 }
 0x1f3   : > { %v7566_v44 = vmax.f32 %v3369_v36, %v3371_v3 }
 0x1f5   : > { %9703 = vst [vmem:[#allocation32_spill] sm:$0xff] %v7566_v44  ;;  %3754 = vrot.lane.b32.xlu0 %v7566_v44, %s6907_s15 }
 0x1f6   : > { %v7576_v8 = vpop.f32.mrf.mxu0  ;;  %v3092_v9 = vpop.f32.mrf.mxu1 }
 0x1f7   : > { %v3093_v50 = vadd.f32 %v7536_v15, %v3092_v9  ;;  %v2031_v51 = vpop.permute.xlu0 %2030  ;;  %v2323_v30 = vpop.permute.xlu2 %2322 }
 0x1f8   : > { %v2586_v46 = vsel %vm2564_vm1, %v7354_v33, %v2031_v51 }
 0x1f9   : > { %v3372_v13 = vmax.f32 %v3093_v50, 0.0  ;;  %5969 = vmatmul.msk.f32.gmra.mxu0 %vm818_vm0, %v771_v10  ;;  %6031 = vmatmul.msk.f32.gmra.mxu1 %vm2774_vm2, %v2682_v22  ;;  %v775_v10 = vld [vmem:[%s7101_s19 + $0x1d0] sm:$0xff] }
 0x1fb   : > { %v7590_v16 = vmax.f32 %v3370_v40, %v3372_v13 }
 0x1fd   : > { %9704 = vst [vmem:[#allocation33_spill] sm:$0xff] %v7590_v16  ;;  %3756 = vrot.lane.b32.xlu0 %v7590_v16, %s6907_s15 }
 0x1fe   : > { %v7594_v39 = vpop.f32.mrf.mxu0  ;;  %v3095_v57 = vpop.f32.mrf.mxu1 }
 0x1ff   : > { %v3096_v23 = vadd.f32 %v7536_v15, %v3095_v57  ;;  %v2319_v25 = vpop.permute.xlu1 %2318  ;;  %v2325_v47 = vpop.permute.xlu2 %2324 }
 0x200   : > { %v2683_v27 = vsel %vm2661_vm3, %v2586_v46, %v2319_v25 }
 0x201   : > { %v3373_v29 = vmax.f32 %v3096_v23, 0.0  ;;  %5970 = vmatmul.msk.f32.gmra.mxu0 %vm818_vm0, %v772_v17  ;;  %6032 = vmatmul.msk.f32.gmra.mxu1 %vm2774_vm2, %v2683_v27  ;;  %v776_v23 = vld [vmem:[%s7101_s19 + $0x1d8] sm:$0xff] }
 0x203   : > { %v7609_v14 = vmax.f32 %v3371_v3, %v3373_v29 }
 0x205   : > { %9705 = vst [vmem:[#allocation34_spill] sm:$0xff] %v7609_v14  ;;  %3758 = vrot.lane.b32.xlu0 %v7609_v14, %s6907_s15 }
 0x206   : > { %v7613_v33 = vpop.f32.mrf.mxu0  ;;  %v3098_v34 = vpop.f32.mrf.mxu1 }
 0x207   : > { %v3099_v40 = vadd.f32 %v7536_v15, %v3098_v34  ;;  %v2035_v24 = vpop.permute.xlu1 %2034  ;;  %v2321_v45 = vpop.permute.xlu0 %2320 }
 0x208   : > { %v2684_v0 = vsel %vm2661_vm3, %v2587_v38, %v2321_v45  ;;  %v2588_v35 = vsel %vm2564_vm1, %v7380_v62, %v2035_v24  ;;  %v7671_v24 = vld [vmem:[#allocation5] ss:$0 sm:$0xff] }
 0x209   : > { %v3374_v49 = vmax.f32 %v3099_v40, 0.0  ;;  %5971 = vmatmul.msk.f32.gmra.mxu0 %vm818_vm0, %v773_v37  ;;  %6033 = vmatmul.msk.f32.gmra.mxu1 %vm2774_vm2, %v2684_v0  ;;  %v2685_v1 = vsel %vm2661_vm3, %v2588_v35, %v2323_v30  ;;  %v4150_v37 = vld [vmem:[#allocation8 + $0x70] sm:$0xff]  ;;  %v4149_v40 = vld [vmem:[#allocation8 + $0x68] sm:$0xff]  ;;  %v1227_v45 = vadd.f32 %v7671_v24, %v7522_v60 }
 0x20b   : > { %v7622_v54 = vmax.f32 %v3372_v13, %v3374_v49  ;;  %v2327_v13 = vpop.permute.xlu2 %2326 }
 0x20d   : > { %6123 = vmatmul.msk.f32.vlgmr.msra.gmra.mxu3 %vm2661_vm3, %v7622_v54 }
 0x20e   : > { %v7628_v55 = vpop.f32.mrf.mxu0  ;;  %v3101_v59 = vpop.f32.mrf.mxu1 }
 0x20f   : > { %v3102_v63 = vadd.f32 %v7536_v15, %v3101_v59  ;;  %v2037_v36 = vpop.permute.xlu1 %2036  ;;  %v777_v59 = vld [vmem:[%s7101_s19 + $0x1e0] sm:$0xff] }
 0x210   : > { %v2589_v43 = vsel %vm2564_vm1, %v7393_v41, %v2037_v36  ;;  %v1446_v36 = vmax.f32 %v1227_v45, 0.0 }
 0x211   : > { %v3375_v3 = vmax.f32 %v3102_v63, 0.0  ;;  %5972 = vmatmul.msk.f32.gmra.mxu0 %vm818_vm0, %v774_v61  ;;  %6034 = vmatmul.msk.f32.gmra.mxu1 %vm2774_vm2, %v2685_v1  ;;  %v2686_v53 = vsel %vm2661_vm3, %v2589_v43, %v2325_v47  ;;  %v4146_v43 = vld [vmem:[#allocation8 + $0x50] sm:$0xff] }
 0x213   : > { %v7635_v62 = vmax.f32 %v3373_v29, %v3375_v3  ;;  %v2329_v34 = vpop.permute.xlu2 %2328 }
 0x215   : > { %6124 = vmatmul.msk.f32.gmra.mxu3 %vm2661_vm3, %v7635_v62  ;;  %v6352_v4 = vpack.i.bf16 %v7635_v62, %v7622_v54 }
 0x216   : > { %v7643_v11 = vpop.f32.mrf.mxu0  ;;  %v3104_v9 = vpop.f32.mrf.mxu1 }
 0x217   : > { %v3105_v50 = vadd.f32 %v7536_v15, %v3104_v9  ;;  %v2039_v22 = vpop.permute.xlu1 %2038  ;;  %6353 = vrot.lane.b32.xlu0 %v6352_v4, %s6907_s15 }
 0x218   : > { %v2590_v57 = vsel %vm2564_vm1, %v7406_v18, %v2039_v22  ;;  %v4151_v18 = vld [vmem:[#allocation8 + $0x78] sm:$0xff]  ;;  %v7702_v22 = vmax.f32 %v1445_v19, %v1446_v36 }
 0x219   : > { %v3376_v41 = vmax.f32 %v3105_v50, 0.0  ;;  %5973 = vmatmul.msk.f32.gmra.mxu0 %vm818_vm0, %v775_v10  ;;  %6035 = vmatmul.msk.f32.gmra.mxu1 %vm2774_vm2, %v2686_v53  ;;  %v2687_v29 = vsel %vm2661_vm3, %v2590_v57, %v2327_v13  ;;  %v4145_v10 = vld [vmem:[#allocation8 + $0x48] sm:$0xff]  ;;  %v1230_v13 = vadd.f32 %v7671_v24, %v7532_v2  ;;  %v4143_v2 = vld [vmem:[#allocation8 + $0x38] sm:$0xff] }
 0x21a   : > { %4356 = vmatpush.msra.mxu2 %v4151_v18  ;;  %v1233_v18 = vadd.f32 %v7671_v24, %v7541_v21 }
 0x21b   : > { %v7651_v51 = vmax.f32 %v3374_v49, %v3376_v41  ;;  %v2331_v4 = vpop.permute.xlu2 %2330 }
 0x21c   : > { %4357 = vmatpush.msra.mxu2 %v4150_v37 }
 0x21d   : > { %6125 = vmatmul.msk.f32.gmra.mxu3 %vm2661_vm3, %v7651_v51 }
 0x21e   : > { %v7657_v17 = vpop.f32.mrf.mxu0  ;;  %v3107_v46 = vpop.f32.mrf.mxu1  ;;  %4358 = vmatpush.msra.mxu2 %v4149_v40 }
 0x21f   : > { %v7661_v25 = vadd.f32 %v7536_v15, %v3107_v46  ;;  %v2041_v27 = vpop.permute.xlu1 %2040  ;;  %2046 = vrot.lane.b32.xlu0 %v7484_v28, %s6906_s13 }
 0x220   : > { %v2591_v0 = vsel %vm2564_vm1, %v7419_v32, %v2041_v27  ;;  %v4148_v32 = vld [vmem:[#allocation8 + $0x60] sm:$0xff] }
 0x221   : > { %v3377_v30 = vmax.f32 %v7661_v25, 0.0  ;;  %5974 = vmatmul.msk.f32.gmra.mxu0 %vm818_vm0, %v776_v23  ;;  %6036 = vmatmul.msk.f32.gmra.mxu1 %vm2774_vm2, %v2687_v29  ;;  %v2688_v60 = vsel %vm2661_vm3, %v2591_v0, %v2329_v34  ;;  %v4142_v23 = vld [vmem:[#allocation8 + $0x30] sm:$0xff]  ;;  %v1447_v25 = vmax.f32 %v1230_v13, 0.0  ;;  %v4141_v34 = vld [vmem:[#allocation8 + $0x28] sm:$0xff] }
 0x222   : > { %4359 = vmatpush.msra.mxu2 %v4148_v32  ;;  %v780_v13 = vld [vmem:[%s7101_s19 + $0x1f8] sm:$0xff] }
 0x223   : > { %v7669_v38 = vmax.f32 %v3375_v3, %v3377_v30  ;;  %v4147_v3 = vld [vmem:[#allocation8 + $0x58] sm:$0xff]  ;;  %v2333_v40 = vpop.permute.xlu2 %2332 }
 0x224   : > { %4360 = vmatpush.msra.mxu2 %v4147_v3  ;;  %v4137_v3 = vld [vmem:[#allocation8 + $0x8] sm:$0xff] }
 0x225   : > { %6126 = vmatmul.msk.f32.gmra.mxu3 %vm2661_vm3, %v7669_v38  ;;  %v6357_v49 = vpack.i.bf16 %v7669_v38, %v7651_v51 }
 0x226   : > { %v7681_v35 = vpop.f32.mrf.mxu0  ;;  %v3110_v47 = vpop.f32.mrf.mxu1  ;;  %4361 = vmatpush.msra.mxu2 %v4146_v43  ;;  %v1236_v43 = vadd.f32 %v7671_v24, %v7557_v52  ;;  %v4136_v52 = vld [vmem:[#allocation8] sm:$0xff] }
 0x227   : > { %v7685_v61 = vadd.f32 %v7536_v15, %v3110_v47  ;;  %6358 = vrot.lane.b32.xlu2 %v6357_v49, %s6907_s15  ;;  %2048 = vrot.lane.b32.xlu0 %v7502_v42, %s6906_s13  ;;  %v2043_v63 = vpop.permute.xlu1 %2042  ;;  %v779_v47 = vld [vmem:[%s7101_s19 + $0x1f0] sm:$0xff] }
 0x228   : > { %v2592_v50 = vsel %vm2564_vm1, %v7432_v56, %v2043_v63  ;;  %4362 = vmatpush.msra.mxu2 %v4145_v10  ;;  %v4144_v56 = vld [vmem:[#allocation8 + $0x40] sm:$0xff]  ;;  %v4138_v63 = vld [vmem:[#allocation8 + $0x10] sm:$0xff] }
 0x229   : > { %v3378_v1 = vmax.f32 %v7685_v61, 0.0  ;;  %5975 = vmatmul.msk.f32.gmra.mxu0 %vm818_vm0, %v777_v59  ;;  %6037 = vmatmul.msk.f32.gmra.mxu1 %vm2774_vm2, %v2688_v60  ;;  %v2689_v5 = vsel %vm2661_vm3, %v2592_v50, %v2331_v4  ;;  %v1448_v61 = vmax.f32 %v1233_v18, 0.0  ;;  %v4139_v60 = vld [vmem:[#allocation8 + $0x18] sm:$0xff] }
 0x22a   : > { %4363 = vmatpush.msra.mxu2 %v4144_v56  ;;  %v1239_v56 = vadd.f32 %v7671_v24, %v7576_v8 }
 0x22b   : > { %v7694_v9 = vmax.f32 %v3376_v41, %v3378_v1  ;;  %v778_v41 = vld [vmem:[%s7101_s19 + $0x1e8] sm:$0xff]  ;;  %v7747_v4 = vmax.f32 %v1447_v25, %v1448_v61 }
 0x22c   : > { %4364 = vmatpush.msra.mxu2 %v4143_v2  ;;  %v1450_v8 = vmax.f32 %v1239_v56, 0.0 }
 0x22d   : > { %6127 = vmatmul.msk.f32.gmra.mxu3 %vm2661_vm3, %v7694_v9 }
 0x22e   : > { %v7706_v53 = vpop.f32.mrf.mxu0  ;;  %v3113_v57 = vpop.f32.mrf.mxu1  ;;  %4365 = vmatpush.msra.mxu2 %v4142_v23 }
 0x22f   : > { %v3114_v46 = vadd.f32 %v7536_v15, %v3113_v57  ;;  %2050 = vrot.lane.b32.xlu2 %v7581_v12, %s6906_s13  ;;  %2338 = vrot.lane.b32.xlu0 %v7702_v22, %s6907_s15  ;;  %v2045_v27 = vpop.permute.xlu1 %2044 }
 0x230   : > { %v2593_v37 = vsel %vm2564_vm1, %v7445_v58, %v2045_v27  ;;  %4366 = vmatpush.msra.mxu2 %v4141_v34  ;;  %v4140_v58 = vld [vmem:[#allocation8 + $0x20] sm:$0xff]  ;;  %v781_v27 = vld [vmem:[%s7101_s19 + $0x200] sm:$0xff] }
 0x231   : > { %v3379_v19 = vmax.f32 %v3114_v46, 0.0  ;;  %5976 = vmatmul.msk.f32.gmra.mxu0 %vm818_vm0, %v778_v41  ;;  %6038 = vmatmul.msk.f32.gmra.mxu1 %vm2774_vm2, %v2689_v5  ;;  %v2690_v21 = vsel %vm2661_vm3, %v2593_v37, %v2333_v40  ;;  %v1242_v37 = vadd.f32 %v7671_v24, %v7594_v39 }
 0x232   : > { %4367 = vmatpush.msra.mxu2 %v4140_v58 }
 0x233   : > { %v7717_v29 = vmax.f32 %v3377_v30, %v3379_v19  ;;  %v7729_v30 = vmax.f32 %v1446_v36, %v1447_v25  ;;  %v1451_v58 = vmax.f32 %v1242_v37, 0.0  ;;  %v1251_v37 = vadd.f32 %v7671_v24, %v7643_v11 }
 0x234   : > { %4368 = vmatpush.msra.mxu2 %v4139_v60  ;;  %v1245_v60 = vadd.f32 %v7671_v24, %v7613_v33 }
 0x235   : > { %6128 = vmatmul.msk.f32.gmra.mxu3 %vm2661_vm3, %v7717_v29  ;;  %v6362_v45 = vpack.i.bf16 %v7717_v29, %v7694_v9 }
 0x236   : > { %v7727_v0 = vpop.f32.mrf.mxu0  ;;  %v3116_v49 = vpop.f32.mrf.mxu1  ;;  %4369 = vmatpush.msra.mxu2 %v4138_v63 }
 0x237   : > { %v3117_v59 = vadd.f32 %v7536_v15, %v3116_v49  ;;  %6363 = vrot.lane.b32.xlu1 %v6362_v45, %s6907_s15  ;;  %2052 = vrot.lane.b32.xlu2 %v7599_v20, %s6906_s13 }
 0x238   : > { %2340 = vrot.lane.b32.xlu0 %v7729_v30, %s6907_s15  ;;  %4370 = vmatpush.msra.mxu2 %v4137_v3 }
 0x239   : > { %v3380_v32 = vmax.f32 %v3117_v59, 0.0  ;;  %5977 = vmatmul.msk.f32.gmra.mxu0 %vm818_vm0, %v779_v47  ;;  %6039 = vmatmul.msk.f32.gmra.mxu1 %vm2774_vm2, %v2690_v21  ;;  %v782_v47 = vld [vmem:[%s7101_s19 + $0x208] sm:$0xff] }
 0x23a   : > { %4371 = vmatpush.msra.mxu2 %v4136_v52  ;;  %v9706_v52 = vmov 0 }
 0x23b   : > { %v7741_v36 = vmax.f32 %v3378_v1, %v3380_v32  ;;  %v1449_v1 = vmax.f32 %v1236_v43, 0.0  ;;  %v783_v43 = vld [vmem:[%s7101_s19 + $0x210] sm:$0xff]  ;;  %v9707_v52 = vsel %vm7820_vm4, 4294967295, %v9706_v52 }
 0x23c   : > { %9708 = vst [vmem:[#allocation35_spill] sm:$0xff] %v9707_v52 }
 0x23d   : > { %6129 = vmatmul.msk.f32.gmra.mxu3 %vm2661_vm3, %v7741_v36  ;;  %v7764_v5 = vmax.f32 %v1448_v61, %v1449_v1  ;;  %v7784_v40 = vmax.f32 %v1449_v1, %v1450_v8  ;;  %v7799_v61 = vmax.f32 %v1450_v8, %v1451_v58  ;;  %v1248_v1 = vadd.f32 %v7671_v24, %v7628_v55 }
 0x23e   : > { %v7749_v10 = vpop.f32.mrf.mxu0  ;;  %v3119_v50 = vpop.f32.mrf.mxu1 }
 0x23f   : > { %v3120_v57 = vadd.f32 %v7536_v15, %v3119_v50  ;;  %2054 = vrot.lane.b32.xlu1 %v7702_v22, %s6906_s13  ;;  %2342 = vrot.lane.b32.xlu2 %v7747_v4, %s6907_s15  ;;  %v1453_v8 = vmax.f32 %v1248_v1, 0.0 }
 0x241   : > { %v3381_v41 = vmax.f32 %v3120_v57, 0.0  ;;  %5978 = vmatmul.msk.f32.gmra.mxu0 %vm818_vm0, %v780_v13  ;;  %v1452_v57 = vmax.f32 %v1245_v60, 0.0 }
 0x243   : > { %v7758_v46 = vmax.f32 %v3379_v19, %v3381_v41 }
 0x245   : > { %6130 = vmatmul.msk.f32.gmra.mxu3 %vm2661_vm3, %v7758_v46  ;;  %v6367_v2 = vpack.i.bf16 %v7758_v46, %v7741_v36 }
 0x246   : > { %v7768_v23 = vpop.f32.mrf.mxu0  ;;  %v3122_v25 = vpop.f32.mrf.mxu1 }
 0x247   : > { %v3123_v34 = vadd.f32 %v7536_v15, %v3122_v25  ;;  %2056 = vrot.lane.b32.xlu1 %v7729_v30, %s6906_s13  ;;  %2344 = vrot.lane.b32.xlu2 %v7764_v5, %s6907_s15  ;;  %v784_v25 = vld [vmem:[%s7101_s19 + $0x218] sm:$0xff] }
 0x248   : > { %6368 = vrot.lane.b32.xlu0 %v6367_v2, %s6907_s15  ;;  %v7828_v2 = vmax.f32 %v1451_v58, %v1452_v57  ;;  %v7849_v58 = vmax.f32 %v1452_v57, %v1453_v8 }
 0x249   : > { %v3382_v19 = vmax.f32 %v3123_v34, 0.0  ;;  %5979 = vmatmul.msk.f32.gmra.mxu0 %vm818_vm0, %v781_v27 }
 0x24b   : > { %v7778_v18 = vmax.f32 %v3380_v32, %v3382_v19 }
 0x24d   : > { %6131 = vmatmul.msk.f32.gmra.mxu3 %vm2661_vm3, %v7778_v18 }
 0x24e   : > { %v7786_v45 = vpop.f32.mrf.mxu0  ;;  %v3125_v49 = vpop.f32.mrf.mxu1 }
 0x24f   : > { %v3126_v59 = vadd.f32 %v7536_v15, %v3125_v49  ;;  %2346 = vrot.lane.b32.xlu1 %v7784_v40, %s6907_s15 }
 0x250   : > { %2058 = vrot.lane.b32.xlu0 %v7747_v4, %s6906_s13 }
 0x251   : > { %v3383_v39 = vmax.f32 %v3126_v59, 0.0  ;;  %5980 = vmatmul.msk.f32.gmra.mxu0 %vm818_vm0, %v782_v47 }
 0x253   : > { %v7795_v21 = vmax.f32 %v3381_v41, %v3383_v39 }
 0x255   : > { %6132 = vmatmul.msk.f32.gmra.mxu3 %vm2661_vm3, %v7795_v21  ;;  %v6372_v32 = vpack.i.bf16 %v7795_v21, %v7778_v18 }
 0x256   : > { %v7805_v63 = vpop.f32.mrf.mxu0  ;;  %v3128_v3 = vpop.f32.mrf.mxu1 }
 0x257   : > { %v3129_v50 = vadd.f32 %v7536_v15, %v3128_v3  ;;  %2348 = vrot.lane.b32.xlu1 %v7799_v61, %s6907_s15  ;;  %6373 = vrot.lane.b32.xlu2 %v6372_v32, %s6907_s15  ;;  %v785_v32 = vld [vmem:[%s7101_s19 + $0x220] sm:$0xff] }
 0x258   : > { %2060 = vrot.lane.b32.xlu0 %v7764_v5, %s6906_s13 }
 0x259   : > { %v3384_v13 = vmax.f32 %v3129_v50, 0.0  ;;  %5981 = vmatmul.msk.f32.gmra.mxu0 %vm818_vm0, %v783_v43  ;;  %v1254_v50 = vadd.f32 %v7671_v24, %v7657_v17 }
 0x25b   : > { %v7815_v33 = vmax.f32 %v3382_v19, %v3384_v13  ;;  %v1455_v17 = vmax.f32 %v1254_v50, 0.0 }
 0x25d   : > { %6133 = vmatmul.msk.f32.gmra.mxu3 %vm2661_vm3, %v7815_v33 }
 0x25e   : > { %v7826_v41 = vpop.f32.mrf.mxu0  ;;  %v3131_v56 = vpop.f32.mrf.mxu1 }
 0x25f   : > { %v3132_v27 = vadd.f32 %v7536_v15, %v3131_v56  ;;  %2062 = vrot.lane.b32.xlu2 %v7784_v40, %s6906_s13  ;;  %v3753_v34 = vpop.permute.xlu0 %3752 }
 0x260   : > { %2350 = vrot.lane.b32.xlu0 %v7828_v2, %s6907_s15  ;;  %6108 = vmatmul.msk.f32.vlgmr.msra.gmra.mxu2 %vm7820_vm4, %v3753_v34 }
 0x261   : > { %v3385_v55 = vmax.f32 %v3132_v27, 0.0  ;;  %5982 = vmatmul.msk.f32.gmra.mxu0 %vm818_vm0, %v784_v25  ;;  %v786_v25 = vld [vmem:[%s7101_s19 + $0x228] sm:$0xff] }
 0x263   : > { %v7839_v19 = vmax.f32 %v3383_v39, %v3385_v55  ;;  %v1454_v39 = vmax.f32 %v1251_v37, 0.0  ;;  %v1257_v37 = vadd.f32 %v7671_v24, %v7681_v35 }
 0x265   : > { %6134 = vmatmul.msk.f32.gmra.mxu3 %vm2661_vm3, %v7839_v19  ;;  %v6377_v49 = vpack.i.bf16 %v7839_v19, %v7815_v33  ;;  %v7867_v57 = vmax.f32 %v1453_v8, %v1454_v39 }
 0x266   : > { %v7847_v47 = vpop.f32.mrf.mxu0  ;;  %v3134_v59 = vpop.f32.mrf.mxu1 }
 0x267   : > { %v3135_v60 = vadd.f32 %v7536_v15, %v3134_v59  ;;  %6378 = vrot.lane.b32.xlu1 %v6377_v49, %s6907_s15  ;;  %2064 = vrot.lane.b32.xlu2 %v7799_v61, %s6906_s13  ;;  %v3755_v11 = vpop.permute.xlu0 %3754  ;;  %v7886_v49 = vmax.f32 %v1454_v39, %v1455_v17 }
 0x268   : > { %2352 = vrot.lane.b32.xlu0 %v7849_v58, %s6907_s15  ;;  %6110 = vmatmul.msk.f32.gmra.mxu2 %vm7820_vm4, %v3755_v11  ;;  %v787_v11 = vld [vmem:[%s7101_s19 + $0x230] sm:$0xff] }
 0x269   : > { %v3386_v3 = vmax.f32 %v3135_v60, 0.0  ;;  %5983 = vmatmul.msk.f32.gmra.mxu0 %vm818_vm0, %v785_v32 }
 0x26b   : > { %v7861_v43 = vmax.f32 %v3384_v13, %v3386_v3 }
 0x26d   : > { %6135 = vmatmul.msk.f32.gmra.mxu3 %vm2661_vm3, %v7861_v43 }
 0x26e   : > { %v7869_v1 = vpop.f32.mrf.mxu0  ;;  %v3137_v56 = vpop.f32.mrf.mxu1 }
 0x26f   : > { %v3138_v27 = vadd.f32 %v7536_v15, %v3137_v56  ;;  %2066 = vrot.lane.b32.xlu1 %v7828_v2, %s6906_s13  ;;  %2354 = vrot.lane.b32.xlu2 %v7867_v57, %s6907_s15  ;;  %v3757_v13 = vpop.permute.xlu0 %3756 }
 0x270   : > { %6112 = vmatmul.msk.f32.gmra.mxu2 %vm7820_vm4, %v3757_v13 }
 0x271   : > { %v3387_v34 = vmax.f32 %v3138_v27, 0.0  ;;  %5984 = vmatmul.msk.f32.gmra.mxu0 %vm818_vm0, %v786_v25  ;;  %v1260_v25 = vadd.f32 %v7671_v24, %v7706_v53 }
 0x273   : > { %v7880_v8 = vmax.f32 %v3385_v55, %v3387_v34  ;;  %v1456_v55 = vmax.f32 %v1257_v37, 0.0 }
 0x275   : > { %6136 = vmatmul.msk.f32.gmra.mxu3 %vm2661_vm3, %v7880_v8  ;;  %v6382_v59 = vpack.i.bf16 %v7880_v8, %v7861_v43  ;;  %v7908_v27 = vmax.f32 %v1455_v17, %v1456_v55 }
 0x276   : > { %v7890_v32 = vpop.f32.mrf.mxu0  ;;  %v3140_v60 = vpop.f32.mrf.mxu1 }
 0x277   : > { %v3141_v50 = vadd.f32 %v7536_v15, %v3140_v60  ;;  %2068 = vrot.lane.b32.xlu1 %v7849_v58, %s6906_s13  ;;  %2356 = vrot.lane.b32.xlu2 %v7886_v49, %s6907_s15  ;;  %v3759_v35 = vpop.permute.xlu0 %3758  ;;  %v788_v60 = vld [vmem:[%s7101_s19 + $0x238] sm:$0xff] }
 0x278   : > { %6383 = vrot.lane.b32.xlu0 %v6382_v59, %s6907_s15  ;;  %6114 = vmatmul.msk.f32.gmra.mxu2 %vm7820_vm4, %v3759_v35  ;;  %v1263_v35 = vadd.f32 %v7671_v24, %v7727_v0 }
 0x279   : > { %v3388_v39 = vmax.f32 %v3141_v50, 0.0  ;;  %5985 = vmatmul.msk.f32.gmra.mxu0 %vm818_vm0, %v787_v11 }
 0x27a   : > { %v1458_v0 = vmax.f32 %v1263_v35, 0.0 }
 0x27b   : > { %v7902_v56 = vmax.f32 %v3386_v3, %v3388_v39  ;;  %v1457_v3 = vmax.f32 %v1260_v25, 0.0  ;;  %v789_v25 = vld [vmem:[%s7101_s19 + $0x240] sm:$0xff] }
 0x27d   : > { %9709 = vst [vmem:[#allocation36_spill] sm:$0xff] %v7902_v56  ;;  %6137 = vmatmul.msk.f32.gmra.mxu3 %vm2661_vm3, %v7902_v56  ;;  %v7923_v17 = vmax.f32 %v1456_v55, %v1457_v3 }
 0x27e   : > { %v7910_v13 = vpop.f32.mrf.mxu0  ;;  %v3143_v59 = vpop.f32.mrf.mxu1 }
 0x27f   : > { %v3144_v37 = vadd.f32 %v7536_v15, %v3143_v59  ;;  %2358 = vrot.lane.b32.xlu1 %v7908_v27, %s6907_s15 }
 0x280   : > { %2070 = vrot.lane.b32.xlu0 %v7867_v57, %s6906_s13 }
 0x281   : > { %v3389_v53 = vmax.f32 %v3144_v37, 0.0  ;;  %5986 = vmatmul.msk.f32.gmra.mxu0 %vm818_vm0, %v788_v60 }
 0x283   : > { %v7919_v11 = vmax.f32 %v3387_v34, %v3389_v53 }
 0x285   : > { %9710 = vst [vmem:[#allocation37_spill] sm:$0xff] %v7919_v11  ;;  %6138 = vmatmul.msk.f32.gmra.mxu3 %vm2661_vm3, %v7919_v11  ;;  %v6387_v50 = vpack.i.bf16 %v7919_v11, %v7902_v56  ;;  %v1269_v11 = vadd.f32 %v7671_v24, %v7768_v23 }
 0x286   : > { %v7929_v59 = vpop.f32.mrf.mxu0  ;;  %v3146_v52 = vpop.f32.mrf.mxu1 }
 0x287   : > { %9711 = vst [vmem:[#allocation38_spill] sm:$0xff] %v7929_v59  ;;  %v3147_v37 = vadd.f32 %v7536_v15, %v3146_v52  ;;  %2360 = vrot.lane.b32.xlu1 %v7923_v17, %s6907_s15  ;;  %6388 = vrot.lane.b32.xlu2 %v6387_v50, %s6907_s15  ;;  %v1266_v50 = vadd.f32 %v7671_v24, %v7749_v10 }
 0x288   : > { %2072 = vrot.lane.b32.xlu0 %v7886_v49, %s6906_s13  ;;  %v7949_v59 = vmax.f32 %v1457_v3, %v1458_v0 }
 0x289   : > { %v3390_v34 = vmax.f32 %v3147_v37, 0.0  ;;  %5987 = vmatmul.msk.f32.gmra.mxu0 %vm818_vm0, %v789_v25  ;;  %v6354_v55 = vpop.permute.xlu0 %6353  ;;  %v790_v25 = vld [vmem:[%s7101_s19 + $0x248] sm:$0xff] }
 0x28a   : > { %v6355_v60 = vunpack.i.l.bf16 %v6354_v55 }
 0x28b   : > { %v7939_v31 = vmax.f32 %v3388_v39, %v3390_v34  ;;  %v6356_v39 = vunpack.i.h.bf16 %v6354_v55 }
 0x28c   : > { %v4044_v52 = vsel %vm2661_vm3, %v7550_v48, %v6355_v60  ;;  %v2335_v60 = vpop.permute.xlu1 %2334  ;;  %v6359_v48 = vpop.permute.xlu2 %6358 }
 0x28d   : > { %4381 = vmatmul.f32.gmra.mxu2 %v4044_v52  ;;  %6139 = vmatmul.msk.f32.gmra.mxu3 %vm2661_vm3, %v7939_v31 }
 0x28e   : > { %v7947_v26 = vpop.f32.mrf.mxu0  ;;  %v3149_v37 = vpop.f32.mrf.mxu1 }
 0x28f   : > { %9712 = vst [vmem:[#allocation39_spill] sm:$0xff] %v7947_v26  ;;  %v3150_v35 = vadd.f32 %v7536_v15, %v3149_v37  ;;  %2074 = vrot.lane.b32.xlu2 %v7908_v27, %s6906_s13  ;;  %v1459_v26 = vmax.f32 %v1266_v50, 0.0 }
 0x290   : > { %2362 = vrot.lane.b32.xlu0 %v7949_v59, %s6907_s15  ;;  %v7957_v52 = vpop.f32.mrf.mxu3 }
 0x291   : > { %9713 = vst [vmem:[#allocation40_spill] sm:$0xff] %v7957_v52  ;;  %v3391_v10 = vmax.f32 %v3150_v35, 0.0  ;;  %5988 = vmatmul.msk.f32.gmra.mxu0 %vm818_vm0, %v790_v25  ;;  %v2047_v3 = vpop.permute.xlu0 %2046  ;;  %v4045_v35 = vsel %vm2661_vm3, %v7566_v44, %v6356_v39  ;;  %v7976_v23 = vmax.f32 %v1458_v0, %v1459_v26  ;;  %v6360_v39 = vunpack.i.l.bf16 %v6359_v48 }
 0x292   : > { %v2594_v37 = vsel %vm2564_vm1, %v7458_v6, %v2047_v3 }
 0x293   : > { %v2691_v55 = vsel %vm2661_vm3, %v2594_v37, %v2335_v60  ;;  %v7965_v56 = vmax.f32 %v3389_v53, %v3391_v10  ;;  %v791_v60 = vld [vmem:[%s7101_s19 + $0x250] sm:$0xff]  ;;  %v1460_v53 = vmax.f32 %v1269_v11, 0.0 }
 0x294   : > { %6040 = vmatmul.msk.f32.gmra.mxu1 %vm2774_vm2, %v2691_v55 }
 0x295   : > { %4384 = vmatmul.f32.gmra.mxu2 %v4045_v35  ;;  %6140 = vmatmul.msk.f32.gmra.mxu3 %vm2661_vm3, %v7965_v56  ;;  %v6392_v50 = vpack.i.bf16 %v7965_v56, %v7939_v31  ;;  %v2337_v35 = vpop.permute.xlu1 %2336  ;;  %v7991_v52 = vmax.f32 %v1459_v26, %v1460_v53 }
 0x296   : > { %v7974_v6 = vpop.f32.mrf.mxu0  ;;  %v3152_v25 = vpop.f32.mrf.mxu1 }
 0x297   : > { %9714 = vst [vmem:[#allocation41_spill] sm:$0xff] %v7974_v6  ;;  %v3153_v3 = vadd.f32 %v7536_v15, %v3152_v25  ;;  %6393 = vrot.lane.b32.xlu1 %v6392_v50, %s6907_s15  ;;  %2076 = vrot.lane.b32.xlu2 %v7923_v17, %s6906_s13  ;;  %v2051_v25 = vpop.permute.xlu2 %2050  ;;  %v1272_v6 = vadd.f32 %v7671_v24, %v7786_v45  ;;  %v6361_v45 = vunpack.i.h.bf16 %v6359_v48 }
 0x298   : > { %2364 = vrot.lane.b32.xlu0 %v7976_v23, %s6907_s15  ;;  %v4607_v37 = vpop.f32.mrf.mxu3 }
 0x299   : > { %v3392_v55 = vmax.f32 %v3153_v3, 0.0  ;;  %5989 = vmatmul.msk.f32.gmra.mxu0 %vm818_vm0, %v791_v60  ;;  %v2049_v0 = vpop.permute.xlu0 %2048  ;;  %v4046_v60 = vsel %vm2661_vm3, %v7590_v16, %v6360_v39  ;;  %v792_v37 = vld [vmem:[%s7101_s19 + $0x258] sm:$0xff]  ;;  %v1461_v26 = vmax.f32 %v1272_v6, 0.0  ;;  %v2596_v39 = vsel %vm2564_vm1, %v7484_v28, %v2051_v25 }
 0x29a   : > { %v2595_v11 = vsel %vm2564_vm1, %v7471_v7, %v2049_v0  ;;  %v4047_v48 = vsel %vm2661_vm3, %v7609_v14, %v6361_v45 }
 0x29b   : > { %v2692_v50 = vsel %vm2661_vm3, %v2595_v11, %v2337_v35  ;;  %v7989_v44 = vmax.f32 %v3390_v34, %v3392_v55  ;;  %v8019_v6 = vmax.f32 %v1460_v53, %v1461_v26 }
 0x29c   : > { %6041 = vmatmul.msk.f32.gmra.mxu1 %vm2774_vm2, %v2692_v50 }
 0x29d   : > { %4386 = vmatmul.f32.gmra.mxu2 %v4046_v60  ;;  %6141 = vmatmul.msk.f32.gmra.mxu3 %vm2661_vm3, %v7989_v44  ;;  %v1275_v60 = vadd.f32 %v7671_v24, %v7805_v63 }
 0x29e   : > { %v8000_v7 = vpop.f32.mrf.mxu0  ;;  %v3155_v3 = vpop.f32.mrf.mxu1 }
 0x29f   : > { %v3156_v34 = vadd.f32 %v7536_v15, %v3155_v3  ;;  %2078 = vrot.lane.b32.xlu1 %v7949_v59, %s6906_s13  ;;  %2366 = vrot.lane.b32.xlu2 %v7991_v52, %s6907_s15  ;;  %v2053_v28 = vpop.permute.xlu2 %2052 }
 0x2a0   : > { %v4609_v0 = vpop.f32.mrf.mxu3 }
 0x2a1   : > { %v3393_v35 = vmax.f32 %v3156_v34, 0.0  ;;  %5990 = vmatmul.msk.f32.gmra.mxu0 %vm818_vm0, %v792_v37  ;;  %v2339_v11 = vpop.permute.xlu0 %2338  ;;  %v1462_v34 = vmax.f32 %v1275_v60, 0.0 }
 0x2a2   : > { %v2693_v50 = vsel %vm2661_vm3, %v2596_v39, %v2339_v11  ;;  %v2597_v11 = vsel %vm2564_vm1, %v7502_v42, %v2053_v28 }
 0x2a3   : > { %v8014_v3 = vmax.f32 %v3391_v10, %v3393_v35  ;;  %v793_v10 = vld [vmem:[%s7101_s19 + $0x260] sm:$0xff]  ;;  %v8040_v14 = vmax.f32 %v1461_v26, %v1462_v34 }
 0x2a4   : > { %6042 = vmatmul.msk.f32.gmra.mxu1 %vm2774_vm2, %v2693_v50 }
 0x2a5   : > { %4388 = vmatmul.f32.gmra.mxu2 %v4047_v48  ;;  %6142 = vmatmul.msk.f32.gmra.mxu3 %vm2661_vm3, %v8014_v3  ;;  %v6397_v25 = vpack.i.bf16 %v8014_v3, %v7989_v44 }
 0x2a6   : > { %v8025_v37 = vpop.f32.mrf.mxu0  ;;  %v3158_v63 = vpop.f32.mrf.mxu1 }
 0x2a7   : > { %v3159_v0 = vadd.f32 %v7536_v15, %v3158_v63  ;;  %2080 = vrot.lane.b32.xlu1 %v7976_v23, %s6906_s13  ;;  %6398 = vrot.lane.b32.xlu0 %v6397_v25, %s6907_s15  ;;  %v1278_v25 = vadd.f32 %v7671_v24, %v7826_v41  ;;  %v2343_v26 = vpop.permute.xlu2 %2342 }
 0x2a8   : > { %v4611_v53 = vpop.f32.mrf.mxu3  ;;  %2368 = vrot.lane.b32.xlu2 %v8019_v6, %s6907_s15 }
 0x2a9   : > { %v3394_v45 = vmax.f32 %v3159_v0, 0.0  ;;  %5991 = vmatmul.msk.f32.gmra.mxu0 %vm818_vm0, %v793_v10  ;;  %v6364_v39 = vpop.permute.xlu1 %6363  ;;  %v794_v0 = vld [vmem:[%s7101_s19 + $0x268] sm:$0xff]  ;;  %v1463_v41 = vmax.f32 %v1278_v25, 0.0 }
 0x2aa   : > { %v6365_v50 = vunpack.i.l.bf16 %v6364_v39  ;;  %v2341_v60 = vpop.permute.xlu0 %2340 }
 0x2ab   : > { %v2694_v48 = vsel %vm2661_vm3, %v2597_v11, %v2341_v60  ;;  %v8038_v63 = vmax.f32 %v3392_v55, %v3394_v45 }
 0x2ac   : > { %6043 = vmatmul.msk.f32.gmra.mxu1 %vm2774_vm2, %v2694_v48  ;;  %v4048_v10 = vsel %vm2661_vm3, %v7622_v54, %v6365_v50  ;;  %v6366_v54 = vunpack.i.h.bf16 %v6364_v39  ;;  %v1281_v48 = vadd.f32 %v7671_v24, %v7847_v47 }
 0x2ad   : > { %4390 = vmatmul.f32.gmra.mxu2 %v4048_v10  ;;  %6143 = vmatmul.msk.f32.gmra.mxu3 %vm2661_vm3, %v8038_v63 }
 0x2ae   : > { %v8049_v42 = vpop.f32.mrf.mxu0  ;;  %v3161_v28 = vpop.f32.mrf.mxu1  ;;  %v4049_v39 = vsel %vm2661_vm3, %v7635_v62, %v6366_v54 }
 0x2af   : > { %v8053_v55 = vadd.f32 %v7536_v15, %v3161_v28  ;;  %2082 = vrot.lane.b32.xlu0 %v7991_v52, %s6906_s13  ;;  %2370 = vrot.lane.b32.xlu1 %v8040_v14, %s6907_s15  ;;  %v8075_v28 = vmax.f32 %v1462_v34, %v1463_v41 }
 0x2b0   : > { %v8059_v53 = vpop.f32.mrf.mxu3 }
 0x2b1   : > { %v3395_v11 = vmax.f32 %v8053_v55, 0.0  ;;  %5992 = vmatmul.msk.f32.gmra.mxu0 %vm818_vm0, %v794_v0  ;;  %v2055_v50 = vpop.permute.xlu1 %2054 }
 0x2b2   : > { %v2598_v60 = vsel %vm2564_vm1, %v7581_v12, %v2055_v50 }
 0x2b3   : > { %v2695_v10 = vsel %vm2661_vm3, %v2598_v60, %v2343_v26  ;;  %v8070_v25 = vmax.f32 %v3393_v35, %v3395_v11  ;;  %v795_v26 = vld [vmem:[%s7101_s19 + $0x270] sm:$0xff]  ;;  %v1464_v35 = vmax.f32 %v1281_v48, 0.0  ;;  %v8096_v60 = vadd.f32 %v7671_v24, %v7869_v1 }
 0x2b4   : > { %6044 = vmatmul.msk.f32.gmra.mxu1 %vm2774_vm2, %v2695_v10 }
 0x2b5   : > { %4393 = vmatmul.f32.gmra.mxu2 %v4049_v39  ;;  %6144 = vmatmul.msk.f32.gmra.mxu3 %vm2661_vm3, %v8070_v25  ;;  %v6402_v12 = vpack.i.bf16 %v8070_v25, %v8038_v63 }
 0x2b6   : > { %v8081_v47 = vpop.f32.mrf.mxu0  ;;  %v3164_v0 = vpop.f32.mrf.mxu1 }
 0x2b7   : > { %v8085_v50 = vadd.f32 %v7536_v15, %v3164_v0  ;;  %6403 = vrot.lane.b32.xlu2 %v6402_v12, %s6907_s15  ;;  %2084 = vrot.lane.b32.xlu0 %v8019_v6, %s6906_s13  ;;  %v2345_v15 = vpop.permute.xlu2 %2344 }
 0x2b8   : > { %2372 = vrot.lane.b32.xlu1 %v8075_v28, %s6907_s15  ;;  %v4616_v62 = vpop.f32.mrf.mxu3 }
 0x2b9   : > { %v9665_v34 = vmax.f32 %v8085_v50, 0.0  ;;  %5993 = vmatmul.msk.f32.gmra.mxu0 %vm818_vm0, %v795_v26  ;;  %v2057_v54 = vpop.permute.xlu1 %2056  ;;  %v8105_v62 = vmax.f32 %v1463_v41, %v1464_v35  ;;  %v796_v26 = vld [vmem:[%s7101_s19 + $0x278] sm:$0xff] }
 0x2ba   : > { %v2599_v48 = vsel %vm2564_vm1, %v7599_v20, %v2057_v54  ;;  %v6369_v10 = vpop.permute.xlu0 %6368  ;;  %v1465_v54 = vmax.f32 %v8096_v60, 0.0 }
 0x2bb   : > { %v6370_v39 = vunpack.i.l.bf16 %v6369_v10  ;;  %v2696_v12 = vsel %vm2661_vm3, %v2599_v48, %v2345_v15  ;;  %v8103_v0 = vmax.f32 %v3394_v45, %v9665_v34  ;;  %v6371_v41 = vunpack.i.h.bf16 %v6369_v10 }
 0x2bc   : > { %6045 = vmatmul.msk.f32.gmra.mxu1 %vm2774_vm2, %v2696_v12  ;;  %v8125_v12 = vmax.f32 %v1464_v35, %v1465_v54 }
 0x2bd   : > { %v4050_v1 = vsel %vm2661_vm3, %v7651_v51, %v6370_v39  ;;  %6145 = vmatmul.msk.f32.gmra.mxu3 %vm2661_vm3, %v8103_v0 }
 0x2be   : > { %4395 = vmatmul.f32.gmra.mxu2 %v4050_v1  ;;  %v8112_v20 = vpop.f32.mrf.mxu0 }
 0x2bf   : > { %2086 = vrot.lane.b32.xlu2 %v8040_v14, %s6906_s13  ;;  %2374 = vrot.lane.b32.xlu0 %v8105_v62, %s6907_s15  ;;  %v6374_v15 = vpop.permute.xlu2 %6373 }
 0x2c0   : > { %v4618_v45 = vpop.f32.mrf.mxu3  ;;  %v6375_v35 = vunpack.i.l.bf16 %v6374_v15 }
 0x2c1   : > { %5994 = vmatmul.msk.f32.gmra.mxu0 %vm818_vm0, %v796_v26  ;;  %v2347_v51 = vpop.permute.xlu1 %2346  ;;  %v4051_v45 = vsel %vm2661_vm3, %v7669_v38, %v6371_v41  ;;  %v797_v26 = vld [vmem:[%s7101_s19 + $0x280] sm:$0xff] }
 0x2c2   : > { %v2059_v48 = vpop.permute.xlu0 %2058 }
 0x2c3   : > { %v2600_v39 = vsel %vm2564_vm1, %v7702_v22, %v2059_v48 }
 0x2c4   : > { %v2697_v1 = vsel %vm2661_vm3, %v2600_v39, %v2347_v51 }
 0x2c5   : > { %6046 = vmatmul.msk.f32.gmra.mxu1 %vm2774_vm2, %v2697_v1  ;;  %v4052_v1 = vsel %vm2661_vm3, %v7694_v9, %v6375_v35 }
 0x2c6   : > { %4397 = vmatmul.f32.gmra.mxu2 %v4051_v45  ;;  %v8131_v10 = vpop.f32.mrf.mxu0 }
 0x2c7   : > { %2088 = vrot.lane.b32.xlu2 %v8075_v28, %s6906_s13  ;;  %2376 = vrot.lane.b32.xlu0 %v8125_v12, %s6907_s15  ;;  %v2063_v41 = vpop.permute.xlu2 %2062 }
 0x2c8   : > { %v4620_v22 = vpop.f32.mrf.mxu3 }
 0x2c9   : > { %5995 = vmatmul.msk.f32.gmra.mxu0 %vm818_vm0, %v797_v26  ;;  %v2349_v51 = vpop.permute.xlu1 %2348  ;;  %v798_v22 = vld [vmem:[%s7101_s19 + $0x288] sm:$0xff]  ;;  %v6376_v26 = vunpack.i.h.bf16 %v6374_v15 }
 0x2ca   : > { %v2061_v48 = vpop.permute.xlu0 %2060 }
 0x2cb   : > { %v2601_v38 = vsel %vm2564_vm1, %v7729_v30, %v2061_v48  ;;  %v2602_v30 = vsel %vm2564_vm1, %v7747_v4, %v2063_v41  ;;  %v4053_v9 = vsel %vm2661_vm3, %v7717_v29, %v6376_v26 }
 0x2cc   : > { %v2698_v39 = vsel %vm2661_vm3, %v2601_v38, %v2349_v51 }
 0x2cd   : > { %6047 = vmatmul.msk.f32.gmra.mxu1 %vm2774_vm2, %v2698_v39  ;;  %v799_v39 = vld [vmem:[%s7101_s19 + $0x290] sm:$0xff] }
 0x2ce   : > { %4399 = vmatmul.f32.gmra.mxu2 %v4052_v1  ;;  %v8145_v45 = vpop.f32.mrf.mxu0 }
 0x2cf   : > { %v2065_v35 = vpop.permute.xlu2 %2064 }
 0x2d0   : > { %v8148_v34 = vpop.f32.mrf.mxu3  ;;  %v2603_v4 = vsel %vm2564_vm1, %v7764_v5, %v2065_v35 }
 0x2d1   : > { %9715 = vst [vmem:[#allocation42_spill] sm:$0xff] %v8148_v34  ;;  %5996 = vmatmul.msk.f32.gmra.mxu0 %vm818_vm0, %v798_v22  ;;  %v9728_v34 = vld [vmem:[#allocation40_spill] sm:$0xff] }
 0x2d2   : > { %v2351_v48 = vpop.permute.xlu0 %2350 }
 0x2d3   : > { %v2699_v51 = vsel %vm2661_vm3, %v2602_v30, %v2351_v48  ;;  %v800_v48 = vld [vmem:[%s7101_s19 + $0x298] sm:$0xff] }
 0x2d5   : > { %6048 = vmatmul.msk.f32.gmra.mxu1 %vm2774_vm2, %v2699_v51 }
 0x2d6   : > { %4402 = vmatmul.f32.gmra.mxu2 %v4053_v9  ;;  %v8157_v38 = vpop.f32.mrf.mxu0 }
 0x2d7   : > { %v2355_v51 = vpop.permute.xlu2 %2354 }
 0x2d8   : > { %v4625_v15 = vpop.f32.mrf.mxu3 }
 0x2d9   : > { %5997 = vmatmul.msk.f32.gmra.mxu0 %vm818_vm0, %v799_v39  ;;  %v6379_v1 = vpop.permute.xlu1 %6378 }
 0x2da   : > { %v6380_v41 = vunpack.i.l.bf16 %v6379_v1  ;;  %v2353_v22 = vpop.permute.xlu0 %2352  ;;  %v6381_v39 = vunpack.i.h.bf16 %v6379_v1  ;;  %v801_v1 = vld [vmem:[%s7101_s19 + $0x2a0] sm:$0xff] }
 0x2db   : > { %v2700_v30 = vsel %vm2661_vm3, %v2603_v4, %v2353_v22 }
 0x2dc   : > { %v4054_v29 = vsel %vm2661_vm3, %v7741_v36, %v6380_v41  ;;  %v4055_v4 = vsel %vm2661_vm3, %v7758_v46, %v6381_v39 }
 0x2dd   : > { %6049 = vmatmul.msk.f32.gmra.mxu1 %vm2774_vm2, %v2700_v30 }
 0x2de   : > { %4404 = vmatmul.f32.gmra.mxu2 %v4054_v29  ;;  %v8167_v26 = vpop.f32.mrf.mxu0 }
 0x2df   : > { %v2357_v29 = vpop.permute.xlu2 %2356 }
 0x2e0   : > { %v4627_v9 = vpop.f32.mrf.mxu3 }
 0x2e1   : > { %5998 = vmatmul.msk.f32.gmra.mxu0 %vm818_vm0, %v800_v48  ;;  %v2067_v5 = vpop.permute.xlu1 %2066 }
 0x2e2   : > { %v2604_v35 = vsel %vm2564_vm1, %v7784_v40, %v2067_v5 }
 0x2e3   : > { %v8173_v15 = vpop.f32.mrf.mxu2  ;;  %v2701_v36 = vsel %vm2661_vm3, %v2604_v35, %v2355_v51  ;;  %v802_v35 = vld [vmem:[%s7101_s19 + $0x2a8] sm:$0xff] }
 0x2e5   : > { %6050 = vmatmul.msk.f32.gmra.mxu1 %vm2774_vm2, %v2701_v36 }
 0x2e6   : > { %4406 = vmatmul.f32.gmra.mxu2 %v4055_v4  ;;  %v8179_v41 = vpop.f32.mrf.mxu0 }
 0x2e8   : > { %v4629_v22 = vpop.f32.mrf.mxu3 }
 0x2e9   : > { %5999 = vmatmul.msk.f32.gmra.mxu0 %vm818_vm0, %v801_v1  ;;  %v2069_v30 = vpop.permute.xlu1 %2068  ;;  %v1287_v1 = vadd.f32 %v7671_v24, %v7890_v32 }
 0x2ea   : > { %v2605_v40 = vsel %vm2564_vm1, %v7799_v61, %v2069_v30  ;;  %v6384_v48 = vpop.permute.xlu0 %6383  ;;  %v6389_v30 = vpop.permute.xlu2 %6388 }
 0x2eb   : > { %v6385_v51 = vunpack.i.l.bf16 %v6384_v48  ;;  %v4376_v9 = vpop.f32.mrf.mxu2  ;;  %v2702_v5 = vsel %vm2661_vm3, %v2605_v40, %v2357_v29  ;;  %v6386_v4 = vunpack.i.h.bf16 %v6384_v48  ;;  %v1466_v48 = vmax.f32 %v1287_v1, 0.0 }
 0x2ec   : > { %v6390_v32 = vunpack.i.l.bf16 %v6389_v30 }
 0x2ed   : > { %6051 = vmatmul.msk.f32.gmra.mxu1 %vm2774_vm2, %v2702_v5  ;;  %v4056_v46 = vsel %vm2661_vm3, %v7778_v18, %v6385_v51  ;;  %v4057_v51 = vsel %vm2661_vm3, %v7795_v21, %v6386_v4  ;;  %v803_v5 = vld [vmem:[%s7101_s19 + $0x2b0] sm:$0xff] }
 0x2ee   : > { %4408 = vmatmul.f32.gmra.mxu2 %v4056_v46  ;;  %v8189_v39 = vpop.f32.mrf.mxu0 }
 0x2f0   : > { %v8192_v36 = vpop.f32.mrf.mxu3 }
 0x2f1   : > { %9716 = vst [vmem:[#allocation43_spill] sm:$0xff] %v8192_v36  ;;  %6000 = vmatmul.msk.f32.gmra.mxu0 %vm818_vm0, %v802_v35  ;;  %v2359_v61 = vpop.permute.xlu1 %2358 }
 0x2f2   : > { %v2071_v22 = vpop.permute.xlu0 %2070 }
 0x2f3   : > { %v2606_v29 = vsel %vm2564_vm1, %v7828_v2, %v2071_v22  ;;  %v4378_v18 = vpop.f32.mrf.mxu2  ;;  %v8209_v2 = vadd.f32 %v7671_v24, %v7910_v13  ;;  %v8213_v22 = vmax.f32 %v1465_v54, %v1466_v48  ;;  %v4058_v24 = vsel %vm2661_vm3, %v7815_v33, %v6390_v32  ;;  %v804_v54 = vld [vmem:[%s7101_s19 + $0x2b8] sm:$0xff]  ;;  %v805_v32 = vld [vmem:[%s7101_s19 + $0x2c0] sm:$0xff] }
 0x2f4   : > { %v2703_v40 = vsel %vm2661_vm3, %v2606_v29, %v2359_v61  ;;  %v2075_v29 = vpop.permute.xlu2 %2074  ;;  %v6391_v18 = vunpack.i.h.bf16 %v6389_v30 }
 0x2f5   : > { %6052 = vmatmul.msk.f32.gmra.mxu1 %vm2774_vm2, %v2703_v40  ;;  %2378 = vrot.lane.b32.xlu2 %v8213_v22, %s6907_s15  ;;  %v9666_v13 = vmax.f32 %v8209_v2, 0.0  ;;  %v2608_v40 = vsel %vm2564_vm1, %v7867_v57, %v2075_v29 }
 0x2f6   : > { %4411 = vmatmul.f32.gmra.mxu2 %v4057_v51  ;;  %v8203_v9 = vpop.f32.mrf.mxu0  ;;  %v4059_v30 = vsel %vm2661_vm3, %v7839_v19, %v6391_v18  ;;  %v4877_v18 = vld [vmem:[#allocation11 + $0xd0] sm:$0xff] }
 0x2f8   : > { %v4634_v46 = vpop.f32.mrf.mxu3 }
 0x2f9   : > { %6001 = vmatmul.msk.f32.gmra.mxu0 %vm818_vm0, %v803_v5  ;;  %v2361_v35 = vpop.permute.xlu1 %2360  ;;  %v8232_v5 = vmax.f32 %v1466_v48, %v9666_v13 }
 0x2fa   : > { %v2073_v61 = vpop.permute.xlu0 %2072 }
 0x2fb   : > { %v2607_v21 = vsel %vm2564_vm1, %v7849_v58, %v2073_v61  ;;  %v4380_v4 = vpop.f32.mrf.mxu2 }
 0x2fc   : > { %v2704_v1 = vsel %vm2661_vm3, %v2607_v21, %v2361_v35  ;;  %v2077_v57 = vpop.permute.xlu2 %2076 }
 0x2fd   : > { %6053 = vmatmul.msk.f32.gmra.mxu1 %vm2774_vm2, %v2704_v1  ;;  %2380 = vrot.lane.b32.xlu2 %v8232_v5, %s6907_s15  ;;  %v2609_v61 = vsel %vm2564_vm1, %v7886_v49, %v2077_v57  ;;  %v4881_v1 = vld [vmem:[#allocation11 + $0xf0] sm:$0xff] }
 0x2fe   : > { %4413 = vmatmul.f32.gmra.mxu2 %v4058_v24  ;;  %v8224_v60 = vpop.f32.mrf.mxu0  ;;  %5209 = vmatpush.msrb.mxu0 %v4881_v1  ;;  %v4879_v24 = vld [vmem:[#allocation11 + $0xe0] sm:$0xff] }
 0x300   : > { %v4636_v58 = vpop.f32.mrf.mxu3  ;;  %5210 = vmatpush.msrb.mxu0 %v4879_v24 }
 0x301   : > { %6002 = vmatmul.msk.f32.gmra.mxu0 %vm818_vm0, %v804_v54  ;;  %v806_v58 = vld [vmem:[%s7101_s19 + $0x2c8] sm:$0xff] }
 0x302   : > { %v2363_v51 = vpop.permute.xlu0 %2362  ;;  %5211 = vmatpush.msrb.mxu0 %v4877_v18 }
 0x303   : > { %v2705_v33 = vsel %vm2661_vm3, %v2608_v40, %v2363_v51 }
 0x304   : > { %v2367_v40 = vpop.permute.xlu2 %2366 }
 0x305   : > { %6054 = vmatmul.msk.f32.gmra.mxu1 %vm2774_vm2, %v2705_v33  ;;  %v4875_v33 = vld [vmem:[#allocation11 + $0xc0] sm:$0xff] }
 0x306   : > { %4415 = vmatmul.f32.gmra.mxu2 %v4059_v30  ;;  %v8240_v46 = vpop.f32.mrf.mxu0  ;;  %5212 = vmatpush.msrb.mxu0 %v4875_v33 }
 0x308   : > { %v4638_v35 = vpop.f32.mrf.mxu3 }
 0x309   : > { %6003 = vmatmul.msk.f32.gmra.mxu0 %vm818_vm0, %v805_v32  ;;  %v6394_v48 = vpop.permute.xlu1 %6393  ;;  %v4873_v35 = vld [vmem:[#allocation11 + $0xb0] sm:$0xff] }
 0x30a   : > { %v6395_v21 = vunpack.i.l.bf16 %v6394_v48  ;;  %v2365_v4 = vpop.permute.xlu0 %2364  ;;  %v6396_v30 = vunpack.i.h.bf16 %v6394_v48  ;;  %5213 = vmatpush.msrb.mxu0 %v4873_v35 }
 0x30b   : > { %v2706_v29 = vsel %vm2661_vm3, %v2609_v61, %v2365_v4  ;;  %v8260_v61 = vld [vmem:[#allocation7] ss:$0 sm:$0xff] }
 0x30c   : > { %v4060_v19 = vsel %vm2661_vm3, %v7861_v43, %v6395_v21  ;;  %v4061_v1 = vsel %vm2661_vm3, %v7880_v8, %v6396_v30  ;;  %v2369_v33 = vpop.permute.xlu2 %2368 }
 0x30d   : > { %6055 = vmatmul.msk.f32.gmra.mxu1 %vm2774_vm2, %v2706_v29  ;;  %v4871_v29 = vld [vmem:[#allocation11 + $0xa0] sm:$0xff] }
 0x30e   : > { %4417 = vmatmul.f32.gmra.mxu2 %v4060_v19  ;;  %v8250_v54 = vpop.f32.mrf.mxu0  ;;  %v807_v19 = vld [vmem:[%s7101_s19 + $0x2d0] sm:$0xff]  ;;  %5214 = vmatpush.msrb.mxu0 %v4871_v29 }
 0x310   : > { %v8253_v49 = vpop.f32.mrf.mxu2  ;;  %v8255_v51 = vpop.f32.mrf.mxu3 }
 0x311   : > { %9717 = vst [vmem:[#allocation44_spill] sm:$0xff] %v8255_v51  ;;  %6004 = vmatmul.msk.f32.gmra.mxu0 %vm818_vm0, %v806_v58  ;;  %v2079_v43 = vpop.permute.xlu1 %2078  ;;  %v3167_v57 = vpop.f32.mrf.mxu1  ;;  %v4869_v58 = vld [vmem:[#allocation11 + $0x90] sm:$0xff] }
 0x312   : > { %v2610_v32 = vsel %vm2564_vm1, %v7908_v27, %v2079_v43  ;;  %v8263_v21 = vadd.f32 %v8260_v61, %v3167_v57  ;;  %5215 = vmatpush.msrb.mxu0 %v4869_v58  ;;  %v4867_v43 = vld [vmem:[#allocation11 + $0x80] sm:$0xff] }
 0x313   : > { %v2707_v4 = vsel %vm2661_vm3, %v2610_v32, %v2367_v40  ;;  %v4863_v58 = vld [vmem:[#allocation11 + $0x60] sm:$0xff] }
 0x314   : > { %v3397_v48 = vmax.f32 %v8263_v21, 0.0  ;;  %5216 = vmatpush.msrb.mxu0 %v4867_v43 }
 0x315   : > { %6056 = vmatmul.msk.f32.gmra.mxu1 %vm2774_vm2, %v2707_v4  ;;  %v4865_v4 = vld [vmem:[#allocation11 + $0x70] sm:$0xff] }
 0x316   : > { %4420 = vmatmul.f32.gmra.mxu2 %v4061_v1  ;;  %v8270_v27 = vpop.f32.mrf.mxu0  ;;  %v8277_v24 = vmax.f32 %v3395_v11, %v3397_v48  ;;  %5217 = vmatpush.msrb.mxu0 %v4865_v4  ;;  %v4859_v4 = vld [vmem:[#allocation11 + $0x40] sm:$0xff] }
 0x318   : > { %v4385_v18 = vpop.f32.mrf.mxu2  ;;  %v4643_v40 = vpop.f32.mrf.mxu3  ;;  %6146 = vmatmul.msk.f32.gmra.mxu3 %vm2661_vm3, %v8277_v24  ;;  %v6407_v30 = vpack.i.bf16 %v8277_v24, %v8103_v0  ;;  %5218 = vmatpush.msrb.mxu0 %v4863_v58 }
 0x319   : > { %6005 = vmatmul.msk.f32.gmra.mxu0 %vm818_vm0, %v807_v19  ;;  %v2081_v8 = vpop.permute.xlu1 %2080  ;;  %v3170_v11 = vpop.f32.mrf.mxu1  ;;  %v9718_v19 = vld [vmem:[#allocation36_spill] sm:$0xff] }
 0x31a   : > { %v2611_v55 = vsel %vm2564_vm1, %v7923_v17, %v2081_v8  ;;  %v6399_v32 = vpop.permute.xlu0 %6398  ;;  %v8287_v57 = vadd.f32 %v8260_v61, %v3170_v11  ;;  %6408 = vrot.lane.b32.xlu1 %v6407_v30, %s6907_s15  ;;  %v808_v40 = vld [vmem:[%s7101_s19 + $0x2d8] sm:$0xff]  ;;  %v9719_v8 = vmax.f32 %v8085_v50, 0.0 }
 0x31b   : > { %v6400_v35 = vunpack.i.l.bf16 %v6399_v32  ;;  %v2708_v1 = vsel %vm2661_vm3, %v2611_v55, %v2369_v33  ;;  %v4861_v33 = vld [vmem:[#allocation11 + $0x50] sm:$0xff]  ;;  %v6401_v11 = vunpack.i.h.bf16 %v6399_v32 }
 0x31c   : > { %v3398_v29 = vmax.f32 %v8287_v57, 0.0  ;;  %5219 = vmatpush.msrb.mxu0 %v4861_v33  ;;  %v4857_v32 = vld [vmem:[#allocation11 + $0x30] sm:$0xff] }
 0x31d   : > { %6057 = vmatmul.msk.f32.gmra.mxu1 %vm2774_vm2, %v2708_v1  ;;  %v4062_v17 = vsel %vm2661_vm3, %v9718_v19, %v6400_v35  ;;  %v9720_v33 = vld [vmem:[#allocation37_spill] sm:$0xff] }
 0x31e   : > { %4422 = vmatmul.f32.gmra.mxu2 %v4062_v17  ;;  %v8295_v18 = vpop.f32.mrf.mxu0  ;;  %v8302_v30 = vmax.f32 %v9719_v8, %v3398_v29  ;;  %5220 = vmatpush.msrb.mxu0 %v4859_v4  ;;  %v8307_v17 = vpop.permute.xlu2 %6403 }
 0x320   : > { %v4387_v43 = vpop.f32.mrf.mxu2  ;;  %v4645_v55 = vpop.f32.mrf.mxu3  ;;  %6147 = vmatmul.msk.f32.gmra.mxu3 %vm2661_vm3, %v8302_v30  ;;  %5221 = vmatpush.msrb.mxu0 %v4857_v32  ;;  %v9721_v32 = vld [vmem:[#allocation38_spill] sm:$0xff] }
 0x321   : > { %6006 = vmatmul.msk.f32.gmra.mxu0 %vm818_vm0, %v808_v40  ;;  %v2371_v35 = vpop.permute.xlu1 %2370  ;;  %v3173_v1 = vpop.f32.mrf.mxu1  ;;  %v4063_v43 = vsel %vm2661_vm3, %v9720_v33, %v6401_v11  ;;  %v4855_v55 = vld [vmem:[#allocation11 + $0x20] sm:$0xff]  ;;  %v6405_v11 = vunpack.i.l.bf16 %v8307_v17 }
 0x322   : > { %v2083_v19 = vpop.permute.xlu0 %2082  ;;  %v8310_v50 = vadd.f32 %v8260_v61, %v3173_v1  ;;  %2090 = vrot.lane.b32.xlu1 %v8105_v62, %s6906_s13  ;;  %v809_v1 = vld [vmem:[%s7101_s19 + $0x2e0] sm:$0xff]  ;;  %5222 = vmatpush.msrb.mxu0 %v4855_v55 }
 0x323   : > { %v2612_v58 = vsel %vm2564_vm1, %v7949_v59, %v2083_v19  ;;  %v4853_v19 = vld [vmem:[#allocation11 + $0x10] sm:$0xff] }
 0x324   : > { %v2709_v40 = vsel %vm2661_vm3, %v2612_v58, %v2371_v35  ;;  %v3399_v8 = vmax.f32 %v8310_v50, 0.0  ;;  %5223 = vmatpush.msrb.mxu0 %v4853_v19  ;;  %v8328_v50 = vld [vmem:[#allocation5] ss:$0 sm:$0xff] }
 0x325   : > { %6058 = vmatmul.msk.f32.gmra.mxu1 %vm2774_vm2, %v2709_v40  ;;  %v1293_v40 = vadd.f32 %v8328_v50, %v9721_v32 }
 0x326   : > { %4424 = vmatmul.f32.gmra.mxu2 %v4063_v43  ;;  %v8321_v4 = vpop.f32.mrf.mxu0  ;;  %v8326_v59 = vmax.f32 %v3397_v48, %v3399_v8  ;;  %v4851_v48 = vld [vmem:[#allocation11] sm:$0xff]  ;;  %v2087_v32 = vpop.permute.xlu2 %2086 }
 0x327   : > { %5224 = vmatpush.msrb.mxu0 %v4851_v48  ;;  %v4064_v48 = vsel %vm2661_vm3, %v7939_v31, %v6405_v11  ;;  %v9725_v31 = vmax.f32 %v8209_v2, 0.0 }
 0x328   : > { %v4389_v35 = vpop.f32.mrf.mxu2  ;;  %v4647_v58 = vpop.f32.mrf.mxu3  ;;  %6148 = vmatmul.msk.f32.gmra.mxu3 %vm2661_vm3, %v8326_v59  ;;  %v6412_v21 = vpack.i.bf16 %v8326_v59, %v8302_v30 }
 0x329   : > { %6007 = vmatmul.msk.f32.gmra.mxu0 %vm818_vm0, %v809_v1  ;;  %v3176_v33 = vpop.f32.mrf.mxu1  ;;  %v1468_v58 = vmax.f32 %v1293_v40, 0.0  ;;  %v9724_v40 = vld [vmem:[#allocation39_spill] sm:$0xff] }
 0x32a   : > { %v2085_v43 = vpop.permute.xlu0 %2084  ;;  %v8339_v55 = vadd.f32 %v8260_v61, %v3176_v33  ;;  %v2373_v35 = vpop.permute.xlu1 %2372  ;;  %2092 = vrot.lane.b32.xlu1 %v8125_v12, %s6906_s13  ;;  %6413 = vrot.lane.b32.xlu0 %v6412_v21, %s6907_s15 }
 0x32b   : > { %v2613_v19 = vsel %vm2564_vm1, %v7976_v23, %v2085_v43  ;;  %v810_v23 = vld [vmem:[%s7101_s19 + $0x2e8] sm:$0xff]  ;;  %v8368_v57 = vmax.f32 %v9725_v31, %v1468_v58 }
 0x32c   : > { %v2710_v1 = vsel %vm2661_vm3, %v2613_v19, %v2373_v35  ;;  %v3400_v13 = vmax.f32 %v8339_v55, 0.0  ;;  %v1296_v19 = vadd.f32 %v8328_v50, %v9724_v40  ;;  %v6406_v55 = vunpack.i.h.bf16 %v8307_v17  ;;  %v811_v40 = vld [vmem:[%s7101_s19 + $0x2f0] sm:$0xff] }
 0x32d   : > { %6059 = vmatmul.msk.f32.gmra.mxu1 %vm2774_vm2, %v2710_v1 }
 0x32e   : > { %4426 = vmatmul.f32.gmra.mxu2 %v4064_v48  ;;  %v1355_v33 = vpop.f32.mrf.mxu0  ;;  %v8354_v43 = vmax.f32 %v3398_v29, %v3400_v13  ;;  %v2614_v29 = vsel %vm2564_vm1, %v7991_v52, %v2087_v32  ;;  %v1469_v2 = vmax.f32 %v1296_v19, 0.0  ;;  %v4065_v52 = vsel %vm2661_vm3, %v7965_v56, %v6406_v55  ;;  %v2089_v31 = vpop.permute.xlu2 %2088 }
 0x32f   : > { %v8381_v48 = vadd.f32 %v8328_v50, %v1355_v33 }
 0x330   : > { %v8356_v51 = vpop.f32.mrf.mxu2  ;;  %v8358_v21 = vpop.f32.mrf.mxu3  ;;  %6149 = vmatmul.msk.f32.gmra.mxu3 %vm2661_vm3, %v8354_v43  ;;  %v8395_v56 = vmax.f32 %v1468_v58, %v1469_v2 }
 0x331   : > { %9722 = vst [vmem:[#allocation36_spill] sm:$0xff] %v8356_v51  ;;  %6008 = vmatmul.msk.f32.gmra.mxu0 %vm818_vm0, %v810_v23  ;;  %v3179_v11 = vpop.f32.mrf.mxu1  ;;  %v9668_v33 = vmax.f32 %v8381_v48, 0.0 }
 0x332   : > { %9723 = vst [vmem:[#allocation37_spill] sm:$0xff] %v8358_v21  ;;  %v2375_v35 = vpop.permute.xlu0 %2374  ;;  %v8373_v1 = vadd.f32 %v8260_v61, %v3179_v11  ;;  %2382 = vrot.lane.b32.xlu1 %v8368_v57, %s6907_s15  ;;  %2094 = vrot.lane.b32.xlu0 %v8213_v22, %s6906_s13 }
 0x333   : > { %v2711_v17 = vsel %vm2661_vm3, %v2614_v29, %v2375_v35  ;;  %v6529_v35 = vld [vmem:[#allocation10] ss:$0 sm:$0xff] }
 0x334   : > { %v3401_v23 = vmax.f32 %v8373_v1, 0.0 }
 0x335   : > { %6060 = vmatmul.msk.f32.gmra.mxu1 %vm2774_vm2, %v2711_v17  ;;  %v4383_v17 = vadd.f32 %v6529_v35, %v8253_v49 }
 0x336   : > { %4429 = vmatmul.f32.gmra.mxu2 %v4065_v52  ;;  %v1358_v32 = vpop.f32.mrf.mxu0  ;;  %v8388_v29 = vmax.f32 %v3399_v8, %v3401_v23  ;;  %v9726_v8 = vld [vmem:[#allocation41_spill] sm:$0xff] }
 0x337   : > { %v1359_v11 = vadd.f32 %v8328_v50, %v1358_v32  ;;  %v1299_v1 = vadd.f32 %v8328_v50, %v9726_v8  ;;  %v812_v8 = vld [vmem:[%s7101_s19 + $0x2f8] sm:$0xff]  ;;  %s515_s19 = sand.u32 1, %s6883_s18  }
 0x338   : > { %v4394_v19 = vpop.f32.mrf.mxu2  ;;  %v4652_v21 = vpop.f32.mrf.mxu3  ;;  %6150 = vmatmul.msk.f32.gmra.mxu3 %vm2661_vm3, %v8388_v29  ;;  %v6417_v55 = vpack.i.bf16 %v8388_v29, %v8354_v43  ;;  %s5729_s5 = scalar_lea.sflag [#allocation4], %s515_s19 }
 0x339   : > { %v1490_v16 = vmax.f32 %v1359_v11, 0.0  ;;  %6009 = vmatmul.msk.f32.gmra.mxu0 %vm818_vm0, %v811_v40  ;;  %v2615_v21 = vsel %vm2564_vm1, %v8019_v6, %v2089_v31  ;;  %v3182_v52 = vpop.f32.mrf.mxu1  ;;  %v4374_v6 = vadd.f32 %v6529_v35, %v8173_v15  ;;  %v1470_v31 = vmax.f32 %v1299_v1, 0.0 }
 0x33a   : > { %v2377_v32 = vpop.permute.xlu0 %2376  ;;  %v3183_v58 = vadd.f32 %v8260_v61, %v3182_v52  ;;  %2384 = vrot.lane.b32.xlu1 %v8395_v56, %s6907_s15  ;;  %6418 = vrot.lane.b32.xlu2 %v6417_v55, %s6907_s15  ;;  %v4614_v52 = vadd.f32 %v8059_v53, %v4383_v17  ;;  %v1302_v15 = vadd.f32 %v8328_v50, %v8000_v7 }
 0x33b   : > { %v8406_v11 = vmax.f32 %v9668_v33, %v1490_v16  ;;  %v2712_v40 = vsel %vm2661_vm3, %v2615_v21, %v2377_v32  ;;  %2096 = vrot.lane.b32.xlu0 %v8232_v5, %s6906_s13  ;;  %v4605_v55 = vadd.f32 %v9728_v34, %v4374_v6  ;;  %v8428_v1 = vmax.f32 %v1469_v2, %v1470_v31 }
 0x33c   : > { %v3402_v49 = vmax.f32 %v3183_v58, 0.0  ;;  %v4819_v53 = vmax.f32 %v4614_v52, 0.0  ;;  %v1471_v58 = vmax.f32 %v1302_v15, 0.0 }
 0x33d   : > { %9727 = vst [vmem:[#allocation38_spill] sm:$0xff] %v8406_v11  ;;  %6061 = vmatmul.msk.f32.gmra.mxu1 %vm2774_vm2, %v2712_v40  ;;  %v4818_v34 = vmax.f32 %v4605_v55, 0.0 }
 0x33e   : > { %v1361_v19 = vpop.f32.mrf.mxu0  ;;  %v8419_v33 = vmax.f32 %v3400_v13, %v3402_v49 }
 0x33f   : > { %v1362_v21 = vadd.f32 %v8328_v50, %v1361_v19  ;;  %v8437_v6 = vmax.f32 %v4818_v34, %v4819_v53 }
 0x340   : > { %v4654_v32 = vpop.f32.mrf.mxu3  ;;  %6151 = vmatmul.msk.f32.gmra.mxu3 %vm2661_vm3, %v8419_v33 }
 0x341   : > { %v1491_v36 = vmax.f32 %v1362_v21, 0.0  ;;  %v4396_v51 = vpop.f32.mrf.mxu2  ;;  %6010 = vmatmul.msk.f32.gmra.mxu0 %vm818_vm0, %v812_v8  ;;  %9730 = vst [vmem:[#allocation41_spill] sm:$0xff] %v8437_v6  ;;  %v8449_v32 = vmax.f32 %v1470_v31, %v1471_v58 }
 0x342   : > { %v3185_v35 = vpop.f32.mrf.mxu1  ;;  %2098 = vrot.lane.b32.xlu2 %v8368_v57, %s6906_s13 }
 0x343   : > { %v8430_v13 = vmax.f32 %v1490_v16, %v1491_v36  ;;  %v3186_v17 = vadd.f32 %v8260_v61, %v3185_v35  ;;  %2386 = vrot.lane.b32.xlu0 %v8428_v1, %s6907_s15  ;;  %v1305_v16 = vadd.f32 %v8328_v50, %v8025_v37 }
 0x345   : > { %9729 = vst [vmem:[#allocation39_spill] sm:$0xff] %v8430_v13  ;;  %v3403_v51 = vmax.f32 %v3186_v17, 0.0  ;;  %v1472_v37 = vmax.f32 %v1305_v16, 0.0 }
 0x346   : > { %v1364_v40 = vpop.f32.mrf.mxu0 }
 0x347   : > { %v8439_v7 = vmax.f32 %v3401_v23, %v3403_v51  ;;  %v1365_v2 = vadd.f32 %v8328_v50, %v1364_v40  ;;  %v8468_v40 = vmax.f32 %v1471_v58, %v1472_v37  ;;  %v4913_v58 = vld [vmem:[#allocation11 + $0x1f0] sm:$0xff] }
 0x348   : > { %5229 = vmatpush.msrb.mxu3 %v4913_v58 }
 0x349   : > { %v1492_v19 = vmax.f32 %v1365_v2, 0.0  ;;  %v4398_v8 = vpop.f32.mrf.mxu2  ;;  %6152 = vmatmul.msk.f32.gmra.mxu3 %vm2661_vm3, %v8439_v7  ;;  %5225 = vmatmul.f32.vlgmr.msrb.gmra.mxu0 %v8437_v6  ;;  %v6422_v52 = vpack.i.bf16 %v8439_v7, %v8419_v33  ;;  %v4977_v6 = vld [vmem:[#allocation11 + $0x3f0] sm:$0xff] }
 0x34a   : > { %v3188_v21 = vpop.f32.mrf.mxu1  ;;  %2100 = vrot.lane.b32.xlu2 %v8395_v56, %s6906_s13  ;;  %5269 = vmatpush.msrb.mxu2 %v4977_v6 }
 0x34b   : > { %v8451_v23 = vmax.f32 %v1491_v36, %v1492_v19  ;;  %v3189_v55 = vadd.f32 %v8260_v61, %v3188_v21  ;;  %6423 = vrot.lane.b32.xlu1 %v6422_v52, %s6907_s15  ;;  %2388 = vrot.lane.b32.xlu0 %v8449_v32, %s6907_s15  ;;  %v1308_v36 = vadd.f32 %v8328_v50, %v8049_v42 }
 0x34d   : > { %9731 = vst [vmem:[#allocation40_spill] sm:$0xff] %v8451_v23  ;;  %v3404_v15 = vmax.f32 %v3189_v55, 0.0  ;;  %v1473_v42 = vmax.f32 %v1308_v36, 0.0 }
 0x34e   : > { %v1367_v35 = vpop.f32.mrf.mxu0 }
 0x34f   : > { %v8459_v53 = vmax.f32 %v3402_v49, %v3404_v15  ;;  %v1368_v31 = vadd.f32 %v8328_v50, %v1367_v35 }
 0x351   : > { %v1493_v17 = vmax.f32 %v1368_v31, 0.0  ;;  %v8464_v34 = vpop.f32.mrf.mxu2  ;;  %6153 = vmatmul.msk.f32.gmra.mxu3 %vm2661_vm3, %v8459_v53 }
 0x352   : > { %9732 = vst [vmem:[#allocation45_spill] sm:$0xff] %v8464_v34  ;;  %v3191_v2 = vpop.f32.mrf.mxu1  ;;  %2390 = vrot.lane.b32.xlu2 %v8468_v40, %s6907_s15 }
 0x353   : > { %v8470_v8 = vmax.f32 %v1492_v19, %v1493_v17  ;;  %v3192_v16 = vadd.f32 %v8260_v61, %v3191_v2  ;;  %2102 = vrot.lane.b32.xlu1 %v8428_v1, %s6906_s13  ;;  %v1311_v19 = vadd.f32 %v8328_v50, %v8081_v47  ;;  %v8484_v2 = vmax.f32 %v1472_v37, %v1473_v42 }
 0x355   : > { %9733 = vst [vmem:[#allocation46_spill] sm:$0xff] %v8470_v8  ;;  %v3405_v49 = vmax.f32 %v3192_v16, 0.0  ;;  %v1474_v47 = vmax.f32 %v1311_v19, 0.0 }
 0x356   : > { %v1370_v52 = vpop.f32.mrf.mxu0 }
 0x357   : > { %v8477_v21 = vmax.f32 %v3403_v51, %v3405_v49  ;;  %v1371_v55 = vadd.f32 %v8328_v50, %v1370_v52 }
 0x359   : > { %v1494_v35 = vmax.f32 %v1371_v55, 0.0  ;;  %v4403_v31 = vpop.f32.mrf.mxu2  ;;  %6154 = vmatmul.msk.f32.gmra.mxu3 %vm2661_vm3, %v8477_v21  ;;  %v6427_v36 = vpack.i.bf16 %v8477_v21, %v8459_v53 }
 0x35a   : > { %v3194_v16 = vpop.f32.mrf.mxu1  ;;  %2392 = vrot.lane.b32.xlu2 %v8484_v2, %s6907_s15 }
 0x35b   : > { %v8488_v51 = vmax.f32 %v1493_v17, %v1494_v35  ;;  %v3195_v52 = vadd.f32 %v8260_v61, %v3194_v16  ;;  %2104 = vrot.lane.b32.xlu1 %v8449_v32, %s6906_s13  ;;  %6428 = vrot.lane.b32.xlu0 %v6427_v36, %s6907_s15  ;;  %v4945_v17 = vld [vmem:[#allocation11 + $0x2f0] sm:$0xff]  ;;  %v1314_v16 = vadd.f32 %v8328_v50, %v8112_v20 }
 0x35c   : > { %5249 = vmatpush.msrb.mxu1 %v4945_v17  ;;  %v8503_v36 = vmax.f32 %v1473_v42, %v1474_v47 }
 0x35d   : > { %9734 = vst [vmem:[#allocation47_spill] sm:$0xff] %v8488_v51  ;;  %v3406_v55 = vmax.f32 %v3195_v52, 0.0  ;;  %v1475_v6 = vmax.f32 %v1314_v16, 0.0 }
 0x35e   : > { %v1373_v37 = vpop.f32.mrf.mxu0 }
 0x35f   : > { %v8496_v58 = vmax.f32 %v3404_v15, %v3406_v55  ;;  %v1374_v31 = vadd.f32 %v8328_v50, %v1373_v37 }
 0x361   : > { %v1495_v34 = vmax.f32 %v1374_v31, 0.0  ;;  %v4405_v51 = vpop.f32.mrf.mxu2  ;;  %6155 = vmatmul.msk.f32.gmra.mxu3 %vm2661_vm3, %v8496_v58 }
 0x362   : > { %v3197_v19 = vpop.f32.mrf.mxu1 }
 0x363   : > { %v8505_v52 = vmax.f32 %v1494_v35, %v1495_v34  ;;  %v3198_v15 = vadd.f32 %v8260_v61, %v3197_v19  ;;  %2394 = vrot.lane.b32.xlu1 %v8503_v36, %s6907_s15  ;;  %2106 = vrot.lane.b32.xlu0 %v8468_v40, %s6906_s13  ;;  %v8517_v35 = vmax.f32 %v1474_v47, %v1475_v6 }
 0x365   : > { %9735 = vst [vmem:[#allocation48_spill] sm:$0xff] %v8505_v52  ;;  %v3407_v20 = vmax.f32 %v3198_v15, 0.0  ;;  %v1317_v52 = vadd.f32 %v8328_v50, %v8131_v10 }
 0x366   : > { %v1376_v37 = vpop.f32.mrf.mxu0 }
 0x367   : > { %v8512_v51 = vmax.f32 %v3405_v49, %v3407_v20  ;;  %v1377_v31 = vadd.f32 %v8328_v50, %v1376_v37  ;;  %v1476_v37 = vmax.f32 %v1317_v52, 0.0 }
 0x369   : > { %v1496_v42 = vmax.f32 %v1377_v31, 0.0  ;;  %v4407_v17 = vpop.f32.mrf.mxu2  ;;  %6156 = vmatmul.msk.f32.gmra.mxu3 %vm2661_vm3, %v8512_v51  ;;  %v6432_v19 = vpack.i.bf16 %v8512_v51, %v8496_v58 }
 0x36a   : > { %v3200_v16 = vpop.f32.mrf.mxu1 }
 0x36b   : > { %v8523_v15 = vmax.f32 %v1495_v34, %v1496_v42  ;;  %v3201_v49 = vadd.f32 %v8260_v61, %v3200_v16  ;;  %2396 = vrot.lane.b32.xlu1 %v8517_v35, %s6907_s15  ;;  %6433 = vrot.lane.b32.xlu2 %v6432_v19, %s6907_s15  ;;  %v1320_v16 = vadd.f32 %v8328_v50, %v8145_v45 }
 0x36c   : > { %2108 = vrot.lane.b32.xlu0 %v8484_v2, %s6906_s13 }
 0x36d   : > { %9736 = vst [vmem:[#allocation49_spill] sm:$0xff] %v8523_v15  ;;  %v3408_v47 = vmax.f32 %v3201_v49, 0.0  ;;  %v8540_v15 = vmax.f32 %v1475_v6, %v1476_v37  ;;  %v1477_v49 = vmax.f32 %v1320_v16, 0.0  ;;  %v1323_v6 = vadd.f32 %v8328_v50, %v8157_v38 }
 0x36e   : > { %v1379_v31 = vpop.f32.mrf.mxu0 }
 0x36f   : > { %v8531_v17 = vmax.f32 %v3406_v55, %v3408_v47  ;;  %v1380_v10 = vadd.f32 %v8328_v50, %v1379_v31  ;;  %v1478_v38 = vmax.f32 %v1323_v6, 0.0 }
 0x371   : > { %v1497_v8 = vmax.f32 %v1380_v10, 0.0  ;;  %v8534_v34 = vpop.f32.mrf.mxu2  ;;  %6157 = vmatmul.msk.f32.gmra.mxu3 %vm2661_vm3, %v8531_v17  ;;  %v8571_v13 = vmax.f32 %v1477_v49, %v1478_v38 }
 0x372   : > { %9737 = vst [vmem:[#allocation50_spill] sm:$0xff] %v8534_v34  ;;  %v3203_v19 = vpop.f32.mrf.mxu1 }
 0x373   : > { %v8542_v23 = vmax.f32 %v1496_v42, %v1497_v8  ;;  %v3204_v52 = vadd.f32 %v8260_v61, %v3203_v19  ;;  %2110 = vrot.lane.b32.xlu2 %v8503_v36, %s6906_s13 }
 0x374   : > { %2398 = vrot.lane.b32.xlu0 %v8540_v15, %s6907_s15 }
 0x375   : > { %9738 = vst [vmem:[#allocation51_spill] sm:$0xff] %v8542_v23  ;;  %v3409_v55 = vmax.f32 %v3204_v52, 0.0  ;;  %v8558_v23 = vmax.f32 %v1476_v37, %v1477_v49 }
 0x376   : > { %v1382_v31 = vpop.f32.mrf.mxu0 }
 0x377   : > { %v8549_v10 = vmax.f32 %v3407_v20, %v3409_v55  ;;  %v1383_v45 = vadd.f32 %v8328_v50, %v1382_v31 }
 0x379   : > { %9739 = vst [vmem:[#allocation52_spill] sm:$0xff] %v8549_v10  ;;  %v1498_v42 = vmax.f32 %v1383_v45, 0.0  ;;  %v4412_v34 = vpop.f32.mrf.mxu2  ;;  %6158 = vmatmul.msk.f32.gmra.mxu3 %vm2661_vm3, %v8549_v10  ;;  %v6437_v19 = vpack.i.bf16 %v8549_v10, %v8531_v17 }
 0x37a   : > { %v3206_v52 = vpop.f32.mrf.mxu1 }
 0x37b   : > { %v8560_v16 = vmax.f32 %v1497_v8, %v1498_v42  ;;  %v3207_v20 = vadd.f32 %v8260_v61, %v3206_v52  ;;  %2112 = vrot.lane.b32.xlu2 %v8517_v35, %s6906_s13  ;;  %6438 = vrot.lane.b32.xlu1 %v6437_v19, %s6907_s15  ;;  %v1326_v8 = vadd.f32 %v8328_v50, %v8167_v26 }
 0x37c   : > { %2400 = vrot.lane.b32.xlu0 %v8558_v23, %s6907_s15 }
 0x37d   : > { %9740 = vst [vmem:[#allocation53_spill] sm:$0xff] %v8560_v16  ;;  %v3410_v34 = vmax.f32 %v3207_v20, 0.0 }
 0x37e   : > { %v1385_v31 = vpop.f32.mrf.mxu0 }
 0x37f   : > { %v8568_v45 = vmax.f32 %v3408_v47, %v3410_v34  ;;  %v1386_v37 = vadd.f32 %v8328_v50, %v1385_v31  ;;  %v1479_v47 = vmax.f32 %v1326_v8, 0.0  ;;  %v4911_v31 = vld [vmem:[#allocation11 + $0x1e0] sm:$0xff] }
 0x380   : > { %5230 = vmatpush.msrb.mxu3 %v4911_v31 }
 0x381   : > { %v1499_v52 = vmax.f32 %v1386_v37, 0.0  ;;  %v4414_v16 = vpop.f32.mrf.mxu2  ;;  %6159 = vmatmul.msk.f32.gmra.mxu3 %vm2661_vm3, %v8568_v45  ;;  %v8587_v37 = vmax.f32 %v1478_v38, %v1479_v47 }
 0x382   : > { %v3209_v19 = vpop.f32.mrf.mxu1 }
 0x383   : > { %v8577_v11 = vmax.f32 %v1498_v42, %v1499_v52  ;;  %v3210_v6 = vadd.f32 %v8260_v61, %v3209_v19  ;;  %2402 = vrot.lane.b32.xlu2 %v8571_v13, %s6907_s15  ;;  %2114 = vrot.lane.b32.xlu1 %v8540_v15, %s6906_s13  ;;  %v1329_v42 = vadd.f32 %v8328_v50, %v8179_v41 }
 0x385   : > { %9741 = vst [vmem:[#allocation54_spill] sm:$0xff] %v8577_v11  ;;  %v3411_v49 = vmax.f32 %v3210_v6, 0.0  ;;  %v1480_v41 = vmax.f32 %v1329_v42, 0.0  ;;  %v2379_v42 = vpop.permute.xlu2 %2378 }
 0x386   : > { %v1388_v20 = vpop.f32.mrf.mxu0 }
 0x387   : > { %v8584_v26 = vmax.f32 %v3409_v55, %v3411_v49  ;;  %v1389_v16 = vadd.f32 %v8328_v50, %v1388_v20 }
 0x389   : > { %9742 = vst [vmem:[#allocation55_spill] sm:$0xff] %v8584_v26  ;;  %v1500_v19 = vmax.f32 %v1389_v16, 0.0  ;;  %v4416_v11 = vpop.f32.mrf.mxu2  ;;  %6160 = vmatmul.msk.f32.gmra.mxu3 %vm2661_vm3, %v8584_v26  ;;  %v6442_v8 = vpack.i.bf16 %v8584_v26, %v8568_v45  ;;  %v4975_v26 = vld [vmem:[#allocation11 + $0x3e0] sm:$0xff] }
 0x38a   : > { %v3212_v6 = vpop.f32.mrf.mxu1  ;;  %5270 = vmatpush.msrb.mxu2 %v4975_v26 }
 0x38b   : > { %v8595_v55 = vmax.f32 %v1499_v52, %v1500_v19  ;;  %v3213_v20 = vadd.f32 %v8260_v61, %v3212_v6  ;;  %2404 = vrot.lane.b32.xlu2 %v8587_v37, %s6907_s15  ;;  %2116 = vrot.lane.b32.xlu1 %v8558_v23, %s6906_s13  ;;  %v4943_v52 = vld [vmem:[#allocation11 + $0x2e0] sm:$0xff]  ;;  %v8607_v6 = vmax.f32 %v1479_v47, %v1480_v41 }
 0x38c   : > { %6443 = vrot.lane.b32.xlu0 %v6442_v8, %s6907_s15  ;;  %v6409_v38 = vpop.permute.xlu1 %6408  ;;  %5250 = vmatpush.msrb.mxu1 %v4943_v52 }
 0x38d   : > { %9743 = vst [vmem:[#allocation56_spill] sm:$0xff] %v8595_v55  ;;  %v3412_v11 = vmax.f32 %v3213_v20, 0.0  ;;  %v6410_v16 = vunpack.i.l.bf16 %v6409_v38  ;;  %v1332_v55 = vadd.f32 %v8328_v50, %v8189_v39 }
 0x38e   : > { %v1391_v31 = vpop.f32.mrf.mxu0 }
 0x38f   : > { %v8603_v10 = vmax.f32 %v3410_v34, %v3412_v11  ;;  %v4066_v19 = vsel %vm2661_vm3, %v7989_v44, %v6410_v16  ;;  %v6411_v44 = vunpack.i.h.bf16 %v6409_v38  ;;  %v1481_v47 = vmax.f32 %v1332_v55, 0.0 }
 0x390   : > { %4431 = vmatmul.f32.gmra.mxu2 %v4066_v19 }
 0x391   : > { %v8611_v8 = vpop.f32.mrf.mxu2  ;;  %6161 = vmatmul.msk.f32.gmra.mxu3 %vm2661_vm3, %v8603_v10  ;;  %v8628_v38 = vmax.f32 %v1480_v41, %v1481_v47  ;;  %v2381_v41 = vpop.permute.xlu2 %2380 }
 0x392   : > { %9744 = vst [vmem:[#allocation57_spill] sm:$0xff] %v8611_v8  ;;  %v3215_v34 = vpop.f32.mrf.mxu1 }
 0x393   : > { %v3216_v20 = vadd.f32 %v8260_v61, %v3215_v34  ;;  %2406 = vrot.lane.b32.xlu1 %v8607_v6, %s6907_s15  ;;  %v4067_v34 = vsel %vm2661_vm3, %v8014_v3, %v6411_v44 }
 0x394   : > { %2118 = vrot.lane.b32.xlu0 %v8571_v13, %s6906_s13  ;;  %v2091_v39 = vpop.permute.xlu1 %2090 }
 0x395   : > { %v3413_v26 = vmax.f32 %v3216_v20, 0.0  ;;  %v2616_v16 = vsel %vm2564_vm1, %v8040_v14, %v2091_v39 }
 0x396   : > { %v1394_v31 = vpop.f32.mrf.mxu0  ;;  %v2713_v19 = vsel %vm2661_vm3, %v2616_v16, %v2379_v42 }
 0x397   : > { %v8622_v52 = vmax.f32 %v3411_v49, %v3413_v26  ;;  %6062 = vmatmul.msk.f32.gmra.mxu1 %vm2774_vm2, %v2713_v19  ;;  %v1335_v49 = vadd.f32 %v8328_v50, %v8203_v9 }
 0x398   : > { %4433 = vmatmul.f32.gmra.mxu2 %v4067_v34 }
 0x399   : > { %v4421_v8 = vpop.f32.mrf.mxu2  ;;  %6162 = vmatmul.msk.f32.gmra.mxu3 %vm2661_vm3, %v8622_v52  ;;  %v6447_v14 = vpack.i.bf16 %v8622_v52, %v8603_v10  ;;  %v1482_v44 = vmax.f32 %v1335_v49, 0.0 }
 0x39a   : > { %v3218_v55 = vpop.f32.mrf.mxu1 }
 0x39b   : > { %v3219_v42 = vadd.f32 %v8260_v61, %v3218_v55  ;;  %2408 = vrot.lane.b32.xlu1 %v8628_v38, %s6907_s15  ;;  %6448 = vrot.lane.b32.xlu2 %v6447_v14, %s6907_s15  ;;  %v4656_v3 = vpop.f32.mrf.mxu3  ;;  %v8652_v49 = vmax.f32 %v1481_v47, %v1482_v44 }
 0x39c   : > { %2120 = vrot.lane.b32.xlu0 %v8587_v37, %s6906_s13  ;;  %v2093_v20 = vpop.permute.xlu1 %2092  ;;  %v6414_v9 = vpop.permute.xlu0 %6413 }
 0x39d   : > { %v3414_v8 = vmax.f32 %v3219_v42, 0.0  ;;  %v2617_v39 = vsel %vm2564_vm1, %v8075_v28, %v2093_v20  ;;  %v6415_v19 = vunpack.i.l.bf16 %v6414_v9  ;;  %v1338_v28 = vadd.f32 %v8328_v50, %v8224_v60 }
 0x39e   : > { %v1397_v16 = vpop.f32.mrf.mxu0  ;;  %v2714_v34 = vsel %vm2661_vm3, %v2617_v39, %v2381_v41  ;;  %v6416_v41 = vunpack.i.h.bf16 %v6414_v9  ;;  %v1341_v60 = vadd.f32 %v8328_v50, %v8240_v46 }
 0x39f   : > { %v8644_v31 = vmax.f32 %v3412_v11, %v3414_v8  ;;  %6063 = vmatmul.msk.f32.gmra.mxu1 %vm2774_vm2, %v2714_v34  ;;  %v4068_v55 = vsel %vm2661_vm3, %v8038_v63, %v6415_v19  ;;  %v6419_v63 = vpop.permute.xlu2 %6418  ;;  %v1483_v39 = vmax.f32 %v1338_v28, 0.0 }
 0x3a0   : > { %4435 = vmatmul.f32.gmra.mxu2 %v4068_v55  ;;  %v4069_v9 = vsel %vm2661_vm3, %v8070_v25, %v6416_v41  ;;  %v6420_v41 = vunpack.i.l.bf16 %v6419_v63 }
 0x3a1   : > { %v4423_v14 = vpop.f32.mrf.mxu2  ;;  %6163 = vmatmul.msk.f32.gmra.mxu3 %vm2661_vm3, %v8644_v31  ;;  %v8677_v46 = vmax.f32 %v1482_v44, %v1483_v39 }
 0x3a2   : > { %v3221_v11 = vpop.f32.mrf.mxu1 }
 0x3a3   : > { %v3222_v42 = vadd.f32 %v8260_v61, %v3221_v11  ;;  %2122 = vrot.lane.b32.xlu2 %v8607_v6, %s6906_s13  ;;  %v8661_v3 = vpop.f32.mrf.mxu3 }
 0x3a4   : > { %2410 = vrot.lane.b32.xlu0 %v8652_v49, %s6907_s15  ;;  %v2383_v47 = vpop.permute.xlu1 %2382  ;;  %v2095_v16 = vpop.permute.xlu0 %2094 }
 0x3a5   : > { %v3415_v20 = vmax.f32 %v3222_v42, 0.0  ;;  %v2618_v14 = vsel %vm2564_vm1, %v8105_v62, %v2095_v16  ;;  %v1484_v42 = vmax.f32 %v1341_v60, 0.0 }
 0x3a6   : > { %v1400_v19 = vpop.f32.mrf.mxu0  ;;  %v2715_v55 = vsel %vm2661_vm3, %v2618_v14, %v2383_v47 }
 0x3a7   : > { %v8665_v34 = vmax.f32 %v3413_v26, %v3415_v20  ;;  %6064 = vmatmul.msk.f32.gmra.mxu1 %vm2774_vm2, %v2715_v55  ;;  %v8688_v14 = vmax.f32 %v1483_v39, %v1484_v42 }
 0x3a8   : > { %4438 = vmatmul.f32.gmra.mxu2 %v4069_v9 }
 0x3a9   : > { %v4425_v11 = vpop.f32.mrf.mxu2  ;;  %6164 = vmatmul.msk.f32.gmra.mxu3 %vm2661_vm3, %v8665_v34  ;;  %v6452_v28 = vpack.i.bf16 %v8665_v34, %v8644_v31 }
 0x3aa   : > { %v3224_v26 = vpop.f32.mrf.mxu1  ;;  %v2099_v11 = vpop.permute.xlu2 %2098 }
 0x3ab   : > { %v8680_v62 = vadd.f32 %v8260_v61, %v3224_v26  ;;  %2124 = vrot.lane.b32.xlu2 %v8628_v38, %s6906_s13  ;;  %6453 = vrot.lane.b32.xlu1 %v6452_v28, %s6907_s15  ;;  %v4661_v25 = vpop.f32.mrf.mxu3  ;;  %v4070_v26 = vsel %vm2661_vm3, %v8103_v0, %v6420_v41  ;;  %v2620_v41 = vsel %vm2564_vm1, %v8213_v22, %v2099_v11 }
 0x3ac   : > { %2412 = vrot.lane.b32.xlu0 %v8677_v46, %s6907_s15  ;;  %v2385_v44 = vpop.permute.xlu1 %2384  ;;  %v6421_v25 = vunpack.i.h.bf16 %v6419_v63 }
 0x3ad   : > { %v3416_v47 = vmax.f32 %v8680_v62, 0.0  ;;  %v2097_v16 = vpop.permute.xlu0 %2096 }
 0x3ae   : > { %v1403_v19 = vpop.f32.mrf.mxu0  ;;  %v2619_v55 = vsel %vm2564_vm1, %v8125_v12, %v2097_v16  ;;  %v1344_v12 = vadd.f32 %v8328_v50, %v8250_v54  ;;  %v4071_v22 = vsel %vm2661_vm3, %v8277_v24, %v6421_v25 }
 0x3af   : > { %v8690_v60 = vmax.f32 %v3414_v8, %v3416_v47  ;;  %v2716_v9 = vsel %vm2661_vm3, %v2619_v55, %v2385_v44  ;;  %v1347_v19 = vadd.f32 %v8328_v50, %v8270_v27 }
 0x3b0   : > { %6065 = vmatmul.msk.f32.gmra.mxu1 %vm2774_vm2, %v2716_v9  ;;  %4440 = vmatmul.f32.gmra.mxu2 %v4070_v26  ;;  %v4909_v26 = vld [vmem:[#allocation11 + $0x1d0] sm:$0xff]  ;;  %v1485_v54 = vmax.f32 %v1344_v12, 0.0 }
 0x3b1   : > { %v8696_v28 = vpop.f32.mrf.mxu2  ;;  %6165 = vmatmul.msk.f32.gmra.mxu3 %vm2661_vm3, %v8690_v60  ;;  %v1486_v12 = vmax.f32 %v1347_v19, 0.0 }
 0x3b2   : > { %v3227_v39 = vpop.f32.mrf.mxu1  ;;  %5231 = vmatpush.msrb.mxu3 %v4909_v26  ;;  %v8728_v11 = vmax.f32 %v1484_v42, %v1485_v54  ;;  %v1350_v26 = vadd.f32 %v8328_v50, %v8295_v18 }
 0x3b3   : > { %v8703_v8 = vadd.f32 %v8260_v61, %v3227_v39  ;;  %2126 = vrot.lane.b32.xlu1 %v8652_v49, %s6906_s13  ;;  %2414 = vrot.lane.b32.xlu2 %v8688_v14, %s6907_s15  ;;  %v4663_v62 = vpop.f32.mrf.mxu3 }
 0x3b4   : > { %v4973_v62 = vld [vmem:[#allocation11 + $0x3d0] sm:$0xff] }
 0x3b5   : > { %v3417_v0 = vmax.f32 %v8703_v8, 0.0  ;;  %v2387_v44 = vpop.permute.xlu0 %2386  ;;  %5271 = vmatpush.msrb.mxu2 %v4973_v62 }
 0x3b6   : > { %v1406_v16 = vpop.f32.mrf.mxu0  ;;  %v2717_v9 = vsel %vm2661_vm3, %v2620_v41, %v2387_v44 }
 0x3b7   : > { %v8718_v55 = vmax.f32 %v3415_v20, %v3417_v0  ;;  %v2101_v20 = vpop.permute.xlu2 %2100 }
 0x3b8   : > { %6066 = vmatmul.msk.f32.gmra.mxu1 %vm2774_vm2, %v2717_v9  ;;  %4442 = vmatmul.f32.gmra.mxu2 %v4071_v22  ;;  %v2621_v44 = vsel %vm2564_vm1, %v8232_v5, %v2101_v20  ;;  %v8741_v9 = vmax.f32 %v1485_v54, %v1486_v12  ;;  %v1487_v5 = vmax.f32 %v1350_v26, 0.0 }
 0x3b9   : > { %v4430_v63 = vpop.f32.mrf.mxu2  ;;  %6166 = vmatmul.msk.f32.gmra.mxu3 %vm2661_vm3, %v8718_v55  ;;  %v6457_v27 = vpack.i.bf16 %v8718_v55, %v8690_v60 }
 0x3ba   : > { %v3230_v39 = vpop.f32.mrf.mxu1  ;;  %v8763_v62 = vmax.f32 %v1486_v12, %v1487_v5 }
 0x3bb   : > { %v8731_v41 = vadd.f32 %v8260_v61, %v3230_v39  ;;  %2128 = vrot.lane.b32.xlu1 %v8677_v46, %s6906_s13  ;;  %6458 = vrot.lane.b32.xlu0 %v6457_v27, %s6907_s15  ;;  %v4665_v24 = vpop.f32.mrf.mxu3  ;;  %v4941_v27 = vld [vmem:[#allocation11 + $0x2d0] sm:$0xff] }
 0x3bc   : > { %2416 = vrot.lane.b32.xlu2 %v8728_v11, %s6907_s15  ;;  %5251 = vmatpush.msrb.mxu1 %v4941_v27  ;;  %v1353_v24 = vadd.f32 %v8328_v50, %v8321_v4 }
 0x3bd   : > { %v3418_v42 = vmax.f32 %v8731_v41, 0.0  ;;  %v6424_v25 = vpop.permute.xlu1 %6423  ;;  %v2389_v19 = vpop.permute.xlu0 %2388 }
 0x3be   : > { %v6425_v16 = vunpack.i.l.bf16 %v6424_v25  ;;  %v1409_v61 = vpop.f32.mrf.mxu0  ;;  %v2718_v22 = vsel %vm2661_vm3, %v2621_v44, %v2389_v19  ;;  %v6426_v54 = vunpack.i.h.bf16 %v6424_v25  ;;  %v1488_v19 = vmax.f32 %v1353_v24, 0.0 }
 0x3bf   : > { %v8747_v63 = vmax.f32 %v3416_v47, %v3418_v42  ;;  %v2391_v18 = vpop.permute.xlu2 %2390 }
 0x3c0   : > { %v4072_v39 = vsel %vm2661_vm3, %v8302_v30, %v6425_v16  ;;  %6067 = vmatmul.msk.f32.gmra.mxu1 %vm2774_vm2, %v2718_v22  ;;  %v4073_v16 = vsel %vm2661_vm3, %v8326_v59, %v6426_v54  ;;  %v8777_v61 = vmax.f32 %v1487_v5, %v1488_v19  ;;  %v9745_v5 = vmax.f32 %v8381_v48, 0.0 }
 0x3c1   : > { %6167 = vmatmul.msk.f32.gmra.mxu3 %vm2661_vm3, %v8747_v63  ;;  %4444 = vmatmul.f32.gmra.mxu2 %v4072_v39 }
 0x3c3   : > { %2130 = vrot.lane.b32.xlu0 %v8688_v14, %s6906_s13  ;;  %2418 = vrot.lane.b32.xlu1 %v8741_v9, %s6907_s15  ;;  %v8759_v47 = vpop.f32.mrf.mxu3 }
 0x3c5   : > { %v2103_v20 = vpop.permute.xlu1 %2102 }
 0x3c6   : > { %v2622_v30 = vsel %vm2564_vm1, %v8368_v57, %v2103_v20  ;;  %v8787_v20 = vmax.f32 %v1488_v19, %v9745_v5 }
 0x3c7   : > { %v2719_v44 = vsel %vm2661_vm3, %v2622_v30, %v2391_v18  ;;  %v2393_v25 = vpop.permute.xlu2 %2392 }
 0x3c8   : > { %6068 = vmatmul.msk.f32.gmra.mxu1 %vm2774_vm2, %v2719_v44 }
 0x3c9   : > { %4447 = vmatmul.f32.gmra.mxu2 %v4073_v16 }
 0x3cb   : > { %2132 = vrot.lane.b32.xlu0 %v8728_v11, %s6906_s13  ;;  %2420 = vrot.lane.b32.xlu1 %v8763_v62, %s6907_s15 }
 0x3cc   : > { %v4670_v57 = vpop.f32.mrf.mxu3 }
 0x3cd   : > { %v2105_v12 = vpop.permute.xlu1 %2104  ;;  %v6429_v50 = vpop.permute.xlu0 %6428 }
 0x3ce   : > { %v2623_v4 = vsel %vm2564_vm1, %v8395_v56, %v2105_v12  ;;  %v6430_v26 = vunpack.i.l.bf16 %v6429_v50  ;;  %v6431_v39 = vunpack.i.h.bf16 %v6429_v50 }
 0x3cf   : > { %v2720_v59 = vsel %vm2661_vm3, %v2623_v4, %v2393_v25  ;;  %v6434_v54 = vpop.permute.xlu2 %6433 }
 0x3d0   : > { %6069 = vmatmul.msk.f32.gmra.mxu1 %vm2774_vm2, %v2720_v59  ;;  %v4074_v22 = vsel %vm2661_vm3, %v8354_v43, %v6430_v26  ;;  %v4075_v43 = vsel %vm2661_vm3, %v8388_v29, %v6431_v39  ;;  %v6435_v16 = vunpack.i.l.bf16 %v6434_v54  ;;  %v6436_v4 = vunpack.i.h.bf16 %v6434_v54 }
 0x3d1   : > { %4449 = vmatmul.f32.gmra.mxu2 %v4074_v22  ;;  %v4907_v22 = vld [vmem:[#allocation11 + $0x1c0] sm:$0xff] }
 0x3d2   : > { %v4076_v25 = vsel %vm2661_vm3, %v8419_v33, %v6435_v16  ;;  %5232 = vmatpush.msrb.mxu3 %v4907_v22  ;;  %v4971_v33 = vld [vmem:[#allocation11 + $0x3c0] sm:$0xff] }
 0x3d3   : > { %2422 = vrot.lane.b32.xlu0 %v8777_v61, %s6907_s15  ;;  %5272 = vmatpush.msrb.mxu2 %v4971_v33 }
 0x3d4   : > { %v4672_v27 = vpop.f32.mrf.mxu3 }
 0x3d5   : > { %v2395_v18 = vpop.permute.xlu1 %2394  ;;  %v2107_v56 = vpop.permute.xlu0 %2106 }
 0x3d6   : > { %v2624_v30 = vsel %vm2564_vm1, %v8428_v1, %v2107_v56 }
 0x3d7   : > { %v2721_v24 = vsel %vm2661_vm3, %v2624_v30, %v2395_v18  ;;  %v2111_v12 = vpop.permute.xlu2 %2110  ;;  %v4939_v30 = vld [vmem:[#allocation11 + $0x2c0] sm:$0xff] }
 0x3d8   : > { %6070 = vmatmul.msk.f32.gmra.mxu1 %vm2774_vm2, %v2721_v24  ;;  %v2626_v50 = vsel %vm2564_vm1, %v8468_v40, %v2111_v12 }
 0x3d9   : > { %4451 = vmatmul.f32.gmra.mxu2 %v4075_v43  ;;  %5252 = vmatpush.msrb.mxu1 %v4939_v30 }
 0x3db   : > { %2424 = vrot.lane.b32.xlu0 %v8787_v20, %s6907_s15 }
 0x3dc   : > { %v4674_v44 = vpop.f32.mrf.mxu3 }
 0x3dd   : > { %v2397_v57 = vpop.permute.xlu1 %2396 }
 0x3de   : > { %v2109_v48 = vpop.permute.xlu0 %2108 }
 0x3df   : > { %v2625_v19 = vsel %vm2564_vm1, %v8449_v32, %v2109_v48  ;;  %v4077_v32 = vsel %vm2661_vm3, %v8439_v7, %v6436_v4  ;;  %v2113_v27 = vpop.permute.xlu2 %2112 }
 0x3e0   : > { %v2722_v1 = vsel %vm2661_vm3, %v2625_v19, %v2397_v57  ;;  %v2627_v54 = vsel %vm2564_vm1, %v8484_v2, %v2113_v27 }
 0x3e1   : > { %6071 = vmatmul.msk.f32.gmra.mxu1 %vm2774_vm2, %v2722_v1  ;;  %4453 = vmatmul.f32.gmra.mxu2 %v4076_v25 }
 0x3e4   : > { %v8803_v29 = vpop.f32.mrf.mxu3 }
 0x3e6   : > { %v2399_v26 = vpop.permute.xlu0 %2398 }
 0x3e7   : > { %v2723_v59 = vsel %vm2661_vm3, %v2626_v50, %v2399_v26  ;;  %v2403_v7 = vpop.permute.xlu2 %2402 }
 0x3e9   : > { %6072 = vmatmul.msk.f32.gmra.mxu1 %vm2774_vm2, %v2723_v59  ;;  %4456 = vmatmul.f32.gmra.mxu2 %v4077_v32 }
 0x3ec   : > { %v4679_v39 = vpop.f32.mrf.mxu3 }
 0x3ed   : > { %v6439_v18 = vpop.permute.xlu1 %6438 }
 0x3ee   : > { %v6440_v40 = vunpack.i.l.bf16 %v6439_v18  ;;  %v2401_v56 = vpop.permute.xlu0 %2400  ;;  %v6441_v44 = vunpack.i.h.bf16 %v6439_v18 }
 0x3ef   : > { %v2724_v5 = vsel %vm2661_vm3, %v2627_v54, %v2401_v56  ;;  %v2405_v12 = vpop.permute.xlu2 %2404 }
 0x3f0   : > { %v4078_v24 = vsel %vm2661_vm3, %v8459_v53, %v6440_v40  ;;  %v4079_v48 = vsel %vm2661_vm3, %v8477_v21, %v6441_v44  ;;  %v8845_v44 = vld [vmem:[#allocation7] ss:$0 sm:$0xff] }
 0x3f1   : > { %6073 = vmatmul.msk.f32.gmra.mxu1 %vm2774_vm2, %v2724_v5  ;;  %4458 = vmatmul.f32.gmra.mxu2 %v4078_v24 }
 0x3f4   : > { %v4681_v43 = vpop.f32.mrf.mxu3 }
 0x3f5   : > { %v2115_v16 = vpop.permute.xlu1 %2114 }
 0x3f6   : > { %v2628_v57 = vsel %vm2564_vm1, %v8503_v36, %v2115_v16 }
 0x3f7   : > { %v2725_v2 = vsel %vm2661_vm3, %v2628_v57, %v2403_v7  ;;  %v6449_v32 = vpop.permute.xlu2 %6448 }
 0x3f9   : > { %6074 = vmatmul.msk.f32.gmra.mxu1 %vm2774_vm2, %v2725_v2  ;;  %4460 = vmatmul.f32.gmra.mxu2 %v4079_v48  ;;  %v9746_v48 = vld [vmem:[#allocation52_spill] sm:$0xff] }
 0x3fc   : > { %v4683_v53 = vpop.f32.mrf.mxu3 }
 0x3fd   : > { %v2117_v19 = vpop.permute.xlu1 %2116 }
 0x3fe   : > { %v2629_v1 = vsel %vm2564_vm1, %v8517_v35, %v2117_v19  ;;  %v6444_v25 = vpop.permute.xlu0 %6443 }
 0x3ff   : > { %v6445_v4 = vunpack.i.l.bf16 %v6444_v25  ;;  %v2726_v50 = vsel %vm2661_vm3, %v2629_v1, %v2405_v12  ;;  %v6446_v21 = vunpack.i.h.bf16 %v6444_v25  ;;  %v2123_v5 = vpop.permute.xlu2 %2122  ;;  %v4969_v12 = vld [vmem:[#allocation11 + $0x3b0] sm:$0xff] }
 0x400   : > { %v2632_v43 = vsel %vm2564_vm1, %v8571_v13, %v2123_v5  ;;  %v4905_v13 = vld [vmem:[#allocation11 + $0x1b0] sm:$0xff]  ;;  %5273 = vmatpush.msrb.mxu2 %v4969_v12  ;;  %v9747_v5 = vld [vmem:[#allocation55_spill] sm:$0xff] }
 0x401   : > { %6075 = vmatmul.msk.f32.gmra.mxu1 %vm2774_vm2, %v2726_v50  ;;  %v4080_v36 = vsel %vm2661_vm3, %v8496_v58, %v6445_v4  ;;  %v4081_v33 = vsel %vm2661_vm3, %v8512_v51, %v6446_v21  ;;  %v6450_v58 = vunpack.i.l.bf16 %v6449_v32  ;;  %v6451_v51 = vunpack.i.h.bf16 %v6449_v32  ;;  %5233 = vmatpush.msrb.mxu3 %v4905_v13  ;;  %v5007_v12 = vld [vmem:[#allocation11 + $0x4e0] sm:$0xff] }
 0x402   : > { %4462 = vmatmul.f32.gmra.mxu2 %v4080_v36 }
 0x404   : > { %v8829_v26 = vpop.f32.mrf.mxu3 }
 0x405   : > { %v2407_v59 = vpop.permute.xlu1 %2406 }
 0x406   : > { %v2119_v22 = vpop.permute.xlu0 %2118 }
 0x407   : > { %v2630_v27 = vsel %vm2564_vm1, %v8540_v15, %v2119_v22  ;;  %v4082_v15 = vsel %vm2661_vm3, %v8531_v17, %v6450_v58  ;;  %v4083_v17 = vsel %vm2661_vm3, %v9746_v48, %v6451_v51  ;;  %v2125_v19 = vpop.permute.xlu2 %2124 }
 0x408   : > { %v2727_v35 = vsel %vm2661_vm3, %v2630_v27, %v2407_v59  ;;  %v2633_v8 = vsel %vm2564_vm1, %v8587_v37, %v2125_v19  ;;  %v4937_v37 = vld [vmem:[#allocation11 + $0x2b0] sm:$0xff] }
 0x409   : > { %6076 = vmatmul.msk.f32.gmra.mxu1 %vm2774_vm2, %v2727_v35 }
 0x40a   : > { %4465 = vmatmul.f32.gmra.mxu2 %v4081_v33  ;;  %5253 = vmatpush.msrb.mxu1 %v4937_v37 }
 0x40c   : > { %v4688_v39 = vpop.f32.mrf.mxu3 }
 0x40d   : > { %v2409_v18 = vpop.permute.xlu1 %2408 }
 0x40e   : > { %v2121_v54 = vpop.permute.xlu0 %2120 }
 0x40f   : > { %v2631_v40 = vsel %vm2564_vm1, %v8558_v23, %v2121_v54  ;;  %v2415_v33 = vpop.permute.xlu2 %2414 }
 0x410   : > { %v2728_v56 = vsel %vm2661_vm3, %v2631_v40, %v2409_v18 }
 0x411   : > { %6077 = vmatmul.msk.f32.gmra.mxu1 %vm2774_vm2, %v2728_v56 }
 0x412   : > { %4467 = vmatmul.f32.gmra.mxu2 %v4082_v15 }
 0x413   : > { %v4432_v30 = vpop.f32.mrf.mxu2 }
 0x414   : > { %v4690_v24 = vpop.f32.mrf.mxu3  ;;  %v3233_v7 = vpop.f32.mrf.mxu1 }
 0x415   : > { %v3234_v23 = vadd.f32 %v8845_v44, %v3233_v7 }
 0x416   : > { %v2411_v16 = vpop.permute.xlu0 %2410 }
 0x417   : > { %v2729_v57 = vsel %vm2661_vm3, %v2632_v43, %v2411_v16  ;;  %v3419_v2 = vmax.f32 %v3234_v23, 0.0  ;;  %v2417_v51 = vpop.permute.xlu2 %2416 }
 0x419   : > { %6078 = vmatmul.msk.f32.gmra.mxu1 %vm2774_vm2, %v2729_v57  ;;  %v8854_v53 = vmax.f32 %v3417_v0, %v3419_v2 }
 0x41a   : > { %4469 = vmatmul.f32.gmra.mxu2 %v4083_v17 }
 0x41b   : > { %v4434_v1 = vpop.f32.mrf.mxu2  ;;  %6168 = vmatmul.msk.f32.gmra.mxu3 %vm2661_vm3, %v8854_v53  ;;  %v6462_v4 = vpack.i.bf16 %v8854_v53, %v8747_v63 }
 0x41c   : > { %v4692_v25 = vpop.f32.mrf.mxu3  ;;  %v3236_v36 = vpop.f32.mrf.mxu1 }
 0x41d   : > { %v6454_v50 = vpop.permute.xlu1 %6453  ;;  %v3237_v21 = vadd.f32 %v8845_v44, %v3236_v36  ;;  %6463 = vrot.lane.b32.xlu2 %v6462_v4, %s6907_s15  ;;  %v5005_v25 = vld [vmem:[#allocation11 + $0x4d0] sm:$0xff] }
 0x41e   : > { %v6455_v0 = vunpack.i.l.bf16 %v6454_v50  ;;  %v2413_v59 = vpop.permute.xlu0 %2412  ;;  %v6456_v58 = vunpack.i.h.bf16 %v6454_v50 }
 0x41f   : > { %v2730_v22 = vsel %vm2661_vm3, %v2633_v8, %v2413_v59  ;;  %v3420_v32 = vmax.f32 %v3237_v21, 0.0 }
 0x420   : > { %v4084_v27 = vsel %vm2661_vm3, %v8568_v45, %v6455_v0  ;;  %v4085_v15 = vsel %vm2661_vm3, %v9747_v5, %v6456_v58  ;;  %v5003_v0 = vld [vmem:[#allocation11 + $0x4c0] sm:$0xff] }
 0x421   : > { %6079 = vmatmul.msk.f32.gmra.mxu1 %vm2774_vm2, %v2730_v22  ;;  %v8870_v35 = vmax.f32 %v3418_v42, %v3420_v32  ;;  %v9748_v22 = vld [vmem:[#allocation38_spill] sm:$0xff] }
 0x422   : > { %4471 = vmatmul.f32.gmra.mxu2 %v4084_v27  ;;  %v5001_v27 = vld [vmem:[#allocation11 + $0x4b0] sm:$0xff] }
 0x423   : > { %6169 = vmatmul.msk.f32.gmra.mxu3 %vm2661_vm3, %v8870_v35  ;;  %v8876_v18 = vpop.f32.mrf.mxu2 }
 0x424   : > { %v8872_v39 = vpop.f32.mrf.mxu3  ;;  %v3239_v40 = vpop.f32.mrf.mxu1 }
 0x425   : > { %v2127_v54 = vpop.permute.xlu1 %2126  ;;  %2134 = vrot.lane.b32.xlu2 %v8741_v9, %s6906_s13  ;;  %v3240_v41 = vadd.f32 %v8845_v44, %v3239_v40  ;;  %v4997_v40 = vld [vmem:[#allocation11 + $0x490] sm:$0xff] }
 0x426   : > { %v2634_v45 = vsel %vm2564_vm1, %v8607_v6, %v2127_v54  ;;  %v4999_v54 = vld [vmem:[#allocation11 + $0x4a0] sm:$0xff] }
 0x427   : > { %v2731_v42 = vsel %vm2661_vm3, %v2634_v45, %v2415_v33  ;;  %v3421_v56 = vmax.f32 %v3240_v41, 0.0 }
 0x429   : > { %6080 = vmatmul.msk.f32.gmra.mxu1 %vm2774_vm2, %v2731_v42  ;;  %v8887_v30 = vmax.f32 %v3419_v2, %v3421_v56  ;;  %v5009_v2 = vld [vmem:[#allocation11 + $0x4f0] sm:$0xff] }
 0x42a   : > { %4474 = vmatmul.f32.gmra.mxu2 %v4085_v15  ;;  %5289 = vmatpush.msra.mxu0 %v5009_v2  ;;  %v4995_v15 = vld [vmem:[#allocation11 + $0x480] sm:$0xff]  ;;  %v4989_v2 = vld [vmem:[#allocation11 + $0x450] sm:$0xff] }
 0x42b   : > { %v4439_v6 = vpop.f32.mrf.mxu2  ;;  %6170 = vmatmul.msk.f32.gmra.mxu3 %vm2661_vm3, %v8887_v30  ;;  %v6467_v43 = vpack.i.bf16 %v8887_v30, %v8870_v35 }
 0x42c   : > { %v4697_v24 = vpop.f32.mrf.mxu3  ;;  %5290 = vmatpush.msra.mxu0 %v5007_v12  ;;  %v4985_v12 = vld [vmem:[#allocation11 + $0x430] sm:$0xff] }
 0x42d   : > { %v2129_v7 = vpop.permute.xlu1 %2128  ;;  %v3242_v16 = vpop.f32.mrf.mxu1  ;;  %2136 = vrot.lane.b32.xlu2 %v8763_v62, %s6906_s13  ;;  %6468 = vrot.lane.b32.xlu1 %v6467_v43, %s6907_s15 }
 0x42e   : > { %v2635_v23 = vsel %vm2564_vm1, %v8628_v38, %v2129_v7  ;;  %v6459_v57 = vpop.permute.xlu0 %6458  ;;  %v3243_v48 = vadd.f32 %v8845_v44, %v3242_v16  ;;  %5291 = vmatpush.msra.mxu0 %v5005_v25  ;;  %v4993_v7 = vld [vmem:[#allocation11 + $0x470] sm:$0xff]  ;;  %v4991_v16 = vld [vmem:[#allocation11 + $0x460] sm:$0xff] }
 0x42f   : > { %v6460_v17 = vunpack.i.l.bf16 %v6459_v57  ;;  %v2732_v19 = vsel %vm2661_vm3, %v2635_v23, %v2417_v51  ;;  %v6461_v50 = vunpack.i.h.bf16 %v6459_v57  ;;  %v4983_v25 = vld [vmem:[#allocation11 + $0x420] sm:$0xff] }
 0x430   : > { %v3422_v13 = vmax.f32 %v3243_v48, 0.0  ;;  %5292 = vmatpush.msra.mxu0 %v5003_v0 }
 0x431   : > { %6081 = vmatmul.msk.f32.gmra.mxu1 %vm2774_vm2, %v2732_v19  ;;  %v4086_v38 = vsel %vm2661_vm3, %v8603_v10, %v6460_v17  ;;  %v4087_v58 = vsel %vm2661_vm3, %v8622_v52, %v6461_v50  ;;  %v9749_v52 = vld [vmem:[#allocation39_spill] sm:$0xff]  ;;  %v4981_v50 = vld [vmem:[#allocation11 + $0x410] sm:$0xff] }
 0x432   : > { %4476 = vmatmul.f32.gmra.mxu2 %v4086_v38  ;;  %v8903_v1 = vmax.f32 %v3420_v32, %v3422_v13  ;;  %5293 = vmatpush.msra.mxu0 %v5001_v27  ;;  %v9750_v38 = vld [vmem:[#allocation40_spill] sm:$0xff]  ;;  %v9751_v27 = vld [vmem:[#allocation46_spill] sm:$0xff] }
 0x433   : > { %v4441_v36 = vpop.f32.mrf.mxu2 }
 0x434   : > { %v4699_v4 = vpop.f32.mrf.mxu3  ;;  %6171 = vmatmul.msk.f32.gmra.mxu3 %vm2661_vm3, %v8903_v1  ;;  %5294 = vmatpush.msra.mxu0 %v4999_v54  ;;  %v4903_v36 = vld [vmem:[#allocation11 + $0x1a0] sm:$0xff] }
 0x435   : > { %v2419_v8 = vpop.permute.xlu1 %2418  ;;  %v3245_v21 = vpop.f32.mrf.mxu1  ;;  %2426 = vrot.lane.b32.xlu2 %v9748_v22, %s6907_s15  ;;  %2138 = vrot.lane.b32.xlu1 %v8777_v61, %s6906_s13 }
 0x436   : > { %v2131_v59 = vpop.permute.xlu0 %2130  ;;  %v3246_v10 = vadd.f32 %v8845_v44, %v3245_v21  ;;  %5295 = vmatpush.msra.mxu0 %v4997_v40  ;;  %5234 = vmatpush.msrb.mxu3 %v4903_v36 }
 0x437   : > { %v2636_v32 = vsel %vm2564_vm1, %v8652_v49, %v2131_v59  ;;  %v4979_v59 = vld [vmem:[#allocation11 + $0x400] sm:$0xff] }
 0x438   : > { %v2733_v37 = vsel %vm2661_vm3, %v2636_v32, %v2419_v8  ;;  %v3423_v33 = vmax.f32 %v3246_v10, 0.0  ;;  %5296 = vmatpush.msra.mxu0 %v4995_v15  ;;  %v4967_v8 = vld [vmem:[#allocation11 + $0x3a0] sm:$0xff] }
 0x439   : > { %6082 = vmatmul.msk.f32.gmra.mxu1 %vm2774_vm2, %v2733_v37  ;;  %5274 = vmatpush.msrb.mxu2 %v4967_v8 }
 0x43a   : > { %4478 = vmatmul.f32.gmra.mxu2 %v4087_v58  ;;  %v8918_v45 = vmax.f32 %v3421_v56, %v3423_v33  ;;  %5297 = vmatpush.msra.mxu0 %v4993_v7  ;;  %v4935_v58 = vld [vmem:[#allocation11 + $0x2a0] sm:$0xff] }
 0x43b   : > { %v4443_v41 = vpop.f32.mrf.mxu2  ;;  %5254 = vmatpush.msrb.mxu1 %v4935_v58 }
 0x43c   : > { %v4701_v49 = vpop.f32.mrf.mxu3  ;;  %6172 = vmatmul.msk.f32.gmra.mxu3 %vm2661_vm3, %v8918_v45  ;;  %v6472_v5 = vpack.i.bf16 %v8918_v45, %v8903_v1  ;;  %5298 = vmatpush.msra.mxu0 %v4991_v16  ;;  %v9752_v41 = vld [vmem:[#allocation47_spill] sm:$0xff] }
 0x43d   : > { %v2421_v42 = vpop.permute.xlu1 %2420  ;;  %v3248_v24 = vpop.f32.mrf.mxu1  ;;  %2428 = vrot.lane.b32.xlu2 %v9749_v52, %s6907_s15  ;;  %2140 = vrot.lane.b32.xlu1 %v8787_v20, %s6906_s13 }
 0x43e   : > { %v2133_v51 = vpop.permute.xlu0 %2132  ;;  %v3249_v56 = vadd.f32 %v8845_v44, %v3248_v24  ;;  %6473 = vrot.lane.b32.xlu0 %v6472_v5, %s6907_s15  ;;  %5299 = vmatpush.msra.mxu0 %v4989_v2 }
 0x43f   : > { %v2637_v6 = vsel %vm2564_vm1, %v8677_v46, %v2133_v51  ;;  %v4987_v46 = vld [vmem:[#allocation11 + $0x440] sm:$0xff] }
 0x440   : > { %v2734_v43 = vsel %vm2661_vm3, %v2637_v6, %v2421_v42  ;;  %v3424_v23 = vmax.f32 %v3249_v56, 0.0  ;;  %5300 = vmatpush.msra.mxu0 %v4987_v46  ;;  %v9753_v6 = vld [vmem:[#allocation48_spill] sm:$0xff] }
 0x441   : > { %6083 = vmatmul.msk.f32.gmra.mxu1 %vm2774_vm2, %v2734_v43  ;;  %v6535_v43 = vld [vmem:[#allocation10] ss:$0 sm:$0xff] }
 0x442   : > { %v8934_v57 = vmax.f32 %v3422_v13, %v3424_v23  ;;  %5301 = vmatpush.msra.mxu0 %v4985_v12 }
 0x444   : > { %v4445_v48 = vpop.f32.mrf.mxu2  ;;  %6173 = vmatmul.msk.f32.gmra.mxu3 %vm2661_vm3, %v8934_v57  ;;  %5302 = vmatpush.msra.mxu0 %v4983_v25 }
 0x445   : > { %v3251_v17 = vpop.f32.mrf.mxu1  ;;  %2430 = vrot.lane.b32.xlu1 %v9750_v38, %s6907_s15 }
 0x446   : > { %v3252_v19 = vadd.f32 %v8845_v44, %v3251_v17  ;;  %2142 = vrot.lane.b32.xlu0 %v9748_v22, %s6906_s13  ;;  %5303 = vmatpush.msra.mxu0 %v4981_v50 }
 0x448   : > { %v3425_v13 = vmax.f32 %v3252_v19, 0.0  ;;  %5304 = vmatpush.msra.mxu0 %v4979_v59 }
 0x44a   : > { %v8943_v4 = vmax.f32 %v3423_v33, %v3425_v13 }
 0x44c   : > { %v4448_v0 = vpop.f32.mrf.mxu2  ;;  %6174 = vmatmul.msk.f32.gmra.mxu3 %vm2661_vm3, %v8943_v4  ;;  %v6477_v21 = vpack.i.bf16 %v8943_v4, %v8934_v57 }
 0x44d   : > { %v3254_v10 = vpop.f32.mrf.mxu1  ;;  %2432 = vrot.lane.b32.xlu1 %v9751_v27, %s6907_s15 }
 0x44e   : > { %v3255_v32 = vadd.f32 %v8845_v44, %v3254_v10  ;;  %2144 = vrot.lane.b32.xlu0 %v9749_v52, %s6906_s13  ;;  %6478 = vrot.lane.b32.xlu2 %v6477_v21, %s6907_s15 }
 0x450   : > { %v3426_v37 = vmax.f32 %v3255_v32, 0.0 }
 0x452   : > { %v8955_v33 = vmax.f32 %v3424_v23, %v3426_v37  ;;  %v4446_v23 = vadd.f32 %v6535_v43, %v4445_v48 }
 0x454   : > { %v4450_v54 = vpop.f32.mrf.mxu2  ;;  %6175 = vmatmul.msk.f32.gmra.mxu3 %vm2661_vm3, %v8955_v33  ;;  %v4677_v46 = vadd.f32 %v8803_v29, %v4446_v23  ;;  %v2423_v23 = vpop.permute.xlu0 %2422 }
 0x455   : > { %v3257_v40 = vpop.f32.mrf.mxu1 }
 0x456   : > { %v3258_v49 = vadd.f32 %v8845_v44, %v3257_v40  ;;  %2434 = vrot.lane.b32.xlu0 %v9752_v41, %s6907_s15  ;;  %2146 = vrot.lane.b32.xlu2 %v9750_v38, %s6906_s13  ;;  %v4826_v50 = vmax.f32 %v4677_v46, 0.0  ;;  %v9756_v40 = vld [vmem:[#allocation53_spill] sm:$0xff] }
 0x458   : > { %v3427_v42 = vmax.f32 %v3258_v49, 0.0 }
 0x45a   : > { %v8964_v5 = vmax.f32 %v3425_v13, %v3427_v42  ;;  %v9754_v13 = vld [vmem:[#allocation49_spill] sm:$0xff] }
 0x45c   : > { %v4452_v15 = vpop.f32.mrf.mxu2  ;;  %6176 = vmatmul.msk.f32.gmra.mxu3 %vm2661_vm3, %v8964_v5  ;;  %v6482_v24 = vpack.i.bf16 %v8964_v5, %v8955_v33 }
 0x45e   : > { %v3260_v51 = vpop.f32.mrf.mxu1  ;;  %2436 = vrot.lane.b32.xlu0 %v9753_v6, %s6907_s15  ;;  %6483 = vrot.lane.b32.xlu1 %v6482_v24, %s6907_s15 }
 0x45f   : > { %v3261_v56 = vadd.f32 %v8845_v44, %v3260_v51  ;;  %2148 = vrot.lane.b32.xlu2 %v9751_v27, %s6906_s13 }
 0x461   : > { %v3428_v7 = vmax.f32 %v3261_v56, 0.0  ;;  %v4901_v56 = vld [vmem:[#allocation11 + $0x190] sm:$0xff] }
 0x462   : > { %5235 = vmatpush.msrb.mxu3 %v4901_v56 }
 0x463   : > { %v8976_v16 = vmax.f32 %v3426_v37, %v3428_v7 }
 0x464   : > { %v4454_v2 = vpop.f32.mrf.mxu2 }
 0x465   : > { %6177 = vmatmul.msk.f32.gmra.mxu3 %vm2661_vm3, %v8976_v16  ;;  %v4455_v17 = vadd.f32 %v6535_v43, %v4454_v2 }
 0x466   : > { %v3263_v19 = vpop.f32.mrf.mxu1  ;;  %2150 = vrot.lane.b32.xlu1 %v9752_v41, %s6906_s13  ;;  %3868 = vrot.lane.b32.xlu0 %v8976_v16, %s6907_s15 }
 0x467   : > { %v3264_v12 = vadd.f32 %v8845_v44, %v3263_v19  ;;  %v4686_v48 = vadd.f32 %v8829_v26, %v4455_v17  ;;  %2438 = vrot.lane.b32.xlu2 %v9754_v13, %s6907_s15  ;;  %v9755_v26 = vld [vmem:[#allocation51_spill] sm:$0xff] }
 0x469   : > { %v3429_v25 = vmax.f32 %v3264_v12, 0.0  ;;  %v4827_v36 = vmax.f32 %v4686_v48, 0.0 }
 0x46b   : > { %v8989_v8 = vmax.f32 %v3427_v42, %v3429_v25  ;;  %v8991_v29 = vmax.f32 %v4826_v50, %v4827_v36 }
 0x46c   : > { %v4457_v0 = vpop.f32.mrf.mxu2 }
 0x46d   : > { %6178 = vmatmul.msk.f32.gmra.mxu3 %vm2661_vm3, %v8989_v8  ;;  %5305 = vmatmul.f32.vlgmr.msra.gmra.mxu0 %v8991_v29  ;;  %v4933_v0 = vld [vmem:[#allocation11 + $0x290] sm:$0xff] }
 0x46e   : > { %v3266_v21 = vpop.f32.mrf.mxu1  ;;  %2152 = vrot.lane.b32.xlu1 %v9753_v6, %s6906_s13  ;;  %3870 = vrot.lane.b32.xlu0 %v8989_v8, %s6907_s15 }
 0x46f   : > { %v3267_v59 = vadd.f32 %v8845_v44, %v3266_v21  ;;  %2440 = vrot.lane.b32.xlu2 %v9755_v26, %s6907_s15  ;;  %5255 = vmatpush.msrb.mxu1 %v4933_v0 }
 0x471   : > { %v3430_v10 = vmax.f32 %v3267_v59, 0.0 }
 0x473   : > { %v9003_v32 = vmax.f32 %v3428_v7, %v3430_v10  ;;  %v4965_v7 = vld [vmem:[#allocation11 + $0x390] sm:$0xff] }
 0x474   : > { %v4459_v37 = vpop.f32.mrf.mxu2  ;;  %5275 = vmatpush.msrb.mxu2 %v4965_v7 }
 0x475   : > { %6179 = vmatmul.msk.f32.gmra.mxu3 %vm2661_vm3, %v9003_v32 }
 0x476   : > { %v3269_v58 = vpop.f32.mrf.mxu1  ;;  %2154 = vrot.lane.b32.xlu1 %v9754_v13, %s6906_s13  ;;  %3872 = vrot.lane.b32.xlu0 %v9003_v32, %s6907_s15 }
 0x477   : > { %v3270_v54 = vadd.f32 %v8845_v44, %v3269_v58  ;;  %2442 = vrot.lane.b32.xlu2 %v9756_v40, %s6907_s15  ;;  %v6464_v49 = vpop.permute.xlu2 %6463 }
 0x478   : > { %v6465_v15 = vunpack.i.l.bf16 %v6464_v49  ;;  %v6466_v46 = vunpack.i.h.bf16 %v6464_v49 }
 0x479   : > { %v3431_v42 = vmax.f32 %v3270_v54, 0.0 }
 0x47a   : > { %v4088_v51 = vsel %vm2661_vm3, %v8644_v31, %v6465_v15  ;;  %v9757_v31 = vld [vmem:[#allocation54_spill] sm:$0xff]  ;;  %v4089_v36 = vsel %vm2661_vm3, %v8665_v34, %v6466_v46  ;;  %v9758_v34 = vld [vmem:[#allocation56_spill] sm:$0xff] }
 0x47b   : > { %v9014_v24 = vmax.f32 %v3429_v25, %v3431_v42  ;;  %4480 = vmatmul.f32.gmra.mxu2 %v4088_v51 }
 0x47c   : > { %v4461_v43 = vpop.f32.mrf.mxu2 }
 0x47d   : > { %6180 = vmatmul.msk.f32.gmra.mxu3 %vm2661_vm3, %v9014_v24 }
 0x47e   : > { %v3272_v2 = vpop.f32.mrf.mxu1  ;;  %2156 = vrot.lane.b32.xlu1 %v9755_v26, %s6906_s13  ;;  %3874 = vrot.lane.b32.xlu0 %v9014_v24, %s6907_s15 }
 0x47f   : > { %v3273_v17 = vadd.f32 %v8845_v44, %v3272_v2  ;;  %2444 = vrot.lane.b32.xlu2 %v9757_v31, %s6907_s15  ;;  %v2135_v19 = vpop.permute.xlu2 %2134 }
 0x480   : > { %v2638_v48 = vsel %vm2564_vm1, %v8688_v14, %v2135_v19 }
 0x481   : > { %v3432_v12 = vmax.f32 %v3273_v17, 0.0  ;;  %v2735_v25 = vsel %vm2661_vm3, %v2638_v48, %v2423_v23  ;;  %v9066_v17 = vpop.f32.mrf.mxu3 }
 0x482   : > { %6084 = vmatmul.msk.f32.gmra.mxu1 %vm2774_vm2, %v2735_v25 }
 0x483   : > { %v9030_v50 = vmax.f32 %v3430_v10, %v3432_v12  ;;  %4483 = vmatmul.f32.gmra.mxu2 %v4089_v36  ;;  %v2425_v10 = vpop.permute.xlu0 %2424 }
 0x485   : > { %v9035_v21 = vpop.f32.mrf.mxu2  ;;  %6181 = vmatmul.msk.f32.gmra.mxu3 %vm2661_vm3, %v9030_v50 }
 0x486   : > { %v3275_v59 = vpop.f32.mrf.mxu1  ;;  %2158 = vrot.lane.b32.xlu1 %v9756_v40, %s6906_s13  ;;  %3876 = vrot.lane.b32.xlu0 %v9030_v50, %s6907_s15 }
 0x487   : > { %v3276_v14 = vadd.f32 %v8845_v44, %v3275_v59  ;;  %2446 = vrot.lane.b32.xlu2 %v9758_v34, %s6907_s15  ;;  %v2137_v37 = vpop.permute.xlu2 %2136 }
 0x488   : > { %v2639_v54 = vsel %vm2564_vm1, %v8728_v11, %v2137_v37  ;;  %v6908_v11 = vmov 0.0  }
 0x489   : > { %v3433_v58 = vmax.f32 %v3276_v14, 0.0  ;;  %v2736_v49 = vsel %vm2661_vm3, %v2639_v54, %v2425_v10 }
 0x48a   : > { %6085 = vmatmul.msk.f32.gmra.mxu1 %vm2774_vm2, %v2736_v49 }
 0x48b   : > { %v9049_v15 = vmax.f32 %v3431_v42, %v3433_v58 }
 0x48d   : > { %v4466_v51 = vpop.f32.mrf.mxu2  ;;  %6182 = vmatmul.msk.f32.gmra.mxu3 %vm2661_vm3, %v9049_v15 }
 0x48e   : > { %v3278_v56 = vpop.f32.mrf.mxu1  ;;  %2160 = vrot.lane.b32.xlu1 %v9757_v31, %s6906_s13  ;;  %3878 = vrot.lane.b32.xlu0 %v9049_v15, %s6907_s15 }
 0x48f   : > { %v3279_v7 = vadd.f32 %v8845_v44, %v3278_v56  ;;  %2448 = vrot.lane.b32.xlu2 %v6908_v11, %s6907_s15  ;;  %v2427_v25 = vpop.permute.xlu2 %2426 }
 0x491   : > { %v3434_v42 = vmax.f32 %v3279_v7, 0.0 }
 0x493   : > { %v9061_v43 = vmax.f32 %v3432_v12, %v3434_v42 }
 0x495   : > { %v4468_v23 = vpop.f32.mrf.mxu2  ;;  %6183 = vmatmul.msk.f32.gmra.mxu3 %vm2661_vm3, %v9061_v43  ;;  %v6487_v2 = vpack.i.bf16 0.0, %v9061_v43 }
 0x496   : > { %v3281_v46 = vpop.f32.mrf.mxu1 }
 0x497   : > { %v3282_v19 = vadd.f32 %v8845_v44, %v3281_v46  ;;  %6488 = vrot.lane.b32.xlu1 %v6487_v2, %s6907_s15  ;;  %2162 = vrot.lane.b32.xlu2 %v9758_v34, %s6906_s13  ;;  %v4899_v2 = vld [vmem:[#allocation11 + $0x180] sm:$0xff] }
 0x498   : > { %5236 = vmatpush.msrb.mxu3 %v4899_v2 }
 0x499   : > { %v3435_v48 = vmax.f32 %v3282_v19, 0.0 }
 0x49b   : > { %v9072_v12 = vmax.f32 %v3433_v58, %v3435_v48  ;;  %v2429_v58 = vpop.permute.xlu2 %2428 }
 0x49d   : > { %3882 = vrot.lane.b32.xlu0 %v9072_v12, %s6907_s15  ;;  %v4470_v36 = vpop.f32.mrf.mxu2  ;;  %6184 = vmatmul.msk.f32.gmra.mxu3 %vm2661_vm3, %v9072_v12 }
 0x49e   : > { %v3284_v0 = vpop.f32.mrf.mxu1  ;;  %v4706_v14 = vpop.f32.mrf.mxu3 }
 0x49f   : > { %v3285_v59 = vadd.f32 %v8845_v44, %v3284_v0  ;;  %2164 = vrot.lane.b32.xlu1 %v6908_v11, %s6906_s13  ;;  %v6469_v37 = vpop.permute.xlu1 %6468 }
 0x4a0   : > { %v6470_v54 = vunpack.i.l.bf16 %v6469_v37  ;;  %v6471_v46 = vunpack.i.h.bf16 %v6469_v37 }
 0x4a1   : > { %v3436_v10 = vmax.f32 %v3285_v59, 0.0  ;;  %v4963_v59 = vld [vmem:[#allocation11 + $0x380] sm:$0xff] }
 0x4a2   : > { %v4090_v51 = vsel %vm2661_vm3, %v8690_v60, %v6470_v54  ;;  %5276 = vmatpush.msrb.mxu2 %v4963_v59 }
 0x4a3   : > { %v9081_v49 = vmax.f32 %v3434_v42, %v3436_v10  ;;  %4485 = vmatmul.f32.gmra.mxu2 %v4090_v51 }
 0x4a5   : > { %2166 = vrot.lane.b32.xlu0 %v6908_v11, %s6906_s13  ;;  %v9087_v56 = vpop.f32.mrf.mxu2  ;;  %v6492_v7 = vpack.i.bf16 %v9081_v49, %v6908_v11  ;;  %6185 = vmatmul.msk.f32.gmra.mxu3 %vm2661_vm3, %v9081_v49 }
 0x4a6   : > { %v3287_v23 = vpop.f32.mrf.mxu1  ;;  %v4708_v60 = vpop.f32.mrf.mxu3 }
 0x4a7   : > { %v3288_v42 = vadd.f32 %v8845_v44, %v3287_v23  ;;  %2454 = vrot.lane.b32.xlu1 %v6908_v11, %s6907_s15  ;;  %6493 = vrot.lane.b32.xlu2 %v6492_v7, %s6907_s15  ;;  %v2139_v36 = vpop.permute.xlu1 %2138  ;;  %v4091_v7 = vsel %vm2661_vm3, %v8718_v55, %v6471_v46  ;;  %v4931_v23 = vld [vmem:[#allocation11 + $0x280] sm:$0xff] }
 0x4a8   : > { %v2640_v0 = vsel %vm2564_vm1, %v8741_v9, %v2139_v36  ;;  %v9102_v51 = vpop.permute.xlu2 %6478  ;;  %5256 = vmatpush.msrb.mxu1 %v4931_v23 }
 0x4a9   : > { %v3437_v19 = vmax.f32 %v3288_v42, 0.0  ;;  %v2737_v54 = vsel %vm2661_vm3, %v2640_v0, %v2427_v25 }
 0x4aa   : > { %6086 = vmatmul.msk.f32.gmra.mxu1 %vm2774_vm2, %v2737_v54 }
 0x4ab   : > { %v9099_v14 = vmax.f32 %v3435_v48, %v3437_v19  ;;  %4487 = vmatmul.f32.gmra.mxu2 %v4091_v7 }
 0x4ad   : > { %v4475_v37 = vpop.f32.mrf.mxu2  ;;  %6186 = vmatmul.msk.f32.gmra.mxu3 %vm2661_vm3, %v9099_v14 }
 0x4ae   : > { %v3290_v9 = vpop.f32.mrf.mxu1  ;;  %v4710_v25 = vpop.f32.mrf.mxu3 }
 0x4af   : > { %v3291_v48 = vadd.f32 %v8845_v44, %v3290_v9  ;;  %3886 = vrot.lane.b32.xlu2 %v9099_v14, %s6907_s15  ;;  %v2141_v42 = vpop.permute.xlu1 %2140 }
 0x4b0   : > { %v6474_v60 = vpop.permute.xlu0 %6473  ;;  %v2641_v55 = vsel %vm2564_vm1, %v8763_v62, %v2141_v42  ;;  %v2147_v7 = vpop.permute.xlu2 %2146 }
 0x4b1   : > { %v3438_v2 = vmax.f32 %v3291_v48, 0.0  ;;  %v6475_v46 = vunpack.i.l.bf16 %v6474_v60  ;;  %v2738_v0 = vsel %vm2661_vm3, %v2641_v55, %v2429_v58  ;;  %v6476_v37 = vunpack.i.h.bf16 %v6474_v60 }
 0x4b2   : > { %6087 = vmatmul.msk.f32.gmra.mxu1 %vm2774_vm2, %v2738_v0 }
 0x4b3   : > { %v9114_v36 = vmax.f32 %v3436_v10, %v3438_v2  ;;  %v4092_v59 = vsel %vm2661_vm3, %v8747_v63, %v6475_v46  ;;  %v4093_v60 = vsel %vm2661_vm3, %v8854_v53, %v6476_v37 }
 0x4b4   : > { %4489 = vmatmul.f32.gmra.mxu2 %v4092_v59 }
 0x4b5   : > { %3888 = vrot.lane.b32.xlu0 %v9114_v36, %s6907_s15  ;;  %v4477_v54 = vpop.f32.mrf.mxu2  ;;  %6187 = vmatmul.msk.f32.gmra.mxu3 %vm2661_vm3, %v9114_v36 }
 0x4b6   : > { %v3293_v62 = vpop.f32.mrf.mxu1 }
 0x4b7   : > { %v9125_v10 = vadd.f32 %v8845_v44, %v3293_v62  ;;  %v9127_v58 = vpop.f32.mrf.mxu3  ;;  %v2431_v9 = vpop.permute.xlu1 %2430 }
 0x4b8   : > { %v2143_v63 = vpop.permute.xlu0 %2142 }
 0x4b9   : > { %v3439_v23 = vmax.f32 %v9125_v10, 0.0  ;;  %v2642_v48 = vsel %vm2564_vm1, %v8777_v61, %v2143_v63  ;;  %v2149_v0 = vpop.permute.xlu2 %2148 }
 0x4ba   : > { %v2739_v42 = vsel %vm2661_vm3, %v2642_v48, %v2431_v9 }
 0x4bb   : > { %v9134_v25 = vmax.f32 %v3437_v19, %v3439_v23  ;;  %6088 = vmatmul.msk.f32.gmra.mxu1 %vm2774_vm2, %v2739_v42  ;;  %v6480_v19 = vunpack.i.l.bf16 %v9102_v51 }
 0x4bc   : > { %4492 = vmatmul.f32.gmra.mxu2 %v4093_v60 }
 0x4bd   : > { %3890 = vrot.lane.b32.xlu1 %v9134_v25, %s6907_s15  ;;  %v4479_v55 = vpop.f32.mrf.mxu2  ;;  %6188 = vmatmul.msk.f32.gmra.mxu3 %vm2661_vm3, %v9134_v25  ;;  %v4094_v48 = vsel %vm2661_vm3, %v8870_v35, %v6480_v19 }
 0x4be   : > { %v3296_v61 = vpop.f32.mrf.mxu1 }
 0x4bf   : > { %v9145_v46 = vadd.f32 %v8845_v44, %v3296_v61  ;;  %v4715_v59 = vpop.f32.mrf.mxu3  ;;  %v2433_v62 = vpop.permute.xlu1 %2432 }
 0x4c0   : > { %v2145_v53 = vpop.permute.xlu0 %2144  ;;  %v2645_v59 = vsel %vm2564_vm1, %v9749_v52, %v2149_v0  ;;  %v4961_v0 = vld [vmem:[#allocation11 + $0x370] sm:$0xff] }
 0x4c1   : > { %v3440_v54 = vmax.f32 %v9145_v46, 0.0  ;;  %v2643_v37 = vsel %vm2564_vm1, %v8787_v20, %v2145_v53  ;;  %v6481_v20 = vunpack.i.h.bf16 %v9102_v51  ;;  %v2439_v55 = vpop.permute.xlu2 %2438  ;;  %5277 = vmatpush.msrb.mxu2 %v4961_v0 }
 0x4c2   : > { %v2740_v63 = vsel %vm2661_vm3, %v2643_v37, %v2433_v62 }
 0x4c3   : > { %v9153_v9 = vmax.f32 %v3438_v2, %v3440_v54  ;;  %6089 = vmatmul.msk.f32.gmra.mxu1 %vm2774_vm2, %v2740_v63  ;;  %v2644_v2 = vsel %vm2564_vm1, %v9748_v22, %v2147_v7  ;;  %v4095_v35 = vsel %vm2661_vm3, %v8887_v30, %v6481_v20  ;;  %v4897_v63 = vld [vmem:[#allocation11 + $0x170] sm:$0xff] }
 0x4c4   : > { %4494 = vmatmul.f32.gmra.mxu2 %v4094_v48  ;;  %5237 = vmatpush.msrb.mxu3 %v4897_v63 }
 0x4c5   : > { %3892 = vrot.lane.b32.xlu2 %v9153_v9, %s6907_s15  ;;  %6189 = vmatmul.msk.f32.gmra.mxu3 %vm2661_vm3, %v9153_v9 }
 0x4c7   : > { %v4717_v42 = vpop.f32.mrf.mxu3 }
 0x4c8   : > { %v2435_v60 = vpop.permute.xlu0 %2434 }
 0x4c9   : > { %v2741_v61 = vsel %vm2661_vm3, %v2644_v2, %v2435_v60  ;;  %v2441_v22 = vpop.permute.xlu2 %2440  ;;  %v4929_v60 = vld [vmem:[#allocation11 + $0x270] sm:$0xff] }
 0x4ca   : > { %5257 = vmatpush.msrb.mxu1 %v4929_v60 }
 0x4cb   : > { %6090 = vmatmul.msk.f32.gmra.mxu1 %vm2774_vm2, %v2741_v61 }
 0x4cc   : > { %4496 = vmatmul.f32.gmra.mxu2 %v4095_v35 }
 0x4cf   : > { %v4719_v19 = vpop.f32.mrf.mxu3 }
 0x4d0   : > { %v6484_v62 = vpop.permute.xlu1 %6483  ;;  %v2437_v51 = vpop.permute.xlu0 %2436 }
 0x4d1   : > { %v6485_v53 = vunpack.i.l.bf16 %v6484_v62  ;;  %v2742_v37 = vsel %vm2661_vm3, %v2645_v59, %v2437_v51  ;;  %v6486_v30 = vunpack.i.h.bf16 %v6484_v62  ;;  %v2443_v61 = vpop.permute.xlu2 %2442 }
 0x4d3   : > { %6091 = vmatmul.msk.f32.gmra.mxu1 %vm2774_vm2, %v2742_v37  ;;  %v4096_v7 = vsel %vm2661_vm3, %v8903_v1, %v6485_v53  ;;  %v4097_v1 = vsel %vm2661_vm3, %v8918_v45, %v6486_v30 }
 0x4d4   : > { %4498 = vmatmul.f32.gmra.mxu2 %v4096_v7 }
 0x4d7   : > { %v9176_v48 = vpop.f32.mrf.mxu3 }
 0x4d8   : > { %v2151_v20 = vpop.permute.xlu1 %2150  ;;  %v3869_v42 = vpop.permute.xlu0 %3868 }
 0x4d9   : > { %v2646_v52 = vsel %vm2564_vm1, %v9750_v38, %v2151_v20  ;;  %v2445_v51 = vpop.permute.xlu2 %2444 }
 0x4da   : > { %v2743_v2 = vsel %vm2661_vm3, %v2646_v52, %v2439_v55  ;;  %v4098_v55 = vsel %vm2661_vm3, %v8934_v57, %v3869_v42 }
 0x4db   : > { %6092 = vmatmul.msk.f32.gmra.mxu1 %vm2774_vm2, %v2743_v2 }
 0x4dc   : > { %4501 = vmatmul.f32.gmra.mxu2 %v4097_v1 }
 0x4df   : > { %v4724_v35 = vpop.f32.mrf.mxu3 }
 0x4e0   : > { %v2153_v19 = vpop.permute.xlu1 %2152  ;;  %v3871_v59 = vpop.permute.xlu0 %3870 }
 0x4e1   : > { %v2647_v62 = vsel %vm2564_vm1, %v9751_v27, %v2153_v19  ;;  %v4099_v27 = vsel %vm2661_vm3, %v8943_v4, %v3871_v59  ;;  %v2447_v20 = vpop.permute.xlu2 %2446 }
 0x4e2   : > { %v2744_v38 = vsel %vm2661_vm3, %v2647_v62, %v2441_v22 }
 0x4e3   : > { %6093 = vmatmul.msk.f32.gmra.mxu1 %vm2774_vm2, %v2744_v38 }
 0x4e4   : > { %4503 = vmatmul.f32.gmra.mxu2 %v4098_v55 }
 0x4e8   : > { %v4726_v45 = vpop.f32.mrf.mxu3  ;;  %v2155_v53 = vpop.permute.xlu1 %2154 }
 0x4e9   : > { %v3873_v37 = vpop.permute.xlu0 %3872  ;;  %v2648_v7 = vsel %vm2564_vm1, %v9752_v41, %v2155_v53  ;;  %v2449_v60 = vpop.permute.xlu2 %2448  ;;  %v4895_v45 = vld [vmem:[#allocation11 + $0x160] sm:$0xff] }
 0x4ea   : > { %v2745_v63 = vsel %vm2661_vm3, %v2648_v7, %v2443_v61  ;;  %v4100_v41 = vsel %vm2661_vm3, %v8955_v33, %v3873_v37  ;;  %5238 = vmatpush.msrb.mxu3 %v4895_v45 }
 0x4eb   : > { %6094 = vmatmul.msk.f32.gmra.mxu1 %vm2774_vm2, %v2745_v63 }
 0x4ec   : > { %4505 = vmatmul.f32.gmra.mxu2 %v4099_v27 }
 0x4f0   : > { %v4728_v22 = vpop.f32.mrf.mxu3  ;;  %v2157_v30 = vpop.permute.xlu1 %2156 }
 0x4f1   : > { %v2649_v57 = vsel %vm2564_vm1, %v9753_v6, %v2157_v30  ;;  %v3875_v42 = vpop.permute.xlu0 %3874  ;;  %v2163_v53 = vpop.permute.xlu2 %2162 }
 0x4f2   : > { %v2746_v52 = vsel %vm2661_vm3, %v2649_v57, %v2445_v51  ;;  %v4101_v6 = vsel %vm2661_vm3, %v8964_v5, %v3875_v42 }
 0x4f3   : > { %6095 = vmatmul.msk.f32.gmra.mxu1 %vm2774_vm2, %v2746_v52  ;;  %v4959_v52 = vld [vmem:[#allocation11 + $0x360] sm:$0xff] }
 0x4f4   : > { %4507 = vmatmul.f32.gmra.mxu2 %v4100_v41  ;;  %v4927_v41 = vld [vmem:[#allocation11 + $0x260] sm:$0xff] }
 0x4f5   : > { %5278 = vmatpush.msrb.mxu2 %v4959_v52  ;;  %5258 = vmatpush.msrb.mxu1 %v4927_v41  ;;  %v9283_v52 = vld [vmem:[#allocation7] ss:$0 sm:$0xff] }
 0x4f8   : > { %v9202_v0 = vpop.f32.mrf.mxu3  ;;  %v2159_v2 = vpop.permute.xlu1 %2158 }
 0x4f9   : > { %v2650_v4 = vsel %vm2564_vm1, %v9754_v13, %v2159_v2  ;;  %v3877_v61 = vpop.permute.xlu0 %3876 }
 0x4fa   : > { %v2747_v1 = vsel %vm2661_vm3, %v2650_v4, %v2447_v20  ;;  %v4102_v5 = vsel %vm2661_vm3, %v8976_v16, %v3877_v61 }
 0x4fb   : > { %6096 = vmatmul.msk.f32.gmra.mxu1 %vm2774_vm2, %v2747_v1 }
 0x4fc   : > { %4510 = vmatmul.f32.gmra.mxu2 %v4101_v6 }
 0x4fe   : > { %v9210_v35 = vpop.f32.mrf.mxu2 }
 0x4ff   : > { %v3299_v19 = vpop.f32.mrf.mxu1 }
 0x500   : > { %v4733_v33 = vpop.f32.mrf.mxu3  ;;  %v2161_v59 = vpop.permute.xlu1 %2160  ;;  %v9213_v62 = vadd.f32 %v8845_v44, %v3299_v19 }
 0x501   : > { %v2651_v13 = vsel %vm2564_vm1, %v9755_v26, %v2161_v59  ;;  %v3879_v37 = vpop.permute.xlu0 %3878  ;;  %v6494_v42 = vpop.permute.xlu2 %6493 }
 0x502   : > { %v3441_v38 = vmax.f32 %v9213_v62, 0.0  ;;  %v2748_v55 = vsel %vm2661_vm3, %v2651_v13, %v2449_v60  ;;  %v4103_v20 = vsel %vm2661_vm3, %v8989_v8, %v3879_v37  ;;  %v6495_v8 = vunpack.i.l.bf16 %v6494_v42 }
 0x503   : > { %6097 = vmatmul.msk.f32.gmra.mxu1 %vm2774_vm2, %v2748_v55  ;;  %v6496_v62 = vunpack.i.h.bf16 %v6494_v42 }
 0x504   : > { %v9224_v51 = vmax.f32 %v3439_v23, %v3441_v38  ;;  %4512 = vmatmul.f32.gmra.mxu2 %v4102_v5  ;;  %v2652_v23 = vsel %vm2564_vm1, %v9756_v40, %v2163_v53 }
 0x505   : > { %v4106_v13 = vsel %vm2661_vm3, %v9030_v50, %v6496_v62 }
 0x506   : > { %3894 = vrot.lane.b32.xlu0 %v9224_v51, %s6907_s15  ;;  %v4484_v26 = vpop.f32.mrf.mxu2  ;;  %6190 = vmatmul.msk.f32.gmra.mxu3 %vm2661_vm3, %v9224_v51 }
 0x507   : > { %v3302_v63 = vpop.f32.mrf.mxu1 }
 0x508   : > { %v4735_v7 = vpop.f32.mrf.mxu3  ;;  %v3303_v16 = vadd.f32 %v8845_v44, %v3302_v63 }
 0x509   : > { %v6489_v27 = vpop.permute.xlu1 %6488  ;;  %v3887_v55 = vpop.permute.xlu2 %3886 }
 0x50a   : > { %v6491_v10 = vunpack.i.h.bf16 %v6489_v27  ;;  %v3442_v22 = vmax.f32 %v3303_v16, 0.0  ;;  %v6490_v40 = vunpack.i.l.bf16 %v6489_v27  ;;  %v4107_v26 = vsel %vm2661_vm3, %v9049_v15, %v3887_v55 }
 0x50c   : > { %v2749_v30 = vsel %vm2661_vm3, %v2652_v23, %v6491_v10  ;;  %v9238_v57 = vmax.f32 %v3440_v54, %v3442_v22  ;;  %4514 = vmatmul.f32.gmra.mxu2 %v4103_v20  ;;  %v4104_v60 = vsel %vm2661_vm3, %v9003_v32, %v6490_v40  ;;  %v4957_v40 = vld [vmem:[#allocation11 + $0x350] sm:$0xff] }
 0x50d   : > { %6098 = vmatmul.msk.f32.gmra.mxu1 %vm2774_vm2, %v2749_v30  ;;  %5279 = vmatpush.msrb.mxu2 %v4957_v40 }
 0x50e   : > { %3896 = vrot.lane.b32.xlu1 %v9238_v57, %s6907_s15  ;;  %6191 = vmatmul.msk.f32.gmra.mxu3 %vm2661_vm3, %v9238_v57 }
 0x50f   : > { %v3883_v2 = vpop.permute.xlu0 %3882 }
 0x510   : > { %v4737_v4 = vpop.f32.mrf.mxu3 }
 0x511   : > { %v2165_v46 = vpop.permute.xlu1 %2164  ;;  %v4925_v4 = vld [vmem:[#allocation11 + $0x250] sm:$0xff] }
 0x512   : > { %v2653_v54 = vsel %vm2564_vm1, %v9757_v31, %v2165_v46  ;;  %v4105_v31 = vsel %vm2661_vm3, %v9014_v24, %v3883_v2  ;;  %5259 = vmatpush.msrb.mxu1 %v4925_v4 }
 0x513   : > { %v2750_v1 = vsel %vm2661_vm3, %v2653_v54, %v6495_v8 }
 0x514   : > { %4516 = vmatmul.f32.gmra.mxu2 %v4104_v60 }
 0x515   : > { %6099 = vmatmul.msk.f32.gmra.mxu1 %vm2774_vm2, %v2750_v1 }
 0x517   : > { %v2167_v6 = vpop.permute.xlu0 %2166 }
 0x518   : > { %v9251_v61 = vpop.f32.mrf.mxu3  ;;  %v2654_v33 = vsel %vm2564_vm1, %v9758_v34, %v2167_v6 }
 0x519   : > { %v2455_v19 = vpop.permute.xlu1 %2454 }
 0x51a   : > { %v2751_v59 = vsel %vm2661_vm3, %v2654_v33, %v2455_v19 }
 0x51c   : > { %4519 = vmatmul.f32.gmra.mxu2 %v4105_v31 }
 0x51d   : > { %6100 = vmatmul.msk.f32.gmra.mxu1 %vm2774_vm2, %v2751_v59 }
 0x51f   : > { %v3893_v8 = vpop.permute.xlu2 %3892 }
 0x520   : > { %v4742_v32 = vpop.f32.mrf.mxu3  ;;  %v4110_v6 = vsel %vm2661_vm3, %v9081_v49, %v3893_v8  ;;  %v5129_v8 = vld [vmem:[#allocation11 + $0x8b0] sm:$0xff] }
 0x524   : > { %4521 = vmatmul.f32.gmra.mxu2 %v4106_v13 }
 0x526   : > { %v4486_v5 = vpop.f32.mrf.mxu2 }
 0x527   : > { %v3305_v53 = vpop.f32.mrf.mxu1  ;;  %v3889_v7 = vpop.permute.xlu0 %3888 }
 0x528   : > { %v4744_v45 = vpop.f32.mrf.mxu3  ;;  %v3306_v34 = vadd.f32 %v8845_v44, %v3305_v53  ;;  %v4108_v23 = vsel %vm2661_vm3, %v9061_v43, %v3889_v7 }
 0x52a   : > { %v3443_v37 = vmax.f32 %v3306_v34, 0.0 }
 0x52c   : > { %4523 = vmatmul.f32.gmra.mxu2 %v4107_v26  ;;  %v9264_v24 = vmax.f32 %v3441_v38, %v3443_v37  ;;  %v4893_v38 = vld [vmem:[#allocation11 + $0x150] sm:$0xff] }
 0x52d   : > { %5239 = vmatpush.msrb.mxu3 %v4893_v38  ;;  %v5135_v38 = vld [vmem:[#allocation11 + $0x8e0] sm:$0xff] }
 0x52e   : > { %3898 = vrot.lane.b32.xlu2 %v9264_v24, %s6907_s15  ;;  %v4488_v63 = vpop.f32.mrf.mxu2  ;;  %6192 = vmatmul.msk.f32.gmra.mxu3 %vm2661_vm3, %v9264_v24 }
 0x52f   : > { %v3308_v27 = vpop.f32.mrf.mxu1  ;;  %v3891_v30 = vpop.permute.xlu1 %3890 }
 0x530   : > { %v4746_v50 = vpop.f32.mrf.mxu3  ;;  %v3309_v16 = vadd.f32 %v8845_v44, %v3308_v27  ;;  %v4109_v41 = vsel %vm2661_vm3, %v9072_v12, %v3891_v30 }
 0x532   : > { %v3444_v10 = vmax.f32 %v3309_v16, 0.0 }
 0x534   : > { %4525 = vmatmul.f32.gmra.mxu2 %v4108_v23  ;;  %v9273_v15 = vmax.f32 %v3442_v22, %v3444_v10 }
 0x536   : > { %3900 = vrot.lane.b32.xlu0 %v9273_v15, %s6907_s15  ;;  %6193 = vmatmul.msk.f32.gmra.mxu3 %vm2661_vm3, %v9273_v15 }
 0x537   : > { %v9277_v20 = vpop.f32.mrf.mxu2 }
 0x538   : > { %v9281_v42 = vpop.f32.mrf.mxu3  ;;  %v3311_v44 = vpop.f32.mrf.mxu1 }
 0x539   : > { %v3312_v43 = vadd.f32 %v9283_v52, %v3311_v44  ;;  %v4891_v44 = vld [vmem:[#allocation11 + $0x140] sm:$0xff] }
 0x53a   : > { %5240 = vmatpush.msrb.mxu3 %v4891_v44  ;;  %v5111_v44 = vld [vmem:[#allocation11 + $0x820] sm:$0xff] }
 0x53b   : > { %v3445_v22 = vmax.f32 %v3312_v43, 0.0  ;;  %v5133_v43 = vld [vmem:[#allocation11 + $0x8d0] sm:$0xff] }
 0x53c   : > { %4528 = vmatmul.f32.gmra.mxu2 %v4109_v41  ;;  %v5131_v41 = vld [vmem:[#allocation11 + $0x8c0] sm:$0xff] }
 0x53d   : > { %v9288_v2 = vmax.f32 %v3443_v37, %v3445_v22 }
 0x53f   : > { %3902 = vrot.lane.b32.xlu1 %v9288_v2, %s6907_s15  ;;  %v4493_v46 = vpop.f32.mrf.mxu2  ;;  %6194 = vmatmul.msk.f32.gmra.mxu3 %vm2661_vm3, %v9288_v2 }
 0x540   : > { %v4751_v54 = vpop.f32.mrf.mxu3  ;;  %v3314_v1 = vpop.f32.mrf.mxu1 }
 0x541   : > { %v3315_v60 = vadd.f32 %v9283_v52, %v3314_v1  ;;  %v5127_v54 = vld [vmem:[#allocation11 + $0x8a0] sm:$0xff] }
 0x543   : > { %v3446_v12 = vmax.f32 %v3315_v60, 0.0  ;;  %v4955_v60 = vld [vmem:[#allocation11 + $0x340] sm:$0xff] }
 0x544   : > { %4530 = vmatmul.f32.gmra.mxu2 %v4110_v6  ;;  %v5125_v6 = vld [vmem:[#allocation11 + $0x890] sm:$0xff] }
 0x545   : > { %v9297_v33 = vmax.f32 %v3444_v10, %v3446_v12  ;;  %v5137_v10 = vld [vmem:[#allocation11 + $0x8f0] sm:$0xff]  ;;  %5280 = vmatpush.msrb.mxu2 %v4955_v60 }
 0x546   : > { %5369 = vmatpush.msrb.mxu0 %v5137_v10 }
 0x547   : > { %3904 = vrot.lane.b32.xlu2 %v9297_v33, %s6907_s15  ;;  %v4495_v19 = vpop.f32.mrf.mxu2  ;;  %6195 = vmatmul.msk.f32.gmra.mxu3 %vm2661_vm3, %v9297_v33 }
 0x548   : > { %v4753_v59 = vpop.f32.mrf.mxu3  ;;  %v3317_v31 = vpop.f32.mrf.mxu1  ;;  %5370 = vmatpush.msrb.mxu0 %v5135_v38 }
 0x549   : > { %v3318_v62 = vadd.f32 %v9283_v52, %v3317_v31  ;;  %v5123_v31 = vld [vmem:[#allocation11 + $0x880] sm:$0xff] }
 0x54a   : > { %5371 = vmatpush.msrb.mxu0 %v5133_v43 }
 0x54b   : > { %v3447_v32 = vmax.f32 %v3318_v62, 0.0 }
 0x54c   : > { %5372 = vmatpush.msrb.mxu0 %v5131_v41 }
 0x54d   : > { %v9304_v13 = vmax.f32 %v3445_v22, %v3447_v32 }
 0x54e   : > { %5373 = vmatpush.msrb.mxu0 %v5129_v8  ;;  %v5107_v8 = vld [vmem:[#allocation11 + $0x800] sm:$0xff] }
 0x54f   : > { %3906 = vrot.lane.b32.xlu0 %v9304_v13, %s6907_s15  ;;  %v4497_v49 = vpop.f32.mrf.mxu2  ;;  %6196 = vmatmul.msk.f32.gmra.mxu3 %vm2661_vm3, %v9304_v13 }
 0x550   : > { %v3320_v55 = vpop.f32.mrf.mxu1  ;;  %5374 = vmatpush.msrb.mxu0 %v5127_v54 }
 0x551   : > { %v3321_v5 = vadd.f32 %v9283_v52, %v3320_v55 }
 0x552   : > { %5375 = vmatpush.msrb.mxu0 %v5125_v6 }
 0x553   : > { %v3448_v45 = vmax.f32 %v3321_v5, 0.0  ;;  %v5119_v5 = vld [vmem:[#allocation11 + $0x860] sm:$0xff] }
 0x554   : > { %5376 = vmatpush.msrb.mxu0 %v5123_v31  ;;  %v4908_v31 = vld [vmem:[#allocation11 + $0x1c8] sm:$0xff] }
 0x555   : > { %v9311_v53 = vmax.f32 %v3446_v12, %v3448_v45  ;;  %v4923_v12 = vld [vmem:[#allocation11 + $0x240] sm:$0xff] }
 0x556   : > { %5260 = vmatpush.msrb.mxu1 %v4923_v12  ;;  %v4912_v12 = vld [vmem:[#allocation11 + $0x1e8] sm:$0xff] }
 0x557   : > { %3908 = vrot.lane.b32.xlu1 %v9311_v53, %s6907_s15  ;;  %v9315_v34 = vpop.f32.mrf.mxu2  ;;  %6197 = vmatmul.msk.f32.gmra.mxu3 %vm2661_vm3, %v9311_v53 }
 0x558   : > { %v3323_v37 = vpop.f32.mrf.mxu1 }
 0x559   : > { %v3324_v26 = vadd.f32 %v9283_v52, %v3323_v37  ;;  %v5117_v37 = vld [vmem:[#allocation11 + $0x850] sm:$0xff] }
 0x55b   : > { %v3449_v7 = vmax.f32 %v3324_v26, 0.0 }
 0x55d   : > { %v9320_v63 = vmax.f32 %v3447_v32, %v3449_v7  ;;  %v5121_v32 = vld [vmem:[#allocation11 + $0x870] sm:$0xff] }
 0x55e   : > { %5377 = vmatpush.msrb.mxu0 %v5121_v32 }
 0x55f   : > { %3910 = vrot.lane.b32.xlu2 %v9320_v63, %s6907_s15  ;;  %v4502_v50 = vpop.f32.mrf.mxu2  ;;  %6198 = vmatmul.msk.f32.gmra.mxu3 %vm2661_vm3, %v9320_v63 }
 0x560   : > { %v3326_v27 = vpop.f32.mrf.mxu1  ;;  %5378 = vmatpush.msrb.mxu0 %v5119_v5  ;;  %v4906_v5 = vld [vmem:[#allocation11 + $0x1b8] sm:$0xff] }
 0x561   : > { %v3327_v16 = vadd.f32 %v9283_v52, %v3326_v27 }
 0x562   : > { %5379 = vmatpush.msrb.mxu0 %v5117_v37 }
 0x563   : > { %v3450_v23 = vmax.f32 %v3327_v16, 0.0  ;;  %v5115_v16 = vld [vmem:[#allocation11 + $0x840] sm:$0xff] }
 0x564   : > { %5380 = vmatpush.msrb.mxu0 %v5115_v16 }
 0x565   : > { %v9327_v30 = vmax.f32 %v3448_v45, %v3450_v23 }
 0x567   : > { %3912 = vrot.lane.b32.xlu0 %v9327_v30, %s6907_s15  ;;  %v4504_v22 = vpop.f32.mrf.mxu2  ;;  %6199 = vmatmul.msk.f32.gmra.mxu3 %vm2661_vm3, %v9327_v30 }
 0x568   : > { %v3329_v40 = vpop.f32.mrf.mxu1  ;;  %v5109_v22 = vld [vmem:[#allocation11 + $0x810] sm:$0xff] }
 0x569   : > { %v3330_v4 = vadd.f32 %v9283_v52, %v3329_v40 }
 0x56b   : > { %v3451_v46 = vmax.f32 %v3330_v4, 0.0 }
 0x56d   : > { %v9334_v1 = vmax.f32 %v3449_v7, %v3451_v46 }
 0x56f   : > { %3914 = vrot.lane.b32.xlu1 %v9334_v1, %s6907_s15  ;;  %v4506_v19 = vpop.f32.mrf.mxu2  ;;  %6200 = vmatmul.msk.f32.gmra.mxu3 %vm2661_vm3, %v9334_v1 }
 0x570   : > { %v3332_v59 = vpop.f32.mrf.mxu1  ;;  %v4910_v19 = vld [vmem:[#allocation11 + $0x1d8] sm:$0xff] }
 0x571   : > { %v3333_v62 = vadd.f32 %v9283_v52, %v3332_v59 }
 0x573   : > { %v3452_v49 = vmax.f32 %v3333_v62, 0.0 }
 0x575   : > { %v9341_v55 = vmax.f32 %v3450_v23, %v3452_v49  ;;  %v5113_v23 = vld [vmem:[#allocation11 + $0x830] sm:$0xff] }
 0x576   : > { %5381 = vmatpush.msrb.mxu0 %v5113_v23  ;;  %v4900_v23 = vld [vmem:[#allocation11 + $0x188] sm:$0xff] }
 0x577   : > { %3916 = vrot.lane.b32.xlu2 %v9341_v55, %s6907_s15  ;;  %v9345_v45 = vpop.f32.mrf.mxu2  ;;  %6201 = vmatmul.msk.f32.gmra.mxu3 %vm2661_vm3, %v9341_v55 }
 0x578   : > { %v3335_v26 = vpop.f32.mrf.mxu1  ;;  %v3895_v7 = vpop.permute.xlu0 %3894  ;;  %5382 = vmatpush.msrb.mxu0 %v5111_v44  ;;  %v4889_v44 = vld [vmem:[#allocation11 + $0x130] sm:$0xff] }
 0x579   : > { %v3336_v50 = vadd.f32 %v9283_v52, %v3335_v26  ;;  %v4111_v27 = vsel %vm2661_vm3, %v9099_v14, %v3895_v7  ;;  %v4904_v7 = vld [vmem:[#allocation11 + $0x1a8] sm:$0xff]  ;;  %5241 = vmatpush.msrb.mxu3 %v4889_v44 }
 0x57a   : > { %4532 = vmatmul.f32.gmra.mxu2 %v4111_v27  ;;  %5383 = vmatpush.msrb.mxu0 %v5109_v22  ;;  %v4902_v27 = vld [vmem:[#allocation11 + $0x198] sm:$0xff] }
 0x57b   : > { %v3453_v10 = vmax.f32 %v3336_v50, 0.0 }
 0x57c   : > { %5384 = vmatpush.msrb.mxu0 %v5107_v8 }
 0x57d   : > { %v9352_v38 = vmax.f32 %v3451_v46, %v3453_v10  ;;  %v4914_v46 = vld [vmem:[#allocation11 + $0x1f8] sm:$0xff] }
 0x57e   : > { %5449 = vmatpush.msra.mxu0 %v4914_v46  ;;  %v4892_v46 = vld [vmem:[#allocation11 + $0x148] sm:$0xff] }
 0x57f   : > { %3918 = vrot.lane.b32.xlu0 %v9352_v38, %s6907_s15  ;;  %v4511_v43 = vpop.f32.mrf.mxu2  ;;  %6202 = vmatmul.msk.f32.gmra.mxu3 %vm2661_vm3, %v9352_v38 }
 0x580   : > { %v3338_v41 = vpop.f32.mrf.mxu1  ;;  %v3897_v14 = vpop.permute.xlu1 %3896  ;;  %5450 = vmatpush.msra.mxu0 %v4912_v12  ;;  %v4890_v12 = vld [vmem:[#allocation11 + $0x138] sm:$0xff] }
 0x581   : > { %v3339_v40 = vadd.f32 %v9283_v52, %v3338_v41  ;;  %v4112_v4 = vsel %vm2661_vm3, %v9114_v36, %v3897_v14  ;;  %v4896_v41 = vld [vmem:[#allocation11 + $0x168] sm:$0xff] }
 0x582   : > { %4534 = vmatmul.f32.gmra.mxu2 %v4112_v4  ;;  %5451 = vmatpush.msra.mxu0 %v4910_v19  ;;  %v4953_v19 = vld [vmem:[#allocation11 + $0x330] sm:$0xff] }
 0x583   : > { %v3454_v54 = vmax.f32 %v3339_v40, 0.0  ;;  %v4894_v40 = vld [vmem:[#allocation11 + $0x158] sm:$0xff]  ;;  %5281 = vmatpush.msrb.mxu2 %v4953_v19  ;;  %v9762_v19 = vld [vmem:[#allocation43_spill] sm:$0xff] }
 0x584   : > { %5452 = vmatpush.msra.mxu0 %v4908_v31  ;;  %v4921_v31 = vld [vmem:[#allocation11 + $0x230] sm:$0xff] }
 0x585   : > { %v9361_v60 = vmax.f32 %v3452_v49, %v3454_v54  ;;  %5261 = vmatpush.msrb.mxu1 %v4921_v31  ;;  %v5042_v31 = vld [vmem:[#allocation11 + $0x5f8] sm:$0xff] }
 0x586   : > { %5453 = vmatpush.msra.mxu0 %v4906_v5 }
 0x587   : > { %3920 = vrot.lane.b32.xlu1 %v9361_v60, %s6907_s15  ;;  %v4513_v6 = vpop.f32.mrf.mxu2  ;;  %6203 = vmatmul.msk.f32.gmra.mxu3 %vm2661_vm3, %v9361_v60 }
 0x588   : > { %v3899_v36 = vpop.permute.xlu2 %3898  ;;  %5454 = vmatpush.msra.mxu0 %v4904_v7 }
 0x589   : > { %v4755_v32 = vpop.f32.mrf.mxu3  ;;  %v4113_v49 = vsel %vm2661_vm3, %v9134_v25, %v3899_v36 }
 0x58a   : > { %v3341_v59 = vpop.f32.mrf.mxu1  ;;  %4537 = vmatmul.f32.gmra.mxu2 %v4113_v49  ;;  %5455 = vmatpush.msra.mxu0 %v4902_v27 }
 0x58b   : > { %v3342_v62 = vadd.f32 %v9283_v52, %v3341_v59  ;;  %v4888_v59 = vld [vmem:[#allocation11 + $0x128] sm:$0xff] }
 0x58c   : > { %5456 = vmatpush.msra.mxu0 %v4900_v23 }
 0x58d   : > { %v3455_v37 = vmax.f32 %v3342_v62, 0.0  ;;  %v4884_v62 = vld [vmem:[#allocation11 + $0x108] sm:$0xff] }
 0x58f   : > { %v9370_v26 = vmax.f32 %v3453_v10, %v3455_v37  ;;  %v4515_v50 = vpop.f32.mrf.mxu2  ;;  %v4898_v10 = vld [vmem:[#allocation11 + $0x178] sm:$0xff] }
 0x590   : > { %5457 = vmatpush.msra.mxu0 %v4898_v10 }
 0x591   : > { %3922 = vrot.lane.b32.xlu2 %v9370_v26, %s6907_s15  ;;  %6204 = vmatmul.msk.f32.gmra.mxu3 %vm2661_vm3, %v9370_v26  ;;  %v4757_v5 = vpop.f32.mrf.mxu3 }
 0x592   : > { %v3344_v16 = vpop.f32.mrf.mxu1  ;;  %5458 = vmatpush.msra.mxu0 %v4896_v41  ;;  %v9759_v41 = vld [vmem:[#allocation29_spill] sm:$0xff] }
 0x593   : > { %v3345_v25 = vadd.f32 %v9283_v52, %v3344_v16 }
 0x594   : > { %5459 = vmatpush.msra.mxu0 %v4894_v40 }
 0x595   : > { %v3456_v43 = vmax.f32 %v3345_v25, 0.0 }
 0x596   : > { %5460 = vmatpush.msra.mxu0 %v4892_v46 }
 0x597   : > { %v9377_v22 = vmax.f32 %v3454_v54, %v3456_v43  ;;  %v4517_v14 = vpop.f32.mrf.mxu2 }
 0x598   : > { %5461 = vmatpush.msra.mxu0 %v4890_v12 }
 0x599   : > { %3928 = vrot.lane.b32.xlu2 %v6908_v11, %s6907_s15  ;;  %3924 = vrot.lane.b32.xlu0 %v9377_v22, %s6907_s15 }
 0x59a   : > { %6205 = vmatmul.msk.f32.gmra.mxu3 %vm2661_vm3, %v9377_v22  ;;  %v3347_v4 = vpop.f32.mrf.mxu1  ;;  %5462 = vmatpush.msra.mxu0 %v4888_v59 }
 0x59b   : > { %v3348_v8 = vadd.f32 %v9283_v52, %v3347_v4  ;;  %v4886_v52 = vld [vmem:[#allocation11 + $0x118] sm:$0xff] }
 0x59c   : > { %5463 = vmatpush.msra.mxu0 %v4886_v52 }
 0x59d   : > { %v3457_v54 = vmax.f32 %v3348_v8, 0.0  ;;  %v9761_v8 = vld [vmem:[#allocation36_spill] sm:$0xff] }
 0x59e   : > { %5464 = vmatpush.msra.mxu0 %v4884_v62  ;;  %v9763_v62 = vld [vmem:[#allocation42_spill] sm:$0xff] }
 0x59f   : > { %v9386_v6 = vmax.f32 %v3455_v37, %v3457_v54  ;;  %v4520_v36 = vpop.f32.mrf.mxu2 }
 0x5a1   : > { %6508 = vrot.lane.b32.xlu2 %v6908_v11, %s6907_s15  ;;  %6498 = vrot.lane.b32.xlu0 %v6908_v11, %s6907_s15  ;;  %v3905_v23 = vpop.permute.xlu2 %3904 }
 0x5a2   : > { %3926 = vrot.lane.b32.xlu1 %v9386_v6, %s6907_s15  ;;  %6206 = vmatmul.msk.f32.gmra.mxu3 %vm2661_vm3, %v9386_v6 }
 0x5a7   : > { %v4522_v32 = vpop.f32.mrf.mxu2 }
 0x5a8   : > { %v3901_v49 = vpop.permute.xlu0 %3900 }
 0x5a9   : > { %6513 = vrot.lane.b32.xlu0 %v6908_v11, %s6907_s15  ;;  %6518 = vrot.lane.b32.xlu2 %v6908_v11, %s6907_s15  ;;  %v4114_v37 = vsel %vm2661_vm3, %v9153_v9, %v3901_v49  ;;  %v9414_v9 = vld [vmem:[#allocation10] ss:$0 sm:$0xff] }
 0x5aa   : > { %6503 = vrot.lane.b32.xlu1 %v6908_v11, %s6906_s13  ;;  %4792 = vmatmul.f32.gmra.mxu3 %v6908_v11  ;;  %v4518_v25 = vadd.f32 %v9414_v9, %v4517_v14  ;;  %v4392_v46 = vadd.f32 %v9414_v9, %v9761_v8  ;;  %v9764_v49 = vld [vmem:[#allocation30_spill] sm:$0xff] }
 0x5ab   : > { %4539 = vmatmul.f32.gmra.mxu2 %v4114_v37 }
 0x5ac   : > { %v4749_v43 = vadd.f32 %v9281_v42, %v4518_v25  ;;  %v4116_v42 = vsel %vm2661_vm3, %v9238_v57, %v3905_v23  ;;  %v4623_v32 = vadd.f32 %v9763_v62, %v4392_v46  ;;  %v5040_v57 = vld [vmem:[#allocation11 + $0x5e8] sm:$0xff]  ;;  %v4885_v25 = vld [vmem:[#allocation11 + $0x110] sm:$0xff]  ;;  %v5030_v46 = vld [vmem:[#allocation11 + $0x598] sm:$0xff] }
 0x5ad   : > { %v5024_v62 = vld [vmem:[#allocation11 + $0x568] sm:$0xff] }
 0x5ae   : > { %v4834_v54 = vmax.f32 %v4749_v43, 0.0  ;;  %v4820_v23 = vmax.f32 %v4623_v32, 0.0  ;;  %v5035_v32 = vld [vmem:[#allocation11 + $0x5c0] sm:$0xff] }
 0x5af   : > { %v4524_v7 = vpop.f32.mrf.mxu2 }
 0x5b1   : > { %2174 = vrot.lane.b32.xlu0 %v6908_v11, %s6906_s13  ;;  %2176 = vrot.lane.b32.xlu2 %v6908_v11, %s6906_s13  ;;  %v3903_v50 = vpop.permute.xlu1 %3902  ;;  %v4760_v27 = vpop.f32.mrf.mxu3 }
 0x5b2   : > { %4795 = vmatmul.f32.gmra.mxu3 %v6908_v11  ;;  %2172 = vrot.lane.b32.xlu1 %v6908_v11, %s6906_s13  ;;  %v4115_v16 = vsel %vm2661_vm3, %v9224_v51, %v3903_v50  ;;  %v9760_v51 = vld [vmem:[#allocation45_spill] sm:$0xff] }
 0x5b3   : > { %4541 = vmatmul.f32.gmra.mxu2 %v4115_v16  ;;  %v4401_v14 = vadd.f32 %v9414_v9, %v9760_v51  ;;  %v5038_v27 = vld [vmem:[#allocation11 + $0x5d8] sm:$0xff]  ;;  %v4887_v16 = vld [vmem:[#allocation11 + $0x120] sm:$0xff] }
 0x5b4   : > { %5242 = vmatpush.msrb.mxu3 %v4887_v16  ;;  %v5029_v16 = vld [vmem:[#allocation11 + $0x590] sm:$0xff] }
 0x5b5   : > { %v4632_v36 = vadd.f32 %v9762_v19, %v4401_v14  ;;  %v4883_v14 = vld [vmem:[#allocation11 + $0x100] sm:$0xff]  ;;  %v5028_v19 = vld [vmem:[#allocation11 + $0x588] sm:$0xff] }
 0x5b6   : > { %5243 = vmatpush.msrb.mxu3 %v4885_v25 }
 0x5b7   : > { %v4526_v44 = vpop.f32.mrf.mxu2  ;;  %v4821_v37 = vmax.f32 %v4632_v36, 0.0  ;;  %v5037_v36 = vld [vmem:[#allocation11 + $0x5d0] sm:$0xff] }
 0x5b8   : > { %v4527_v10 = vadd.f32 %v9414_v9, %v4526_v44  ;;  %v5036_v44 = vld [vmem:[#allocation11 + $0x5c8] sm:$0xff]  ;;  %5244 = vmatpush.msrb.mxu3 %v4883_v14  ;;  %v5014_v14 = vld [vmem:[#allocation11 + $0x518] sm:$0xff] }
 0x5b9   : > { %2464 = vrot.lane.b32.xlu0 %v9759_v41, %s6907_s15  ;;  %2178 = vrot.lane.b32.xlu2 %v6908_v11, %s6906_s13  ;;  %v4762_v4 = vpop.f32.mrf.mxu3  ;;  %v9444_v43 = vmax.f32 %v4820_v23, %v4821_v37  ;;  %v5022_v37 = vld [vmem:[#allocation11 + $0x558] sm:$0xff]  ;;  %s5913_s13 = sshll.u32 %s515_s19, 3 }
 0x5ba   : > { %4797 = vmatmul.f32.gmra.mxu3 %v6908_v11  ;;  %6523 = vrot.lane.b32.xlu1 %v6908_v11, %s6907_s15  ;;  %v4758_v40 = vadd.f32 %v4757_v5, %v4527_v10  ;;  %v5034_v10 = vld [vmem:[#allocation11 + $0x5b8] sm:$0xff]  ;;  %v5041_v4 = vld [vmem:[#allocation11 + $0x5f0] sm:$0xff]  ;;  %s517_s28 = scalar_lea.vmem [#allocation17], %s5913_s13 }
 0x5bb   : > { %4543 = vmatmul.f32.gmra.mxu2 %v4116_v42  ;;  %5309 = vmatpush.msra.mxu3 %v5041_v4  ;;  %v5018_v23 = vld [vmem:[#allocation11 + $0x538] sm:$0xff]  ;;  %v5021_v4 = vld [vmem:[#allocation11 + $0x550] sm:$0xff]  ;;  %s5741_s29 = sshll.u32 %s517_s28, 4  ;;  %s5742_s29 = int_to_ptr.vmem [resolvable:$true] %s5741_s29 }
 0x5bc   : > { %v4835_v12 = vmax.f32 %v4758_v40, 0.0  ;;  %v4951_v40 = vld [vmem:[#allocation11 + $0x320] sm:$0xff] }
 0x5bd   : > { %5282 = vmatpush.msrb.mxu2 %v4951_v40 }
 0x5be   : > { %v9433_v59 = vmax.f32 %v4834_v54, %v4835_v12  ;;  %v5039_v54 = vld [vmem:[#allocation11 + $0x5e0] sm:$0xff] }
 0x5bf   : > { %v4529_v52 = vpop.f32.mrf.mxu2  ;;  %v4919_v12 = vld [vmem:[#allocation11 + $0x220] sm:$0xff]  ;;  %5310 = vmatpush.msra.mxu3 %v5039_v54 }
 0x5c0   : > { %5385 = vmatmul.f32.vlgmr.msrb.gmra.mxu0 %v9433_v59  ;;  %5262 = vmatpush.msrb.mxu1 %v4919_v12  ;;  %v3911_v52 = vpop.permute.xlu2 %3910 }
 0x5c1   : > { %2466 = vrot.lane.b32.xlu0 %v9764_v49, %s6907_s15  ;;  %5529 = vmatpush.msrb.mxu0 %v5042_v31  ;;  %v3907_v5 = vpop.permute.xlu0 %3906  ;;  %v5026_v31 = vld [vmem:[#allocation11 + $0x578] sm:$0xff]  ;;  %v4473_v49 = vadd.f32 %v9414_v9, %v9087_v56 }
 0x5c2   : > { %4799 = vmatmul.f32.gmra.mxu3 %v6908_v11  ;;  %v4764_v7 = vpop.f32.mrf.mxu3  ;;  %v4117_v50 = vsel %vm2661_vm3, %v9264_v24, %v3907_v5  ;;  %3942 = vrot.lane.b32.xlu1 %v6908_v11, %s6907_s15  ;;  %v5032_v24 = vld [vmem:[#allocation11 + $0x5a8] sm:$0xff]  ;;  %v4119_v5 = vsel %vm2661_vm3, %v9288_v2, %v3911_v52  ;;  %s6212_s15 = sshll.u32 %s6990_s21, 3 }
 0x5c3   : > { %5530 = vmatpush.msrb.mxu0 %v5040_v57  ;;  %4546 = vmatmul.f32.gmra.mxu2 %v4117_v50  ;;  %v5031_v7 = vld [vmem:[#allocation11 + $0x5a0] sm:$0xff]  ;;  %v4464_v50 = vadd.f32 %v9414_v9, %v9035_v21  ;;  %v4704_v25 = vadd.f32 %v9066_v17, %v4473_v49  ;;  %v5016_v2 = vld [vmem:[#allocation11 + $0x528] sm:$0xff]  ;;  %s5739_s23 = scalar_lea.hbm %s9650_s11, %s6212_s15 }
 0x5c4   : > { %5311 = vmatpush.msra.mxu3 %v5037_v36  ;;  %v5023_v17 = vld [vmem:[#allocation11 + $0x560] sm:$0xff]  ;;  %s5743_s25 = sshll.u32 %s5739_s23, 4  ;;  %s5744_s25 = int_to_ptr.hbm [resolvable:$true] %s5743_s25 }
 0x5c5   : > { %5531 = vmatpush.msrb.mxu0 %v5038_v27  ;;  %v5020_v27 = vld [vmem:[#allocation11 + $0x548] sm:$0xff]  ;;  %v4695_v56 = vadd.f32 %v8872_v39, %v4464_v50  ;;  %v4829_v21 = vmax.f32 %v4704_v25, 0.0  ;;  %v5015_v36 = vld [vmem:[#allocation11 + $0x520] sm:$0xff]  ;;  %v4917_v25 = vld [vmem:[#allocation11 + $0x210] sm:$0xff]  ;;  %s6823_s17 = sshra.s32 %s5744_s25, 4  ;;  %s6824_s17 = int_to_ptr.hbm [resolvable:$true] %s6823_s17 }
 0x5c6   : > { %5312 = vmatpush.msra.mxu3 %v5035_v32  ;;  %v5012_v39 = vld [vmem:[#allocation11 + $0x508] sm:$0xff]  ;;  %5263 = vmatpush.msrb.mxu1 %v4917_v25  ;;  %s6825_s21 = scalar_lea.hbm %s6824_s17, 8  ;;  %p6830_p3 = scmp.lt.s32.totalorder %s6824_s17, %s9650_s11 }
 0x5c7   : > { %5532 = vmatpush.msrb.mxu0 %v5036_v44  ;;  %v4531_v41 = vpop.f32.mrf.mxu2  ;;  %v5027_v44 = vld [vmem:[#allocation11 + $0x580] sm:$0xff]  ;;  %v4828_v40 = vmax.f32 %v4695_v56, 0.0  ;;  %p6826_p0 = scmp.ne.s32.totalorder %s6824_s17, %s6825_s21  ;;  %p6831_p4 = scmp.lt.s32.totalorder %s6829_s7, %s6825_s21 }
 0x5c8   : > { %5465 = vmatmul.f32.vlgmr.msra.gmra.mxu0 %v9444_v43  ;;  %v5025_v41 = vld [vmem:[#allocation11 + $0x570] sm:$0xff]  ;;  %v9765_v32 = vld [vmem:[#allocation31_spill] sm:$0xff]  ;;  %v9768_v56 = vld [vmem:[#allocation34_spill] sm:$0xff] }
 0x5c9   : > { %5533 = vmatpush.msrb.mxu0 %v5034_v10  ;;  %v3909_v51 = vpop.permute.xlu1 %3908  ;;  %p6827_p1 = pnand %p6826_p0, %p7007_p5  ;;  %p6832_p7 = por %p6831_p4, %p6830_p3 }
 0x5ca   : > { %4801 = vmatmul.f32.gmra.mxu3 %v6908_v11  ;;  %v9448_v42 = vpop.f32.mrf.mxu3  ;;  %v4118_v8 = vsel %vm2661_vm3, %v9273_v15, %v3909_v51  ;;  %v5033_v15 = vld [vmem:[#allocation11 + $0x5b0] sm:$0xff] }
 0x5cb   : > { %5534 = vmatpush.msrb.mxu0 %v5032_v24  ;;  %4548 = vmatmul.f32.gmra.mxu2 %v4118_v8  ;;  %v9464_v8 = vmax.f32 %v4828_v40, %v4829_v21  ;;  %v5163_v40 = vld [vmem:[#allocation11 + $0x9c0] sm:$0xff]  ;;  %p6828_p2 = pneg %p6827_p1 }
 0x5cc   : > { %5313 = vmatpush.msra.mxu3 %v5033_v15 }
 0x5cd   : > { %5535 = vmatpush.msrb.mxu0 %v5030_v46  ;;  %v5019_v46 = vld [vmem:[#allocation11 + $0x540] sm:$0xff]  ;;  %p6833_p8 = pnand %p6832_p7, %p6828_p2 }
 0x5ce   : > { %5314 = vmatpush.msra.mxu3 %v5031_v7 }
 0x5cf   : > { %5536 = vmatpush.msrb.mxu0 %v5028_v19  ;;  %v5017_v19 = vld [vmem:[#allocation11 + $0x530] sm:$0xff] }
 0x5d0   : > { %5315 = vmatpush.msra.mxu3 %v5029_v16 }
 0x5d1   : > { %5537 = vmatpush.msrb.mxu0 %v5026_v31  ;;  %v5013_v31 = vld [vmem:[#allocation11 + $0x510] sm:$0xff]  ;;  %v3917_v52 = vpop.permute.xlu2 %3916 }
 0x5d2   : > { %4803 = vmatmul.f32.gmra.mxu3 %v6908_v11  ;;  %v4769_v57 = vpop.f32.mrf.mxu3 }
 0x5d3   : > { %5538 = vmatpush.msrb.mxu0 %v5024_v62  ;;  %4550 = vmatmul.f32.gmra.mxu2 %v4119_v5  ;;  %v5011_v62 = vld [vmem:[#allocation11 + $0x500] sm:$0xff] }
 0x5d4   : > { %5316 = vmatpush.msra.mxu3 %v5027_v44 }
 0x5d5   : > { %5539 = vmatpush.msrb.mxu0 %v5022_v37  ;;  %v9767_v37 = vld [vmem:[#allocation33_spill] sm:$0xff] }
 0x5d6   : > { %5317 = vmatpush.msra.mxu3 %v5025_v41  ;;  %v5170_v41 = vld [vmem:[#allocation11 + $0x9f8] sm:$0xff] }
 0x5d7   : > { %5540 = vmatpush.msrb.mxu0 %v5020_v27 }
 0x5d8   : > { %5318 = vmatpush.msra.mxu3 %v5023_v17  ;;  %v5165_v17 = vld [vmem:[#allocation11 + $0x9d0] sm:$0xff] }
 0x5d9   : > { %5541 = vmatpush.msrb.mxu0 %v5018_v23  ;;  %v3913_v10 = vpop.permute.xlu0 %3912 }
 0x5da   : > { %4805 = vmatmul.f32.gmra.mxu3 %v6908_v11  ;;  %v4771_v24 = vpop.f32.mrf.mxu3  ;;  %v4120_v51 = vsel %vm2661_vm3, %v9297_v33, %v3913_v10  ;;  %v5169_v10 = vld [vmem:[#allocation11 + $0x9f0] sm:$0xff] }
 0x5db   : > { %5542 = vmatpush.msrb.mxu0 %v5016_v2  ;;  %4552 = vmatmul.f32.gmra.mxu2 %v4120_v51  ;;  %v5168_v51 = vld [vmem:[#allocation11 + $0x9e8] sm:$0xff] }
 0x5dc   : > { %5319 = vmatpush.msra.mxu3 %v5021_v4  ;;  %v5161_v4 = vld [vmem:[#allocation11 + $0x9b0] sm:$0xff] }
 0x5dd   : > { %5543 = vmatpush.msrb.mxu0 %v5014_v14 }
 0x5de   : > { %5320 = vmatpush.msra.mxu3 %v5019_v46  ;;  %v4915_v46 = vld [vmem:[#allocation11 + $0x200] sm:$0xff] }
 0x5df   : > { %5544 = vmatpush.msrb.mxu0 %v5012_v39  ;;  %5264 = vmatpush.msrb.mxu1 %v4915_v46 }
 0x5e0   : > { %5545 = vmatmul.f32.vlgmr.msrb.gmra.mxu0 %v9464_v8  ;;  %5321 = vmatpush.msra.mxu3 %v5017_v19  ;;  %v5071_v19 = vld [vmem:[#allocation11 + $0x6e0] sm:$0xff] }
 0x5e1   : > { %v3915_v33 = vpop.permute.xlu1 %3914  ;;  %5609 = vmatpush.msra.mxu0 %v5170_v41  ;;  %v4947_v41 = vld [vmem:[#allocation11 + $0x300] sm:$0xff] }
 0x5e2   : > { %4807 = vmatmul.f32.gmra.mxu3 %v6908_v11  ;;  %v4773_v54 = vpop.f32.mrf.mxu3  ;;  %v4121_v12 = vsel %vm2661_vm3, %v9304_v13, %v3915_v33  ;;  %v4122_v11 = vsel %vm2661_vm3, %v9311_v53, %v3917_v52  ;;  %v9766_v13 = vld [vmem:[#allocation32_spill] sm:$0xff] }
 0x5e3   : > { %4555 = vmatmul.f32.gmra.mxu2 %v4121_v12  ;;  %5322 = vmatpush.msra.mxu3 %v5015_v36  ;;  %v4949_v53 = vld [vmem:[#allocation11 + $0x310] sm:$0xff]  ;;  %v5162_v12 = vld [vmem:[#allocation11 + $0x9b8] sm:$0xff]  ;;  %v5160_v36 = vld [vmem:[#allocation11 + $0x9a8] sm:$0xff] }
 0x5e4   : > { %5283 = vmatpush.msrb.mxu2 %v4949_v53  ;;  %5610 = vmatpush.msra.mxu0 %v5168_v51  ;;  %v5073_v54 = vld [vmem:[#allocation11 + $0x6f0] sm:$0xff]  ;;  %v5150_v51 = vld [vmem:[#allocation11 + $0x958] sm:$0xff] }
 0x5e5   : > { %5323 = vmatpush.msra.mxu3 %v5013_v31  ;;  %5329 = vmatpush.msra.mxu1 %v5073_v54  ;;  %v5057_v54 = vld [vmem:[#allocation11 + $0x670] sm:$0xff] }
 0x5e6   : > { %5284 = vmatpush.msrb.mxu2 %v4947_v41 }
 0x5e7   : > { %5324 = vmatpush.msra.mxu3 %v5011_v62  ;;  %v5157_v62 = vld [vmem:[#allocation11 + $0x990] sm:$0xff]  ;;  %5330 = vmatpush.msra.mxu1 %v5071_v19  ;;  %v5143_v19 = vld [vmem:[#allocation11 + $0x920] sm:$0xff] }
 0x5ea   : > { %6207 = vmatmul.msk.f32.gmra.mxu3 %vm2661_vm3, %v9765_v32  ;;  %v9472_v15 = vpop.f32.mrf.mxu3 }
 0x5eb   : > { %4557 = vmatmul.f32.gmra.mxu2 %v4122_v11  ;;  %v3923_v23 = vpop.permute.xlu2 %3922  ;;  %v5069_v11 = vld [vmem:[#allocation11 + $0x6d0] sm:$0xff] }
 0x5ec   : > { %v4125_v2 = vsel %vm2661_vm3, %v9334_v1, %v3923_v23  ;;  %v5166_v1 = vld [vmem:[#allocation11 + $0x9d8] sm:$0xff]  ;;  %5331 = vmatpush.msra.mxu1 %v5069_v11 }
 0x5ed   : > { %5611 = vmatpush.msra.mxu0 %v5166_v1 }
 0x5f1   : > { %v3919_v49 = vpop.permute.xlu0 %3918 }
 0x5f2   : > { %6208 = vmatmul.msk.f32.gmra.mxu3 %vm2661_vm3, %v9766_v13  ;;  %v4778_v57 = vpop.f32.mrf.mxu3  ;;  %v4123_v5 = vsel %vm2661_vm3, %v9320_v63, %v3919_v49  ;;  %v5158_v13 = vld [vmem:[#allocation11 + $0x998] sm:$0xff]  ;;  %v5155_v49 = vld [vmem:[#allocation11 + $0x980] sm:$0xff] }
 0x5f3   : > { %4559 = vmatmul.f32.gmra.mxu2 %v4123_v5  ;;  %v3929_v33 = vpop.permute.xlu2 %3928  ;;  %v5067_v57 = vld [vmem:[#allocation11 + $0x6c0] sm:$0xff]  ;;  %v5156_v5 = vld [vmem:[#allocation11 + $0x988] sm:$0xff] }
 0x5f4   : > { %5332 = vmatpush.msra.mxu1 %v5067_v57  ;;  %v5099_v57 = vld [vmem:[#allocation11 + $0x7c0] sm:$0xff] }
 0x5f9   : > { %v3921_v7 = vpop.permute.xlu1 %3920 }
 0x5fa   : > { %6209 = vmatmul.msk.f32.gmra.mxu3 %vm2661_vm3, %v9767_v37  ;;  %v4780_v50 = vpop.f32.mrf.mxu3  ;;  %v4124_v27 = vsel %vm2661_vm3, %v9327_v30, %v3921_v7  ;;  %v5167_v30 = vld [vmem:[#allocation11 + $0x9e0] sm:$0xff]  ;;  %v5153_v37 = vld [vmem:[#allocation11 + $0x970] sm:$0xff] }
 0x5fb   : > { %4561 = vmatmul.f32.gmra.mxu2 %v4124_v27  ;;  %v5065_v7 = vld [vmem:[#allocation11 + $0x6b0] sm:$0xff]  ;;  %v5154_v50 = vld [vmem:[#allocation11 + $0x978] sm:$0xff]  ;;  %v5151_v27 = vld [vmem:[#allocation11 + $0x960] sm:$0xff]  ;;  %v9500_v53 = vpop.permute.xlu2 %6508 }
 0x5fc   : > { %5333 = vmatpush.msra.mxu1 %v5065_v7  ;;  %v6510_v25 = vunpack.i.l.bf16 %v9500_v53  ;;  %v5139_v7 = vld [vmem:[#allocation11 + $0x900] sm:$0xff] }
 0x5fd   : > { %v4533_v16 = vpop.f32.mrf.mxu2 }
 0x5fe   : > { %v5152_v16 = vld [vmem:[#allocation11 + $0x968] sm:$0xff] }
 0x602   : > { %6210 = vmatmul.msk.f32.gmra.mxu3 %vm2661_vm3, %v9768_v56  ;;  %v4782_v63 = vpop.f32.mrf.mxu3  ;;  %v5149_v56 = vld [vmem:[#allocation11 + $0x950] sm:$0xff] }
 0x603   : > { %4564 = vmatmul.f32.gmra.mxu2 %v4125_v2 }
 0x605   : > { %v9488_v44 = vpop.f32.mrf.mxu2 }
 0x60a   : > { %5245 = vmatmul.f32.vlgmr.msrb.gmra.mxu3 %v9444_v43  ;;  %v9491_v21 = vpop.f32.mrf.mxu3  ;;  %v5164_v43 = vld [vmem:[#allocation11 + $0x9c8] sm:$0xff] }
 0x60b   : > { %5389 = vmatpush.msrb.mxu3 %v5169_v10  ;;  %v3925_v24 = vpop.permute.xlu0 %3924  ;;  %5612 = vmatpush.msra.mxu0 %v5164_v43  ;;  %v4128_v10 = vsel %vm2661_vm3, %v9361_v60, %v3929_v33  ;;  %v5103_v60 = vld [vmem:[#allocation11 + $0x7e0] sm:$0xff] }
 0x60c   : > { %v4126_v14 = vsel %vm2661_vm3, %v9341_v55, %v3925_v24  ;;  %v5159_v55 = vld [vmem:[#allocation11 + $0x9a0] sm:$0xff] }
 0x60d   : > { %5390 = vmatpush.msrb.mxu3 %v5167_v30  ;;  %4566 = vmatmul.f32.gmra.mxu2 %v4126_v14  ;;  %v4538_v39 = vpop.f32.mrf.mxu2  ;;  %v5061_v30 = vld [vmem:[#allocation11 + $0x690] sm:$0xff]  ;;  %v5147_v24 = vld [vmem:[#allocation11 + $0x940] sm:$0xff] }
 0x60e   : > { %5613 = vmatpush.msra.mxu0 %v5162_v12  ;;  %v5105_v14 = vld [vmem:[#allocation11 + $0x7f0] sm:$0xff]  ;;  %v5148_v39 = vld [vmem:[#allocation11 + $0x948] sm:$0xff]  ;;  %v5146_v12 = vld [vmem:[#allocation11 + $0x938] sm:$0xff] }
 0x60f   : > { %5391 = vmatpush.msrb.mxu3 %v5165_v17  ;;  %5349 = vmatpush.msra.mxu2 %v5105_v14 }
 0x610   : > { %5614 = vmatpush.msra.mxu0 %v5160_v36  ;;  %v5101_v36 = vld [vmem:[#allocation11 + $0x7d0] sm:$0xff] }
 0x611   : > { %5392 = vmatpush.msrb.mxu3 %v5163_v40  ;;  %v5059_v40 = vld [vmem:[#allocation11 + $0x680] sm:$0xff]  ;;  %5350 = vmatpush.msra.mxu2 %v5103_v60  ;;  %v5045_v60 = vld [vmem:[#allocation11 + $0x610] sm:$0xff] }
 0x612   : > { %5325 = vmatmul.f32.vlgmr.msra.gmra.mxu3 %v9464_v8  ;;  %5615 = vmatpush.msra.mxu0 %v5158_v13 }
 0x613   : > { %5393 = vmatpush.msrb.mxu3 %v5161_v4  ;;  %v9498_v8 = vpop.permute.xlu0 %6498  ;;  %v5145_v4 = vld [vmem:[#allocation11 + $0x930] sm:$0xff]  ;;  %5351 = vmatpush.msra.mxu2 %v5101_v36  ;;  %v5087_v36 = vld [vmem:[#allocation11 + $0x760] sm:$0xff] }
 0x614   : > { %v3927_v31 = vpop.permute.xlu1 %3926  ;;  %v4787_v52 = vpop.f32.mrf.mxu3  ;;  %5616 = vmatpush.msra.mxu0 %v5156_v5  ;;  %v6500_v46 = vunpack.i.l.bf16 %v9498_v8  ;;  %v5053_v5 = vld [vmem:[#allocation11 + $0x650] sm:$0xff] }
 0x615   : > { %5394 = vmatpush.msrb.mxu3 %v5159_v55  ;;  %v4127_v32 = vsel %vm2661_vm3, %v9352_v38, %v3927_v31  ;;  %v5063_v38 = vld [vmem:[#allocation11 + $0x6a0] sm:$0xff]  ;;  %5352 = vmatpush.msra.mxu2 %v5099_v57 }
 0x616   : > { %4568 = vmatmul.f32.gmra.mxu2 %v4127_v32  ;;  %5617 = vmatpush.msra.mxu0 %v5154_v50  ;;  %v5055_v52 = vld [vmem:[#allocation11 + $0x660] sm:$0xff]  ;;  %v5144_v32 = vld [vmem:[#allocation11 + $0x928] sm:$0xff]  ;;  %v4129_v13 = vsel %vm2661_vm3, %v9370_v26, %v6500_v46  ;;  %v4946_v50 = vld [vmem:[#allocation11 + $0x2f8] sm:$0xff]  ;;  %v9517_v26 = vpop.permute.xlu2 %6518 }
 0x617   : > { %5395 = vmatpush.msrb.mxu3 %v5157_v62  ;;  %5334 = vmatpush.msra.mxu1 %v5063_v38  ;;  %v5141_v62 = vld [vmem:[#allocation11 + $0x910] sm:$0xff] }
 0x618   : > { %5618 = vmatpush.msra.mxu0 %v5152_v16  ;;  %v5097_v38 = vld [vmem:[#allocation11 + $0x7b0] sm:$0xff]  ;;  %v5051_v16 = vld [vmem:[#allocation11 + $0x640] sm:$0xff] }
 0x619   : > { %5396 = vmatpush.msrb.mxu3 %v5155_v49  ;;  %5335 = vmatpush.msra.mxu1 %v5061_v30  ;;  %v4942_v30 = vld [vmem:[#allocation11 + $0x2d8] sm:$0xff]  ;;  %v5089_v46 = vld [vmem:[#allocation11 + $0x770] sm:$0xff] }
 0x61a   : > { %5619 = vmatpush.msra.mxu0 %v5150_v51  ;;  %5353 = vmatpush.msra.mxu2 %v5097_v38  ;;  %v4926_v38 = vld [vmem:[#allocation11 + $0x258] sm:$0xff] }
 0x61b   : > { %5397 = vmatpush.msrb.mxu3 %v5153_v37  ;;  %v9508_v33 = vpop.permute.xlu0 %6513  ;;  %5336 = vmatpush.msra.mxu1 %v5059_v40  ;;  %v5091_v40 = vld [vmem:[#allocation11 + $0x780] sm:$0xff] }
 0x61c   : > { %v6504_v23 = vpop.permute.xlu1 %6503  ;;  %v6515_v55 = vunpack.i.l.bf16 %v9508_v33  ;;  %5620 = vmatpush.msra.mxu0 %v5148_v39 }
 0x61d   : > { %v6505_v63 = vunpack.i.l.bf16 %v6504_v23  ;;  %v4789_v2 = vpop.f32.mrf.mxu3  ;;  %5398 = vmatpush.msrb.mxu3 %v5151_v27  ;;  %v6506_v17 = vunpack.i.h.bf16 %v6504_v23  ;;  %5337 = vmatpush.msra.mxu1 %v5057_v54  ;;  %v5142_v27 = vld [vmem:[#allocation11 + $0x918] sm:$0xff]  ;;  %v4944_v23 = vld [vmem:[#allocation11 + $0x2e8] sm:$0xff]  ;;  %v6511_v54 = vunpack.i.h.bf16 %v9500_v53 }
 0x61e   : > { %4570 = vmatmul.f32.gmra.mxu2 %v4128_v10  ;;  %5621 = vmatpush.msra.mxu0 %v5146_v12  ;;  %v5095_v2 = vld [vmem:[#allocation11 + $0x7a0] sm:$0xff]  ;;  %v5049_v10 = vld [vmem:[#allocation11 + $0x630] sm:$0xff]  ;;  %v4936_v12 = vld [vmem:[#allocation11 + $0x2a8] sm:$0xff] }
 0x61f   : > { %v2655_v1 = vsel %vm2564_vm1, 0.0, %v6505_v63  ;;  %5399 = vmatpush.msrb.mxu3 %v5149_v56  ;;  %v2656_v31 = vsel %vm2564_vm1, 0.0, %v6506_v17  ;;  %5338 = vmatpush.msra.mxu1 %v5055_v52  ;;  %v5140_v56 = vld [vmem:[#allocation11 + $0x908] sm:$0xff]  ;;  %v6520_v63 = vunpack.i.l.bf16 %v9517_v26  ;;  %v4934_v52 = vld [vmem:[#allocation11 + $0x298] sm:$0xff]  ;;  %v4131_v53 = vsel %vm2661_vm3, %v9386_v6, %v6511_v54 }
 0x620   : > { %v2752_v43 = vsel %vm2661_vm3, %v2655_v1, %v6510_v25  ;;  %v2753_v37 = vsel %vm2661_vm3, %v2656_v31, %v6515_v55  ;;  %5622 = vmatpush.msra.mxu0 %v5144_v32  ;;  %v6501_v25 = vunpack.i.h.bf16 %v9498_v8  ;;  %v5093_v8 = vld [vmem:[#allocation11 + $0x790] sm:$0xff]  ;;  %v4940_v17 = vld [vmem:[#allocation11 + $0x2c8] sm:$0xff]  ;;  %5354 = vmatpush.msra.mxu2 %v5095_v2  ;;  %v5043_v55 = vld [vmem:[#allocation11 + $0x600] sm:$0xff] }
 0x621   : > { %6101 = vmatmul.msk.f32.gmra.mxu1 %vm2774_vm2, %v2752_v43  ;;  %5400 = vmatpush.msrb.mxu3 %v5147_v24  ;;  %v5047_v24 = vld [vmem:[#allocation11 + $0x620] sm:$0xff]  ;;  %v4938_v43 = vld [vmem:[#allocation11 + $0x2b8] sm:$0xff]  ;;  %v4924_v2 = vld [vmem:[#allocation11 + $0x248] sm:$0xff] }
 0x622   : > { %5339 = vmatpush.msra.mxu1 %v5053_v5  ;;  %5623 = vmatpush.msra.mxu0 %v5142_v27  ;;  %v4130_v14 = vsel %vm2661_vm3, %v9377_v22, %v6501_v25  ;;  %v4930_v5 = vld [vmem:[#allocation11 + $0x278] sm:$0xff]  ;;  %v5079_v27 = vld [vmem:[#allocation11 + $0x720] sm:$0xff]  ;;  %v6516_v25 = vunpack.i.h.bf16 %v9508_v33 }
 0x623   : > { %5401 = vmatpush.msrb.mxu3 %v5145_v4  ;;  %5355 = vmatpush.msra.mxu2 %v5093_v8  ;;  %v2175_v22 = vpop.permute.xlu0 %2174  ;;  %v4922_v8 = vld [vmem:[#allocation11 + $0x238] sm:$0xff] }
 0x624   : > { %v2173_v49 = vpop.permute.xlu1 %2172  ;;  %5340 = vmatpush.msra.mxu1 %v5051_v16  ;;  %5624 = vmatpush.msra.mxu0 %v5140_v56  ;;  %v2658_v31 = vsel %vm2564_vm1, 0.0, %v2175_v22  ;;  %v4536_v16 = vadd.f32 %v9414_v9, %v9488_v44  ;;  %v9771_v54 = vld [vmem:[#allocation50_spill] sm:$0xff] }
 0x625   : > { %v4791_v11 = vpop.f32.mrf.mxu3  ;;  %5402 = vmatpush.msrb.mxu3 %v5143_v19  ;;  %v2657_v41 = vsel %vm2564_vm1, 0.0, %v2173_v49  ;;  %5356 = vmatpush.msra.mxu2 %v5091_v40  ;;  %v5083_v49 = vld [vmem:[#allocation11 + $0x740] sm:$0xff]  ;;  %v9770_v40 = vld [vmem:[#allocation57_spill] sm:$0xff]  ;;  %v4410_v22 = vadd.f32 %v9414_v9, %v9771_v54 }
 0x626   : > { %4572 = vmatmul.f32.gmra.mxu2 %v4129_v13  ;;  %5341 = vmatpush.msra.mxu1 %v5049_v10  ;;  %v2754_v1 = vsel %vm2661_vm3, %v2657_v41, %v6520_v63  ;;  %v4932_v11 = vld [vmem:[#allocation11 + $0x288] sm:$0xff]  ;;  %v5075_v41 = vld [vmem:[#allocation11 + $0x700] sm:$0xff]  ;;  %v4500_v10 = vadd.f32 %v9414_v9, %v9315_v34 }
 0x627   : > { %5403 = vmatpush.msrb.mxu3 %v5141_v62  ;;  %5357 = vmatpush.msra.mxu2 %v5089_v46  ;;  %v5085_v62 = vld [vmem:[#allocation11 + $0x750] sm:$0xff]  ;;  %v4880_v34 = vld [vmem:[#allocation11 + $0xe8] sm:$0xff] }
 0x628   : > { %5342 = vmatpush.msra.mxu1 %v5047_v24  ;;  %v4767_v24 = vadd.f32 %v9448_v42, %v4536_v16  ;;  %v6521_v42 = vunpack.i.h.bf16 %v9517_v26 }
 0x629   : > { %6102 = vmatmul.msk.f32.gmra.mxu1 %vm2774_vm2, %v2753_v37  ;;  %5404 = vmatpush.msrb.mxu3 %v5139_v7  ;;  %v2177_v37 = vpop.permute.xlu2 %2176  ;;  %v5081_v7 = vld [vmem:[#allocation11 + $0x730] sm:$0xff] }
 0x62a   : > { %5343 = vmatpush.msra.mxu1 %v5045_v60  ;;  %5358 = vmatpush.msra.mxu2 %v5087_v36  ;;  %v2659_v56 = vsel %vm2564_vm1, 0.0, %v2177_v37  ;;  %v4836_v60 = vmax.f32 %v4767_v24, 0.0  ;;  %v4916_v36 = vld [vmem:[#allocation11 + $0x208] sm:$0xff] }
 0x62b   : > { %5469 = vmatpush.msra.mxu3 %v4946_v50  ;;  %v4928_v50 = vld [vmem:[#allocation11 + $0x268] sm:$0xff]  ;;  %v2465_v6 = vpop.permute.xlu0 %2464 }
 0x62c   : > { %v9527_v4 = vpop.permute.xlu1 %6523  ;;  %5344 = vmatpush.msra.mxu1 %v5043_v55  ;;  %5359 = vmatpush.msra.mxu2 %v5085_v62  ;;  %v2756_v44 = vsel %vm2661_vm3, %v2659_v56, %v2465_v6  ;;  %v5068_v6 = vld [vmem:[#allocation11 + $0x6c8] sm:$0xff] }
 0x62d   : > { %5470 = vmatpush.msra.mxu3 %v4944_v23  ;;  %v9522_v51 = vpop.f32.mrf.mxu3  ;;  %v6525_v19 = vunpack.i.l.bf16 %v9527_v4  ;;  %v5077_v23 = vld [vmem:[#allocation11 + $0x710] sm:$0xff]  ;;  %v6526_v37 = vunpack.i.h.bf16 %v9527_v4  ;;  %v4437_v4 = vadd.f32 %v9414_v9, %v8876_v18 }
 0x62e   : > { %4574 = vmatmul.f32.gmra.mxu2 %v4130_v14  ;;  %v4540_v39 = vpop.f32.mrf.mxu2  ;;  %v4920_v14 = vld [vmem:[#allocation11 + $0x228] sm:$0xff] }
 0x62f   : > { %5471 = vmatpush.msra.mxu3 %v4942_v30  ;;  %v2755_v13 = vsel %vm2661_vm3, %v2658_v31, %v6525_v19  ;;  %5360 = vmatpush.msra.mxu2 %v5083_v49  ;;  %v4419_v39 = vadd.f32 %v9414_v9, %v9770_v40  ;;  %v4668_v24 = vadd.f32 %v8759_v47, %v4437_v4  ;;  %v5058_v40 = vld [vmem:[#allocation11 + $0x678] sm:$0xff] }
 0x630   : > { %v4509_v47 = vadd.f32 %v9414_v9, %v9345_v45  ;;  %v4882_v45 = vld [vmem:[#allocation11 + $0xf8] sm:$0xff] }
 0x631   : > { %5472 = vmatpush.msra.mxu3 %v4940_v17  ;;  %6103 = vmatmul.msk.f32.gmra.mxu1 %vm2774_vm2, %v2754_v1  ;;  %v2179_v17 = vpop.permute.xlu2 %2178  ;;  %v5198_v4 = vld [vmem:[#allocation11 + $0xad8] sm:$0xff] }
 0x632   : > { %5361 = vmatpush.msra.mxu2 %v5081_v7 }
 0x633   : > { %5473 = vmatpush.msra.mxu3 %v4938_v43  ;;  %v4918_v43 = vld [vmem:[#allocation11 + $0x218] sm:$0xff]  ;;  %v2467_v55 = vpop.permute.xlu0 %2466 }
 0x634   : > { %5362 = vmatpush.msra.mxu2 %v5079_v27 }
 0x635   : > { %5474 = vmatpush.msra.mxu3 %v4936_v12  ;;  %v4796_v32 = vpop.f32.mrf.mxu3  ;;  %v2660_v12 = vsel %vm2564_vm1, 0.0, %v2179_v17 }
 0x636   : > { %4576 = vmatmul.f32.gmra.mxu2 %v4131_v53  ;;  %v4542_v57 = vpop.f32.mrf.mxu2  ;;  %v5074_v32 = vld [vmem:[#allocation11 + $0x6f8] sm:$0xff]  ;;  %v2757_v26 = vsel %vm2661_vm3, %v2660_v12, %v2467_v55  ;;  %v9773_v53 = vld [vmem:[#allocation44_spill] sm:$0xff]  ;;  %v5187_v55 = vld [vmem:[#allocation11 + $0xa80] sm:$0xff] }
 0x637   : > { %5475 = vmatpush.msra.mxu3 %v4934_v52  ;;  %5363 = vmatpush.msra.mxu2 %v5077_v23  ;;  %v4491_v57 = vadd.f32 %v9414_v9, %v9277_v20  ;;  %v5201_v23 = vld [vmem:[#allocation11 + $0xaf0] sm:$0xff]  ;;  %v5066_v20 = vld [vmem:[#allocation11 + $0x6b8] sm:$0xff] }
 0x639   : > { %5476 = vmatpush.msra.mxu3 %v4932_v11  ;;  %6104 = vmatmul.msk.f32.gmra.mxu1 %vm2774_vm2, %v2755_v13  ;;  %v4641_v11 = vadd.f32 %v9773_v53, %v4410_v22  ;;  %v5072_v13 = vld [vmem:[#allocation11 + $0x6e8] sm:$0xff]  ;;  %v4722_v16 = vadd.f32 %v9176_v48, %v4491_v57  ;;  %v5197_v48 = vld [vmem:[#allocation11 + $0xad0] sm:$0xff]  ;;  %v4740_v22 = vadd.f32 %v9251_v61, %v4509_v47  ;;  %v4878_v61 = vld [vmem:[#allocation11 + $0xd8] sm:$0xff] }
 0x63a   : > { %5364 = vmatpush.msra.mxu2 %v5075_v41  ;;  %v4876_v53 = vld [vmem:[#allocation11 + $0xc8] sm:$0xff]  ;;  %v4874_v57 = vld [vmem:[#allocation11 + $0xb8] sm:$0xff] }
 0x63b   : > { %5477 = vmatpush.msra.mxu3 %v4930_v5  ;;  %v5070_v5 = vld [vmem:[#allocation11 + $0x6d8] sm:$0xff]  ;;  %v4822_v7 = vmax.f32 %v4641_v11, 0.0  ;;  %v4831_v41 = vmax.f32 %v4722_v16, 0.0  ;;  %v5175_v16 = vld [vmem:[#allocation11 + $0xa20] sm:$0xff]  ;;  %v4856_v47 = vld [vmem:[#allocation11 + $0x28] sm:$0xff] }
 0x63c   : > { %v5046_v11 = vld [vmem:[#allocation11 + $0x618] sm:$0xff] }
 0x63d   : > { %5478 = vmatpush.msra.mxu3 %v4928_v50  ;;  %v4798_v63 = vpop.f32.mrf.mxu3  ;;  %v4482_v50 = vadd.f32 %v9414_v9, %v9210_v35  ;;  %v5199_v35 = vld [vmem:[#allocation11 + $0xae0] sm:$0xff] }
 0x63e   : > { %6116 = vmatmul.msk.f32.gmra.mxu2 %vm7820_vm4, %v6516_v25  ;;  %v4544_v30 = vpop.f32.mrf.mxu2  ;;  %v5064_v63 = vld [vmem:[#allocation11 + $0x6a8] sm:$0xff] }
 0x63f   : > { %5479 = vmatpush.msra.mxu3 %v4926_v38  ;;  %v4545_v33 = vadd.f32 %v9414_v9, %v4544_v30  ;;  %v4713_v56 = vadd.f32 %v9127_v58, %v4482_v50  ;;  %v5062_v30 = vld [vmem:[#allocation11 + $0x698] sm:$0xff]  ;;  %v5195_v58 = vld [vmem:[#allocation11 + $0xac0] sm:$0xff]  ;;  %v4872_v50 = vld [vmem:[#allocation11 + $0xa8] sm:$0xff] }
 0x641   : > { %5480 = vmatpush.msra.mxu3 %v4924_v2  ;;  %6105 = vmatmul.msk.f32.gmra.mxu1 %vm2774_vm2, %v2756_v44  ;;  %v4776_v1 = vadd.f32 %v9472_v15, %v4545_v33  ;;  %v9772_v15 = vld [vmem:[#allocation37_spill] sm:$0xff]  ;;  %v4428_v2 = vadd.f32 %v9414_v9, %v8696_v28  ;;  %v4830_v18 = vmax.f32 %v4713_v56, 0.0  ;;  %v5060_v33 = vld [vmem:[#allocation11 + $0x688] sm:$0xff] }
 0x642   : > { %v4650_v52 = vadd.f32 %v9772_v15, %v4419_v39  ;;  %v4825_v39 = vmax.f32 %v4668_v24, 0.0  ;;  %v5185_v9 = vld [vmem:[#allocation11 + $0xa70] sm:$0xff]  ;;  %v5050_v15 = vld [vmem:[#allocation11 + $0x638] sm:$0xff] }
 0x643   : > { %5481 = vmatpush.msra.mxu3 %v4922_v8  ;;  %v4837_v46 = vmax.f32 %v4776_v1, 0.0  ;;  %v3943_v8 = vpop.permute.xlu1 %3942  ;;  %v9575_v17 = vmax.f32 %v4830_v18, %v4831_v41  ;;  %v5193_v1 = vld [vmem:[#allocation11 + $0xab0] sm:$0xff]  ;;  %v4862_v24 = vld [vmem:[#allocation11 + $0x58] sm:$0xff]  ;;  %v4976_v18 = vld [vmem:[#allocation11 + $0x3e8] sm:$0xff] }
 0x644   : > { %v4823_v49 = vmax.f32 %v4650_v52, 0.0  ;;  %v4833_v52 = vmax.f32 %v4740_v22, 0.0  ;;  %v4966_v22 = vld [vmem:[#allocation11 + $0x398] sm:$0xff] }
 0x645   : > { %5482 = vmatpush.msra.mxu3 %v4920_v14  ;;  %v4800_v19 = vpop.f32.mrf.mxu3  ;;  %v4849_v31 = vmax.f32 %v4836_v60, %v4837_v46  ;;  %v4659_v14 = vadd.f32 %v8661_v3, %v4428_v2  ;;  %v5056_v60 = vld [vmem:[#allocation11 + $0x668] sm:$0xff]  ;;  %v5054_v46 = vld [vmem:[#allocation11 + $0x658] sm:$0xff] }
 0x646   : > { %6118 = vmatmul.msk.f32.gmra.mxu2 %vm7820_vm4, %v6521_v42  ;;  %v4547_v62 = vpop.f32.mrf.mxu2  ;;  %v4842_v38 = vmax.f32 %v4822_v7, %v4823_v49  ;;  %v5189_v42 = vld [vmem:[#allocation11 + $0xa90] sm:$0xff]  ;;  %v5052_v19 = vld [vmem:[#allocation11 + $0x648] sm:$0xff] }
 0x647   : > { %5483 = vmatpush.msra.mxu3 %v4918_v43  ;;  %5625 = vmatmul.f32.vlgmr.msra.gmra.mxu0 %v4849_v31  ;;  %v5191_v43 = vld [vmem:[#allocation11 + $0xaa0] sm:$0xff]  ;;  %v4824_v3 = vmax.f32 %v4659_v14, 0.0  ;;  %v5196_v2 = vld [vmem:[#allocation11 + $0xac8] sm:$0xff]  ;;  %v5190_v14 = vld [vmem:[#allocation11 + $0xa98] sm:$0xff] }
 0x648   : > { %5405 = vmatmul.f32.vlgmr.msrb.gmra.mxu3 %v4849_v31  ;;  %v5183_v62 = vld [vmem:[#allocation11 + $0xa60] sm:$0xff] }
 0x649   : > { %5484 = vmatpush.msra.mxu3 %v4916_v36  ;;  %6106 = vmatmul.msk.f32.gmra.mxu1 %vm2774_vm2, %v2757_v26  ;;  %v9584_v54 = vmax.f32 %v4824_v3, %v4825_v39  ;;  %v4731_v36 = vadd.f32 %v9202_v0, %v4500_v10  ;;  %v5181_v0 = vld [vmem:[#allocation11 + $0xa50] sm:$0xff]  ;;  %v4854_v3 = vld [vmem:[#allocation11 + $0x18] sm:$0xff]  ;;  %v4968_v10 = vld [vmem:[#allocation11 + $0x3a8] sm:$0xff] }
 0x64b   : > { %5549 = vmatpush.msrb.mxu3 %v5074_v32  ;;  %v5048_v32 = vld [vmem:[#allocation11 + $0x628] sm:$0xff]  ;;  %v4832_v26 = vmax.f32 %v4731_v36, 0.0  ;;  %v5010_v36 = vld [vmem:[#allocation11 + $0x4f8] sm:$0xff] }
 0x64d   : > { %5550 = vmatpush.msrb.mxu3 %v5072_v13  ;;  %v4802_v27 = vpop.f32.mrf.mxu3  ;;  %v9591_v13 = vmax.f32 %v4832_v26, %v4833_v52  ;;  %v5008_v52 = vld [vmem:[#allocation11 + $0x4e8] sm:$0xff]  ;;  %v5178_v26 = vld [vmem:[#allocation11 + $0xa38] sm:$0xff] }
 0x64e   : > { %6120 = vmatmul.msk.f32.gmra.mxu2 %vm7820_vm4, %v6526_v37  ;;  %v4549_v25 = vpop.f32.mrf.mxu2  ;;  %v5044_v37 = vld [vmem:[#allocation11 + $0x608] sm:$0xff]  ;;  %v5177_v27 = vld [vmem:[#allocation11 + $0xa30] sm:$0xff] }
 0x64f   : > { %5551 = vmatpush.msrb.mxu3 %v5070_v5  ;;  %v5179_v5 = vld [vmem:[#allocation11 + $0xa40] sm:$0xff]  ;;  %v5200_v25 = vld [vmem:[#allocation11 + $0xae8] sm:$0xff] }
 0x650   : > { %5485 = vmatmul.f32.vlgmr.msra.gmra.mxu3 %v4842_v38 }
 0x651   : > { %5552 = vmatpush.msrb.mxu3 %v5068_v6  ;;  %5265 = vmatmul.f32.vlgmr.msrb.gmra.mxu1 %v4842_v38  ;;  %v5202_v6 = vld [vmem:[#allocation11 + $0xaf8] sm:$0xff] }
 0x652   : > { %5409 = vmatpush.msrb.mxu1 %v5201_v23  ;;  %v4870_v38 = vld [vmem:[#allocation11 + $0x98] sm:$0xff]  ;;  %v4868_v23 = vld [vmem:[#allocation11 + $0x88] sm:$0xff] }
 0x653   : > { %5553 = vmatpush.msrb.mxu3 %v5066_v20  ;;  %v5173_v20 = vld [vmem:[#allocation11 + $0xa10] sm:$0xff] }
 0x654   : > { %5410 = vmatpush.msrb.mxu1 %v5199_v35  ;;  %v4866_v35 = vld [vmem:[#allocation11 + $0x78] sm:$0xff] }
 0x655   : > { %5554 = vmatpush.msrb.mxu3 %v5064_v63  ;;  %v4804_v44 = vpop.f32.mrf.mxu3  ;;  %v5171_v63 = vld [vmem:[#allocation11 + $0xa00] sm:$0xff] }
 0x656   : > { %5411 = vmatpush.msrb.mxu1 %v5197_v48  ;;  %6122 = vmatmul.msk.f32.gmra.mxu2 %vm7820_vm4, %v3943_v8  ;;  %v4551_v28 = vpop.f32.mrf.mxu2  ;;  %v4864_v48 = vld [vmem:[#allocation11 + $0x68] sm:$0xff]  ;;  %v5194_v8 = vld [vmem:[#allocation11 + $0xab8] sm:$0xff] }
 0x657   : > { %5555 = vmatpush.msrb.mxu3 %v5062_v30  ;;  %v4978_v30 = vld [vmem:[#allocation11 + $0x3f8] sm:$0xff]  ;;  %v5192_v44 = vld [vmem:[#allocation11 + $0xaa8] sm:$0xff] }
 0x658   : > { %5412 = vmatpush.msrb.mxu1 %v5195_v58  ;;  %v4860_v58 = vld [vmem:[#allocation11 + $0x48] sm:$0xff]  ;;  %v4858_v28 = vld [vmem:[#allocation11 + $0x38] sm:$0xff] }
 0x659   : > { %5556 = vmatpush.msrb.mxu3 %v5060_v33  ;;  %5345 = vmatmul.f32.vlgmr.msra.gmra.mxu1 %v9575_v17  ;;  %v4974_v33 = vld [vmem:[#allocation11 + $0x3d8] sm:$0xff] }
 0x65a   : > { %5413 = vmatpush.msrb.mxu1 %v5193_v1  ;;  %v4972_v1 = vld [vmem:[#allocation11 + $0x3c8] sm:$0xff] }
 0x65b   : > { %5557 = vmatpush.msrb.mxu3 %v5058_v40  ;;  %v5188_v40 = vld [vmem:[#allocation11 + $0xa88] sm:$0xff] }
 0x65c   : > { %5414 = vmatpush.msrb.mxu1 %v5191_v43  ;;  %v4970_v43 = vld [vmem:[#allocation11 + $0x3b8] sm:$0xff] }
 0x65d   : > { %5558 = vmatpush.msrb.mxu3 %v5056_v60  ;;  %v4806_v12 = vpop.f32.mrf.mxu3  ;;  %v5186_v60 = vld [vmem:[#allocation11 + $0xa78] sm:$0xff] }
 0x65e   : > { %5415 = vmatpush.msrb.mxu1 %v5189_v42  ;;  %5285 = vmatmul.f32.vlgmr.msrb.gmra.mxu2 %v9584_v54  ;;  %v9589_v31 = vpop.f32.mrf.mxu2  ;;  %v5184_v42 = vld [vmem:[#allocation11 + $0xa68] sm:$0xff]  ;;  %v6538_v12 = vld [vmem:[#allocation10] ss:$0 sm:$0xff] }
 0x65f   : > { %5559 = vmatpush.msrb.mxu3 %v5054_v46  ;;  %5429 = vmatpush.msrb.mxu2 %v4882_v45  ;;  %v4852_v46 = vld [vmem:[#allocation11 + $0x8] sm:$0xff]  ;;  %v4554_v45 = vadd.f32 %v6538_v12, %v9589_v31 }
 0x660   : > { %5416 = vmatpush.msrb.mxu1 %v5187_v55  ;;  %v5182_v55 = vld [vmem:[#allocation11 + $0xa58] sm:$0xff] }
 0x661   : > { %5560 = vmatpush.msrb.mxu3 %v5052_v19  ;;  %5430 = vmatpush.msrb.mxu2 %v4880_v34  ;;  %v4964_v34 = vld [vmem:[#allocation11 + $0x388] sm:$0xff] }
 0x662   : > { %5417 = vmatpush.msrb.mxu1 %v5185_v9  ;;  %v5180_v9 = vld [vmem:[#allocation11 + $0xa48] sm:$0xff] }
 0x663   : > { %5561 = vmatpush.msrb.mxu3 %v5050_v15  ;;  %5431 = vmatpush.msrb.mxu2 %v4878_v61  ;;  %v9774_v15 = vld [vmem:[#allocation41_spill] sm:$0xff] }
 0x664   : > { %5418 = vmatpush.msrb.mxu1 %v5183_v62  ;;  %v4962_v62 = vld [vmem:[#allocation11 + $0x378] sm:$0xff] }
 0x665   : > { %5562 = vmatpush.msrb.mxu3 %v5048_v32  ;;  %v4808_v49 = vpop.f32.mrf.mxu3  ;;  %5432 = vmatpush.msrb.mxu2 %v4876_v53  ;;  %v4785_v32 = vadd.f32 %v9491_v21, %v4554_v45  ;;  %v5006_v53 = vld [vmem:[#allocation11 + $0x4d8] sm:$0xff]  ;;  %v5132_v45 = vld [vmem:[#allocation11 + $0x8c8] sm:$0xff] }
 0x666   : > { %5419 = vmatpush.msrb.mxu1 %v5181_v0  ;;  %5365 = vmatmul.f32.vlgmr.msra.gmra.mxu2 %v9591_v13  ;;  %v4556_v7 = vpop.f32.mrf.mxu2  ;;  %v4960_v0 = vld [vmem:[#allocation11 + $0x368] sm:$0xff]  ;;  %v5174_v21 = vld [vmem:[#allocation11 + $0xa18] sm:$0xff] }
 0x667   : > { %5563 = vmatpush.msrb.mxu3 %v5046_v11  ;;  %5433 = vmatpush.msrb.mxu2 %v4874_v57  ;;  %v5176_v49 = vld [vmem:[#allocation11 + $0xa28] sm:$0xff] }
 0x668   : > { %5420 = vmatpush.msrb.mxu1 %v5179_v5  ;;  %v5004_v57 = vld [vmem:[#allocation11 + $0x4c8] sm:$0xff]  ;;  %v4958_v5 = vld [vmem:[#allocation11 + $0x358] sm:$0xff] }
 0x669   : > { %5564 = vmatpush.msrb.mxu3 %v5044_v37  ;;  %5434 = vmatpush.msrb.mxu2 %v4872_v50  ;;  %v4838_v37 = vmax.f32 %v4785_v32, 0.0  ;;  %v5076_v32 = vld [vmem:[#allocation11 + $0x708] sm:$0xff] }
 0x66a   : > { %5565 = vmatmul.f32.vlgmr.msrb.gmra.mxu3 %v9575_v17  ;;  %5421 = vmatpush.msrb.mxu1 %v5177_v27  ;;  %v5002_v27 = vld [vmem:[#allocation11 + $0x4b8] sm:$0xff] }
 0x66b   : > { %5629 = vmatpush.msra.mxu3 %v5202_v6  ;;  %5435 = vmatpush.msrb.mxu2 %v4870_v38  ;;  %v4956_v6 = vld [vmem:[#allocation11 + $0x348] sm:$0xff] }
 0x66c   : > { %5422 = vmatpush.msrb.mxu1 %v5175_v16  ;;  %v5172_v16 = vld [vmem:[#allocation11 + $0xa08] sm:$0xff] }
 0x66d   : > { %5630 = vmatpush.msra.mxu3 %v5200_v25  ;;  %v4810_v56 = vpop.f32.mrf.mxu3  ;;  %5436 = vmatpush.msrb.mxu2 %v4868_v23  ;;  %v4954_v23 = vld [vmem:[#allocation11 + $0x338] sm:$0xff] }
 0x66e   : > { %5423 = vmatpush.msrb.mxu1 %v5173_v20  ;;  %v4558_v41 = vpop.f32.mrf.mxu2  ;;  %v4998_v20 = vld [vmem:[#allocation11 + $0x498] sm:$0xff]  ;;  %v4996_v56 = vld [vmem:[#allocation11 + $0x488] sm:$0xff] }
 0x66f   : > { %5631 = vmatpush.msra.mxu3 %v5198_v4  ;;  %5437 = vmatpush.msrb.mxu2 %v4866_v35  ;;  %v4952_v4 = vld [vmem:[#allocation11 + $0x328] sm:$0xff]  ;;  %v4950_v35 = vld [vmem:[#allocation11 + $0x318] sm:$0xff] }
 0x670   : > { %5424 = vmatpush.msrb.mxu1 %v5171_v63  ;;  %v4994_v63 = vld [vmem:[#allocation11 + $0x478] sm:$0xff] }
 0x671   : > { %5632 = vmatpush.msra.mxu3 %v5196_v2  ;;  %5438 = vmatpush.msrb.mxu2 %v4864_v48  ;;  %v4948_v2 = vld [vmem:[#allocation11 + $0x308] sm:$0xff]  ;;  %v5106_v41 = vld [vmem:[#allocation11 + $0x7f8] sm:$0xff] }
 0x672   : > { %5489 = vmatpush.msra.mxu1 %v4978_v30  ;;  %v4992_v48 = vld [vmem:[#allocation11 + $0x468] sm:$0xff] }
 0x673   : > { %5633 = vmatpush.msra.mxu3 %v5194_v8  ;;  %5439 = vmatpush.msrb.mxu2 %v4862_v24  ;;  %v5104_v8 = vld [vmem:[#allocation11 + $0x7e8] sm:$0xff]  ;;  %v4990_v24 = vld [vmem:[#allocation11 + $0x458] sm:$0xff] }
 0x674   : > { %5490 = vmatpush.msra.mxu1 %v4976_v18  ;;  %v5102_v18 = vld [vmem:[#allocation11 + $0x7d8] sm:$0xff] }
 0x675   : > { %5634 = vmatpush.msra.mxu3 %v5192_v44  ;;  %v4812_v17 = vpop.f32.mrf.mxu3  ;;  %5440 = vmatpush.msrb.mxu2 %v4860_v58  ;;  %v4988_v44 = vld [vmem:[#allocation11 + $0x448] sm:$0xff] }
 0x676   : > { %5491 = vmatpush.msra.mxu1 %v4974_v33  ;;  %v4560_v39 = vpop.f32.mrf.mxu2  ;;  %v5100_v58 = vld [vmem:[#allocation11 + $0x7c8] sm:$0xff]  ;;  %v4986_v33 = vld [vmem:[#allocation11 + $0x438] sm:$0xff] }
 0x677   : > { %5635 = vmatpush.msra.mxu3 %v5190_v14  ;;  %5441 = vmatpush.msrb.mxu2 %v4858_v28  ;;  %v5098_v14 = vld [vmem:[#allocation11 + $0x7b8] sm:$0xff]  ;;  %v4984_v17 = vld [vmem:[#allocation11 + $0x428] sm:$0xff] }
 0x678   : > { %5492 = vmatpush.msra.mxu1 %v4972_v1  ;;  %v5096_v28 = vld [vmem:[#allocation11 + $0x7a8] sm:$0xff]  ;;  %v5094_v39 = vld [vmem:[#allocation11 + $0x798] sm:$0xff] }
 0x679   : > { %5636 = vmatpush.msra.mxu3 %v5188_v40  ;;  %5442 = vmatpush.msrb.mxu2 %v4856_v47  ;;  %v4982_v40 = vld [vmem:[#allocation11 + $0x418] sm:$0xff]  ;;  %v5092_v47 = vld [vmem:[#allocation11 + $0x788] sm:$0xff] }
 0x67a   : > { %5493 = vmatpush.msra.mxu1 %v4970_v43  ;;  %v5138_v43 = vld [vmem:[#allocation11 + $0x8f8] sm:$0xff] }
 0x67b   : > { %5637 = vmatpush.msra.mxu3 %v5186_v60  ;;  %5443 = vmatpush.msrb.mxu2 %v4854_v3  ;;  %v5090_v3 = vld [vmem:[#allocation11 + $0x778] sm:$0xff] }
 0x67c   : > { %5494 = vmatpush.msra.mxu1 %v4968_v10  ;;  %v5136_v10 = vld [vmem:[#allocation11 + $0x8e8] sm:$0xff] }
 0x67d   : > { %5638 = vmatpush.msra.mxu3 %v5184_v42  ;;  %v4814_v19 = vpop.f32.mrf.mxu3  ;;  %5444 = vmatpush.msrb.mxu2 %v4852_v46  ;;  %v5088_v42 = vld [vmem:[#allocation11 + $0x768] sm:$0xff]  ;;  %v5134_v46 = vld [vmem:[#allocation11 + $0x8d8] sm:$0xff] }
 0x67e   : > { %5495 = vmatpush.msra.mxu1 %v4966_v22  ;;  %5445 = vmatmul.f32.vlgmr.msrb.gmra.mxu2 %v9774_v15  ;;  %v4562_v61 = vpop.f32.mrf.mxu2  ;;  %v5130_v19 = vld [vmem:[#allocation11 + $0x8b8] sm:$0xff] }
 0x67f   : > { %5639 = vmatpush.msra.mxu3 %v5182_v55  ;;  %5509 = vmatpush.msra.mxu2 %v5010_v36  ;;  %v4563_v31 = vadd.f32 %v6538_v12, %v4562_v61  ;;  %v5086_v12 = vld [vmem:[#allocation11 + $0x758] sm:$0xff]  ;;  %v5084_v55 = vld [vmem:[#allocation11 + $0x748] sm:$0xff] }
 0x680   : > { %5496 = vmatpush.msra.mxu1 %v4964_v34  ;;  %v5082_v34 = vld [vmem:[#allocation11 + $0x738] sm:$0xff] }
 0x681   : > { %5640 = vmatpush.msra.mxu3 %v5180_v9  ;;  %5510 = vmatpush.msra.mxu2 %v5008_v52  ;;  %v4794_v11 = vadd.f32 %v9522_v51, %v4563_v31  ;;  %v5000_v51 = vld [vmem:[#allocation11 + $0x4a8] sm:$0xff]  ;;  %v5126_v15 = vld [vmem:[#allocation11 + $0x898] sm:$0xff] }
 0x682   : > { %5497 = vmatpush.msra.mxu1 %v4962_v62  ;;  %v5080_v9 = vld [vmem:[#allocation11 + $0x728] sm:$0xff]  ;;  %v5078_v61 = vld [vmem:[#allocation11 + $0x718] sm:$0xff] }
 0x683   : > { %5641 = vmatpush.msra.mxu3 %v5178_v26  ;;  %v4839_v7 = vmax.f32 %v4794_v11, 0.0  ;;  %5511 = vmatpush.msra.mxu2 %v5006_v53  ;;  %v5124_v62 = vld [vmem:[#allocation11 + $0x888] sm:$0xff]  ;;  %v5122_v31 = vld [vmem:[#allocation11 + $0x878] sm:$0xff] }
 0x684   : > { %5498 = vmatpush.msra.mxu1 %v4960_v0  ;;  %v5120_v53 = vld [vmem:[#allocation11 + $0x868] sm:$0xff]  ;;  %v5118_v0 = vld [vmem:[#allocation11 + $0x858] sm:$0xff] }
 0x685   : > { %5642 = vmatpush.msra.mxu3 %v5176_v49  ;;  %v4816_v50 = vpop.f32.mrf.mxu3  ;;  %v4850_v38 = vmax.f32 %v4838_v37, %v4839_v7  ;;  %5512 = vmatpush.msra.mxu2 %v5004_v57  ;;  %v5116_v49 = vld [vmem:[#allocation11 + $0x848] sm:$0xff]  ;;  %v5114_v57 = vld [vmem:[#allocation11 + $0x838] sm:$0xff] }
 0x686   : > { %5499 = vmatpush.msra.mxu1 %v4958_v5  ;;  %v4565_v25 = vpop.f32.mrf.mxu2  ;;  %v5112_v37 = vld [vmem:[#allocation11 + $0x828] sm:$0xff]  ;;  %v5110_v7 = vld [vmem:[#allocation11 + $0x818] sm:$0xff] }
 0x687   : > { %5643 = vmatpush.msra.mxu3 %v5174_v21  ;;  %5513 = vmatpush.msra.mxu2 %v5002_v27  ;;  %v5108_v50 = vld [vmem:[#allocation11 + $0x808] sm:$0xff] }
 0x688   : > { %5500 = vmatpush.msra.mxu1 %v4956_v6  ;;  %v5664_v25 = vld [vmem:[#allocation14 + $0x68] sm:$0xff] }
 0x689   : > { %5644 = vmatpush.msra.mxu3 %v5172_v16  ;;  %5425 = vmatmul.f32.vlgmr.msrb.gmra.mxu1 %v4850_v38  ;;  %v5666_v16 = vld [vmem:[#allocation14 + $0x78] sm:$0xff] }
 0x68a   : > { %5514 = vmatpush.msra.mxu2 %v5000_v51  ;;  %5501 = vmatpush.msra.mxu1 %v4954_v23  ;;  %v5665_v51 = vld [vmem:[#allocation14 + $0x70] sm:$0xff] }
 0x68b   : > { %5645 = vmatmul.f32.vlgmr.msra.gmra.mxu3 %v4850_v38 }
 0x68c   : > { %5515 = vmatpush.msra.mxu2 %v4998_v20  ;;  %5502 = vmatpush.msra.mxu1 %v4952_v4  ;;  %v5663_v20 = vld [vmem:[#allocation14 + $0x60] sm:$0xff]  ;;  %v5662_v4 = vld [vmem:[#allocation14 + $0x58] sm:$0xff] }
 0x68e   : > { %5516 = vmatpush.msra.mxu2 %v4996_v56  ;;  %5503 = vmatpush.msra.mxu1 %v4950_v35  ;;  %v5661_v56 = vld [vmem:[#allocation14 + $0x50] sm:$0xff]  ;;  %v5660_v35 = vld [vmem:[#allocation14 + $0x48] sm:$0xff] }
 0x690   : > { %5517 = vmatpush.msra.mxu2 %v4994_v63  ;;  %5504 = vmatpush.msra.mxu1 %v4948_v2  ;;  %v4567_v30 = vpop.f32.mrf.mxu2  ;;  %v5659_v63 = vld [vmem:[#allocation14 + $0x40] sm:$0xff] }
 0x691   : > { %5505 = vmatmul.f32.vlgmr.msra.gmra.mxu1 %v9584_v54  ;;  %v4980_v54 = vld [vmem:[#allocation11 + $0x408] sm:$0xff] }
 0x692   : > { %5569 = vmatpush.msrb.mxu1 %v5106_v41  ;;  %5518 = vmatpush.msra.mxu2 %v4992_v48  ;;  %v5657_v41 = vld [vmem:[#allocation14 + $0x30] sm:$0xff]  ;;  %v9603_v48 = vld [vmem:[#allocation13] sm:$0x3] }
 0x693   : > { %v5205_v30 = vperm.slane %v9603_v48, 0 }
 0x694   : > { %5570 = vmatpush.msrb.mxu1 %v5104_v8  ;;  %5519 = vmatpush.msra.mxu2 %v4990_v24  ;;  %v5656_v8 = vld [vmem:[#allocation14 + $0x28] sm:$0xff]  ;;  %v5226_v24 = vpop.f32.mrf.mxu0 }
 0x696   : > { %5571 = vmatpush.msrb.mxu1 %v5102_v18  ;;  %5520 = vmatpush.msra.mxu2 %v4988_v44  ;;  %v5655_v18 = vld [vmem:[#allocation14 + $0x20] sm:$0xff]  ;;  %v5654_v44 = vld [vmem:[#allocation14 + $0x18] sm:$0xff] }
 0x698   : > { %5572 = vmatpush.msrb.mxu1 %v5100_v58  ;;  %5521 = vmatpush.msra.mxu2 %v4986_v33  ;;  %v5246_v58 = vpop.f32.mrf.mxu3  ;;  %v5227_v33 = vadd.f32 %v5226_v24, %v5205_v30 }
 0x699   : > { %v4569_v1 = vpop.f32.mrf.mxu2 }
 0x69a   : > { %5573 = vmatpush.msrb.mxu1 %v5098_v14  ;;  %5522 = vmatpush.msra.mxu2 %v4984_v17  ;;  %v5247_v17 = vadd.f32 %v5246_v58, %v5227_v33  ;;  %v5652_v1 = vld [vmem:[#allocation14 + $0x8] sm:$0xff]  ;;  %v6530_v33 = vld [vmem:[#allocation16] ss:$0 sm:$0xff] }
 0x69c   : > { %5574 = vmatpush.msrb.mxu1 %v5096_v28  ;;  %5523 = vmatpush.msra.mxu2 %v4982_v40  ;;  %v5653_v28 = vld [vmem:[#allocation14 + $0x10] sm:$0xff] }
 0x69e   : > { %5575 = vmatpush.msrb.mxu1 %v5094_v39  ;;  %5524 = vmatpush.msra.mxu2 %v4980_v54  ;;  %v3350_v60 = vpop.f32.mrf.mxu1  ;;  %v5651_v54 = vld [vmem:[#allocation14] sm:$0xff] }
 0x69f   : > { %5525 = vmatmul.f32.vlgmr.msra.gmra.mxu2 %v8991_v29  ;;  %v5128_v29 = vld [vmem:[#allocation11 + $0x8a8] sm:$0xff] }
 0x6a0   : > { %5576 = vmatpush.msrb.mxu1 %v5092_v47  ;;  %5589 = vmatpush.msrb.mxu2 %v5138_v43  ;;  %v5306_v43 = vpop.f32.mrf.mxu0 }
 0x6a1   : > { %v4571_v22 = vpop.f32.mrf.mxu2 }
 0x6a2   : > { %5577 = vmatpush.msrb.mxu1 %v5090_v3  ;;  %5590 = vmatpush.msrb.mxu2 %v5136_v10  ;;  %v5326_v3 = vpop.f32.mrf.mxu3 }
 0x6a4   : > { %5578 = vmatpush.msrb.mxu1 %v5088_v42  ;;  %5591 = vmatpush.msrb.mxu2 %v5134_v46 }
 0x6a6   : > { %5579 = vmatpush.msrb.mxu1 %v5086_v12  ;;  %5592 = vmatpush.msrb.mxu2 %v5132_v45  ;;  %v3353_v36 = vpop.f32.mrf.mxu1 }
 0x6a8   : > { %5580 = vmatpush.msrb.mxu1 %v5084_v55  ;;  %5593 = vmatpush.msrb.mxu2 %v5130_v19  ;;  %v5386_v45 = vpop.f32.mrf.mxu0 }
 0x6a9   : > { %v4573_v52 = vpop.f32.mrf.mxu2 }
 0x6aa   : > { %5581 = vmatpush.msrb.mxu1 %v5082_v34  ;;  %5594 = vmatpush.msrb.mxu2 %v5128_v29  ;;  %v5682_v34 = vld [vmem:[#allocation14 + $0xf8] sm:$0xff]  ;;  %v5681_v29 = vld [vmem:[#allocation14 + $0xf0] sm:$0xff] }
 0x6ac   : > { %5582 = vmatpush.msrb.mxu1 %v5080_v9  ;;  %5595 = vmatpush.msrb.mxu2 %v5126_v15 }
 0x6ae   : > { %5583 = vmatpush.msrb.mxu1 %v5078_v61  ;;  %5596 = vmatpush.msrb.mxu2 %v5124_v62  ;;  %v3356_v26 = vpop.f32.mrf.mxu1  ;;  %v5680_v61 = vld [vmem:[#allocation14 + $0xe8] sm:$0xff]  ;;  %v5679_v62 = vld [vmem:[#allocation14 + $0xe0] sm:$0xff] }
 0x6af   : > { %v5676_v26 = vld [vmem:[#allocation14 + $0xc8] sm:$0xff] }
 0x6b0   : > { %5584 = vmatpush.msrb.mxu1 %v5076_v32  ;;  %5597 = vmatpush.msrb.mxu2 %v5122_v31  ;;  %v5678_v32 = vld [vmem:[#allocation14 + $0xd8] sm:$0xff]  ;;  %v5677_v31 = vld [vmem:[#allocation14 + $0xd0] sm:$0xff] }
 0x6b1   : > { %5585 = vmatmul.f32.vlgmr.msrb.gmra.mxu1 %v9591_v13  ;;  %v4575_v11 = vpop.f32.mrf.mxu2 }
 0x6b2   : > { %5598 = vmatpush.msrb.mxu2 %v5120_v53  ;;  %5687 = vmatpush.msra.mxu1 %v5666_v16  ;;  %v5675_v53 = vld [vmem:[#allocation14 + $0xc0] sm:$0xff]  ;;  %v5673_v11 = vld [vmem:[#allocation14 + $0xb0] sm:$0xff] }
 0x6b4   : > { %5599 = vmatpush.msrb.mxu2 %v5118_v0  ;;  %5688 = vmatpush.msra.mxu1 %v5665_v51  ;;  %v5674_v0 = vld [vmem:[#allocation14 + $0xb8] sm:$0xff] }
 0x6b6   : > { %5600 = vmatpush.msrb.mxu2 %v5116_v49  ;;  %v3359_v5 = vpop.f32.mrf.mxu1  ;;  %5689 = vmatpush.msra.mxu1 %v5664_v25  ;;  %v5672_v49 = vld [vmem:[#allocation14 + $0xa8] sm:$0xff] }
 0x6b7   : > { %v5670_v5 = vld [vmem:[#allocation14 + $0x98] sm:$0xff] }
 0x6b8   : > { %5601 = vmatpush.msrb.mxu2 %v5114_v57  ;;  %5690 = vmatpush.msra.mxu1 %v5663_v20  ;;  %v5671_v57 = vld [vmem:[#allocation14 + $0xa0] sm:$0xff] }
 0x6b9   : > { %v4577_v21 = vpop.f32.mrf.mxu2 }
 0x6ba   : > { %5602 = vmatpush.msrb.mxu2 %v5112_v37  ;;  %5691 = vmatpush.msra.mxu1 %v5662_v4  ;;  %v5669_v37 = vld [vmem:[#allocation14 + $0x90] sm:$0xff]  ;;  %v5668_v21 = vld [vmem:[#allocation14 + $0x88] sm:$0xff] }
 0x6bc   : > { %5603 = vmatpush.msrb.mxu2 %v5110_v7  ;;  %5692 = vmatpush.msra.mxu1 %v5661_v56  ;;  %v5206_v7 = vperm.slane %v9603_v48, 1 }
 0x6be   : > { %5604 = vmatpush.msrb.mxu2 %v5108_v50  ;;  %v3362_v27 = vpop.f32.mrf.mxu1  ;;  %5693 = vmatpush.msra.mxu1 %v5660_v35 }
 0x6bf   : > { %5605 = vmatmul.f32.vlgmr.msrb.gmra.mxu2 %v9433_v59  ;;  %v5658_v59 = vld [vmem:[#allocation14 + $0x38] sm:$0xff]  ;;  %v5667_v27 = vld [vmem:[#allocation14 + $0x80] sm:$0xff] }
 0x6c0   : > { %5694 = vmatpush.msra.mxu1 %v5659_v63  ;;  %5707 = vmatpush.msra.mxu2 %v5682_v34 }
 0x6c1   : > { %v4579_v13 = vpop.f32.mrf.mxu2 }
 0x6c2   : > { %5695 = vmatpush.msra.mxu1 %v5658_v59  ;;  %5708 = vmatpush.msra.mxu2 %v5681_v29 }
 0x6c4   : > { %5696 = vmatpush.msra.mxu1 %v5657_v41  ;;  %5709 = vmatpush.msra.mxu2 %v5680_v61 }
 0x6c6   : > { %v3365_v6 = vpop.f32.mrf.mxu1  ;;  %5697 = vmatpush.msra.mxu1 %v5656_v8  ;;  %5710 = vmatpush.msra.mxu2 %v5679_v62 }
 0x6c7   : > { %v5466_v6 = vpop.f32.mrf.mxu0 }
 0x6c8   : > { %5698 = vmatpush.msra.mxu1 %v5655_v18  ;;  %5711 = vmatpush.msra.mxu2 %v5678_v32 }
 0x6c9   : > { %v4581_v38 = vpop.f32.mrf.mxu2 }
 0x6ca   : > { %5699 = vmatpush.msra.mxu1 %v5654_v44  ;;  %5712 = vmatpush.msra.mxu2 %v5677_v31 }
 0x6cb   : > { %v5406_v19 = vpop.f32.mrf.mxu3 }
 0x6cc   : > { %5700 = vmatpush.msra.mxu1 %v5653_v28  ;;  %5713 = vmatpush.msra.mxu2 %v5676_v26 }
 0x6ce   : > { %v5266_v14 = vpop.f32.mrf.mxu1  ;;  %5701 = vmatpush.msra.mxu1 %v5652_v1  ;;  %5714 = vmatpush.msra.mxu2 %v5675_v53 }
 0x6cf   : > { %v5267_v39 = vadd.f32 %v5266_v14, %v5247_v17  ;;  %v5546_v56 = vpop.f32.mrf.mxu0 }
 0x6d0   : > { %5702 = vmatpush.msra.mxu1 %v5651_v54  ;;  %5715 = vmatpush.msra.mxu2 %v5674_v0 }
 0x6d1   : > { %v4583_v23 = vpop.f32.mrf.mxu2 }
 0x6d2   : > { %5716 = vmatpush.msra.mxu2 %v5673_v11 }
 0x6d3   : > { %v5486_v16 = vpop.f32.mrf.mxu3 }
 0x6d4   : > { %5717 = vmatpush.msra.mxu2 %v5672_v49 }
 0x6d6   : > { %v5346_v42 = vpop.f32.mrf.mxu1  ;;  %5718 = vmatpush.msra.mxu2 %v5671_v57 }
 0x6d7   : > { %v5626_v8 = vpop.f32.mrf.mxu0 }
 0x6d8   : > { %5719 = vmatpush.msra.mxu2 %v5670_v5 }
 0x6d9   : > { %v4585_v2 = vpop.f32.mrf.mxu2 }
 0x6da   : > { %5720 = vmatpush.msra.mxu2 %v5669_v37 }
 0x6dc   : > { %5721 = vmatpush.msra.mxu2 %v5668_v21 }
 0x6de   : > { %5722 = vmatpush.msra.mxu2 %v5667_v27 }
 0x6e1   : > { %v5286_v40 = vpop.f32.mrf.mxu2 }
 0x6e2   : > { %v5287_v47 = vadd.f32 %v5286_v40, %v5267_v39 }
 0x6e4   : > { %v5307_v60 = vadd.f32 %v5306_v43, %v5287_v47 }
 0x6e6   : > { %v5327_v10 = vadd.f32 %v5326_v3, %v5307_v60 }
 0x6e8   : > { %v5347_v46 = vadd.f32 %v5346_v42, %v5327_v10 }
 0x6e9   : > { %v5366_v22 = vpop.f32.mrf.mxu2 }
 0x6ea   : > { %v5367_v12 = vadd.f32 %v5366_v22, %v5347_v46 }
 0x6ec   : > { %v5387_v55 = vadd.f32 %v5386_v45, %v5367_v12 }
 0x6ed   : > { %v5566_v63 = vpop.f32.mrf.mxu3 }
 0x6ee   : > { %v5407_v36 = vadd.f32 %v5406_v19, %v5387_v55 }
 0x701   : > { %v5446_v50 = vpop.f32.mrf.mxu2 }
 0x702   : > { %v5447_v13 = vadd.f32 %v5446_v50, %v5206_v7 }
 0x704   : > { %v5467_v38 = vadd.f32 %v5466_v6, %v5447_v13 }
 0x706   : > { %v5426_v9 = vpop.f32.mrf.mxu1  ;;  %v5487_v25 = vadd.f32 %v5486_v16, %v5467_v38 }
 0x707   : > { %v5427_v15 = vadd.f32 %v5426_v9, %v5407_v36 }
 0x709   : > { %v5649_v52 = vmax.f32 %v5427_v15, 0.0 }
 0x70b   : > { %5703 = vmatmul.f32.vlgmr.msra.gmra.mxu1 %v5649_v52 }
 0x70e   : > { %v5506_v51 = vpop.f32.mrf.mxu1  ;;  %v5646_v18 = vpop.f32.mrf.mxu3 }
 0x70f   : > { %v5507_v20 = vadd.f32 %v5506_v51, %v5487_v25 }
 0x722   : > { %v5526_v23 = vpop.f32.mrf.mxu2 }
 0x723   : > { %v5527_v4 = vadd.f32 %v5526_v23, %v5507_v20 }
 0x725   : > { %v5547_v35 = vadd.f32 %v5546_v56, %v5527_v4 }
 0x727   : > { %v5567_v59 = vadd.f32 %v5566_v63, %v5547_v35 }
 0x72e   : > { %v5586_v2 = vpop.f32.mrf.mxu1 }
 0x72f   : > { %v5587_v41 = vadd.f32 %v5586_v2, %v5567_v59 }
 0x742   : > { %v5606_v48 = vpop.f32.mrf.mxu2 }
 0x743   : > { %v5607_v30 = vadd.f32 %v5606_v48, %v5587_v41 }
 0x745   : > { %v5627_v24 = vadd.f32 %v5626_v8, %v5607_v30 }
 0x747   : > { %v5647_v44 = vadd.f32 %v5646_v18, %v5627_v24 }
 0x749   : > { %v5650_v58 = vmax.f32 %v5647_v44, 0.0 }
 0x74b   : > { %5723 = vmatmul.f32.vlgmr.msra.gmra.mxu2 %v5650_v58 }
 0x788   : > { %v5704_v14 = vpop.f32.mrf.mxu1 }
 0x789   : > { %v5705_v17 = vadd.f32 %v6530_v33, %v5704_v14 }
 0x7ce   : > { %v5724_v28 = vpop.f32.mrf.mxu2 }
 0x7cf   : > { %v5725_v1 = vadd.f32 %v5724_v28, %v5705_v17 }
 0x7d1   : > { %5727 = vst [vmem:[%s517_s28] sm:$0xff] %v5725_v1 }
 0x7d2   : > { %6836 = shalt.err (!%p6833_p8)
}
 0x7d3   : > { %6251 = dma.vmem_to_hbm [thread:$0]  (%p7007_p5), %s5742_s29, 128, %s5744_s25, %s5729_s5  }
 0x7d4 PF: > { %s9775_s9 = sld [smem:[#allocation24_spill]]  ;;  %p6303_p9 = scmp.ge.s32.totalorder %s6891_s20, 2 }
 0x7d6   : > { %p6282_p10 = pnand %p6303_p9, %p7011_p6 }
 0x7d8   : > { %p6283_p11 = pneg %p6282_p10 }
 0x7da   : > { %s5755_s16 = sand.u32 1, %s9775_s9  }
 0x7db   : > { %s5756_s19 = scalar_lea.sflag [#allocation4], %s5755_s16 }
 0x7dc   : > { %6874 = dma.done.wait (%p6283_p11), %s5756_s19, 128  }
 0x7dd   : > { %6876 = vsyncadd (%p6283_p11), %s5756_s19, 4294967168  ;;  %s9777_s20 = sld [smem:[#allocation26_spill]]  ;;  %s9780_s17 = smov %s6883_s18 }
 0x7de   : > { %s9778_s13 = sld [smem:[#allocation25_spill]] }
 0x7df   : > { %s9779_s19 = sld [smem:[#allocation27_spill]] }
 0x7e3   : > { %p26_p12 = scmp.ge.s32.totalorder %s9777_s20, 4  }
 0x7e4   : > { %s9781_s18 = smov %s9778_s13 }
 0x7e5   :  { %28 = sbr.rel (!%p26_p12) target bundleno = 13 (0xd), region = 136 }
 0x7ea   :  { %5762 = vsyncpa [#allocation3], 1 }
 0x7eb   :  { %5764 = vsyncpa [#allocation3 + $0x1], 1 }
 0x7ec   :  { %5765 = vsyncpa [#allocation6], 1 }
 0x7ed   :  { %5766 = vsyncpa [#allocation9], 1 }
 0x7ee   :  { %5767 = vsyncpa [#allocation12], 1 }
 0x7ef   :  { %5768 = vsyncpa [#allocation15], 1 }
 0x7f0   :  { %5769 = vsyncpa [#allocation4], 1 }
 0x7f1   :  { %5771 = vsyncpa [#allocation4 + $0x1], 1 }

</bundles_post_ra>
